<compile_context>
chip_gen: v7x
topology: tpu7x:2x2x1
jax: 0.10.0
libtpu: 0.0.40
codegen_flags: <defaults>
</compile_context>

<pallas_src>
import functools
import math

import jax
import jax.numpy as jnp
from jax.experimental import pallas as pl
from jax.experimental.pallas import tpu as pltpu


def _round_up(x, m):
    return ((x + m - 1) // m) * m


# ---------------------------------------------------------------------------
# Fused Pallas kernel: 3 convs + activations for ONE image per grid step.
#
# Canvas layout: every activation lives as (C, Hc*Wc [+tail]) with the
# flattened spatial index (row stride Wc) on the lane axis.  The valid output
# region of a layer sits at spatial offset (3, 3) inside the next canvas
# (3 = max padding), so each (kh, kw) conv tap is just a contiguous lane slice
# at static offset (kh + adj)*Wc + (kw + adj).
# ---------------------------------------------------------------------------
def _fused_disc_kernel(c0_ref, mask_ref, w1_ref, b1_ref, w2_ref, b2_ref,
                       w3_ref, b3_ref, out_ref, c1_ref, c2_ref, *, wc, L):
    off0 = 3 * wc + 3            # flat offset of the valid region in a canvas
    mask = mask_ref[...]         # (1, L) f32: 1.0 on valid output positions

    def conv(read, w_ref, b_ref, k, adj):
        cout = w_ref.shape[1]
        acc = jnp.zeros((cout, L), jnp.float32)
        for kh in range(k):
            for kw in range(k):
                sh = (kh + adj) * wc + (kw + adj)
                # (Cout, Cin) @ (Cin, L): L (flattened spatial) on lanes.
                acc = acc + jnp.dot(w_ref[kh * k + kw], read(sh),
                                    preferred_element_type=jnp.float32)
        return acc + b_ref[...]          # bias (Cout, 1) broadcasts over lanes

    def leaky(v):                        # torch LeakyReLU default slope
        return jnp.where(v > 0, v, jnp.float32(0.01) * v)

    def to_canvas(dst_ref, v):
        # zero the whole canvas (padding + tail), then write the masked valid
        # block at spatial offset (3, 3) in one lane-dense store.
        dst_ref[...] = jnp.zeros_like(dst_ref)
        dst_ref[:, off0:off0 + L] = (v * mask).astype(dst_ref.dtype)

    # layer 1: Conv(Cin->32, k=4, s=2, p=1) folded to a k=2/s=1 conv over the
    # space-to-depth input canvas, + LeakyReLU.
    y = leaky(conv(lambda s: c0_ref[0, :, s:s + L], w1_ref, b1_ref, 2, 0))
    to_canvas(c1_ref, y)

    # layer 2: Conv(32->16, k=7, s=1, p=3) + LeakyReLU (canvas pad 3 -> adj 0).
    y = leaky(conv(lambda s: c1_ref[:, s:s + L], w2_ref, b2_ref, 7, 0))
    to_canvas(c2_ref, y)

    # layer 3: Conv(16->8, k=5, s=1, p=2) + Sigmoid (canvas pad 3 -> adj 1).
    y = conv(lambda s: c2_ref[:, s:s + L], w3_ref, b3_ref, 5, 1)
    out_ref[0] = jax.nn.sigmoid(y).astype(out_ref.dtype)


# ---------------------------------------------------------------------------
# Parameter init (deterministic, PyTorch-default-like scales)
# weights stored HWIO: (kh, kw, cin, cout)
# ---------------------------------------------------------------------------
def init_params(key, in_channels):
    cfg = [(in_channels, 32, 4), (32, 16, 7), (16, 8, 5)]
    params = {}
    for idx, (cin, cout, k) in enumerate(cfg, start=1):
        key, kw_, kb_ = jax.random.split(key, 3)
        fan_in = cin * k * k
        bound = 1.0 / math.sqrt(fan_in)
        params[f"w{idx}"] = jax.random.uniform(
            kw_, (k, k, cin, cout), jnp.float32, -bound, bound)
        params[f"b{idx}"] = jax.random.uniform(
            kb_, (cout,), jnp.float32, -bound, bound)
    return params


# ---------------------------------------------------------------------------
# Forward pass (PatchDiscriminator.forward).  Input/output are NCHW like torch.
# ---------------------------------------------------------------------------
def patch_discriminator(x_nchw, params, *, compute_dtype=jnp.float32):
    n, cin, h, w = x_nchw.shape
    assert h % 2 == 0 and w % 2 == 0, "stride-2 conv expects even H, W"
    ho, wo = h // 2, w // 2                # output spatial size of every layer
    hc, wc = ho + 6, wo + 6                # shared canvas (max pad = 3)
    L = hc * wc                            # flattened canvas length
    ltot = _round_up(L + 6 * wc + 6, 128)  # + read tail, lane-aligned

    x = x_nchw.astype(jnp.float32)

    # --- XLA glue: pad(1), space-to-depth(2), embed in canvas, flatten -----
    xp = jnp.pad(x, ((0, 0), (0, 0), (1, 1), (1, 1)))
    hp2, wp2 = (h + 2) // 2, (w + 2) // 2
    x2 = xp.reshape(n, cin, hp2, 2, wp2, 2)        # n, cin, i, b, j, d
    x2 = x2.transpose(0, 3, 5, 1, 2, 4)            # n, b, d, cin, i, j
    c1ch = 4 * cin
    x2 = x2.reshape(n, c1ch, hp2, wp2)
    canvas0 = jnp.pad(x2, ((0, 0), (0, 0), (0, hc - hp2), (0, wc - wp2)))
    canvas0 = canvas0.reshape(n, c1ch, L)
    canvas0 = jnp.pad(canvas0, ((0, 0), (0, 0), (0, ltot - L)))
    canvas0 = canvas0.astype(compute_dtype)

    # --- weight/bias rearrangement (trace-time, tiny) -----------------------
    # layer 1: (4,4,cin,32) [kh=2a+b, kw=2c+d] -> (4 [a*2+c], 32, 4*cin [b,d,cin])
    w1t = (params["w1"].reshape(2, 2, 2, 2, cin, 32)
           .transpose(0, 2, 5, 1, 3, 4)
           .reshape(4, 32, c1ch)).astype(compute_dtype)
    w2t = (params["w2"].transpose(0, 1, 3, 2)
           .reshape(49, 16, 32)).astype(compute_dtype)
    w3t = (params["w3"].transpose(0, 1, 3, 2)
           .reshape(25, 8, 16)).astype(compute_dtype)
    b1 = params["b1"].reshape(32, 1).astype(jnp.float32)
    b2 = params["b2"].reshape(16, 1).astype(jnp.float32)
    b3 = params["b3"].reshape(8, 1).astype(jnp.float32)

    # valid-output mask on the canvas grid (precomputed; avoids in-kernel idiv)
    rows = jnp.arange(hc).reshape(hc, 1)
    cols = jnp.arange(wc).reshape(1, wc)
    mask = ((rows < ho) & (cols < wo)).astype(jnp.float32).reshape(1, L)

    kernel = functools.partial(_fused_disc_kernel, wc=wc, L=L)
    out_flat = pl.pallas_call(
        kernel,
        out_shape=jax.ShapeDtypeStruct((n, 8, L), jnp.float32),
        grid=(n,),
        in_specs=[
            pl.BlockSpec((1, c1ch, ltot), lambda i: (i, 0, 0)),  # input canvas
            pl.BlockSpec((1, L), lambda i: (0, 0)),              # mask (resident)
            pl.BlockSpec((4, 32, c1ch), lambda i: (0, 0, 0)),    # w1 (resident)
            pl.BlockSpec((32, 1), lambda i: (0, 0)),             # b1
            pl.BlockSpec((49, 16, 32), lambda i: (0, 0, 0)),     # w2
            pl.BlockSpec((16, 1), lambda i: (0, 0)),             # b2
            pl.BlockSpec((25, 8, 16), lambda i: (0, 0, 0)),      # w3
            pl.BlockSpec((8, 1), lambda i: (0, 0)),              # b3
        ],
        out_specs=pl.BlockSpec((1, 8, L), lambda i: (i, 0, 0)),
        scratch_shapes=[
            pltpu.VMEM((32, ltot), compute_dtype),   # layer-1 output canvas
            pltpu.VMEM((16, ltot), compute_dtype),   # layer-2 output canvas
        ],
        compiler_params=pltpu.CompilerParams(
            dimension_semantics=("parallel",)),      # megacore over batch
    )(canvas0, mask, w1t, b1, w2t, b2, w3t, b3)

    # channels-first already: just crop the canvas -> NCHW, no transpose.
    return out_flat.reshape(n, 8, hc, wc)[:, :, :ho, :wo]


# ---------------------------------------------------------------------------
# Pure-JAX reference (for correctness check)
# ---------------------------------------------------------------------------
def _reference(x_nchw, params):
    def conv(x, w, b, stride, pad):
        y = jax.lax.conv_general_dilated(
            x, w, window_strides=(stride, stride),
            padding=[(pad, pad), (pad, pad)],
            dimension_numbers=("NCHW", "HWIO", "NCHW"),
            precision=jax.lax.Precision.HIGHEST)
        return y + b.reshape(1, -1, 1, 1)

    x = x_nchw.astype(jnp.float32)
    x = conv(x, params["w1"], params["b1"], 2, 1)
    x = jnp.where(x > 0, x, 0.01 * x)
    x = conv(x, params["w2"], params["b2"], 1, 3)
    x = jnp.where(x > 0, x, 0.01 * x)
    x = conv(x, params["w3"], params["b3"], 1, 2)
    return jax.nn.sigmoid(x)


if __name__ == "__main__":
    key = jax.random.PRNGKey(0)
    k_x, k_p = jax.random.split(key)

    in_channels = 3                       # e.g. color LLD input
    x = jax.random.normal(k_x, (2, in_channels, 16, 16), jnp.float32)
    params = init_params(k_p, in_channels)

    # f32 path: strict check against the XLA conv reference.
    fwd = jax.jit(functools.partial(patch_discriminator,
                                    compute_dtype=jnp.float32))
    out = jax.block_until_ready(fwd(x, params))
    assert out.shape == (2, 8, 8, 8), out.shape

    ref = _reference(x, params)
    assert jnp.allclose(out, ref, rtol=1e-3, atol=1e-3), (
        float(jnp.max(jnp.abs(out - ref))))

    # bf16 MXU-input path (perf-review item): f32 accumulation, looser check.
    fwd_bf16 = jax.jit(functools.partial(patch_discriminator,
                                         compute_dtype=jnp.bfloat16))
    out_bf16 = jax.block_until_ready(fwd_bf16(x, params))
    assert out_bf16.shape == (2, 8, 8, 8), out_bf16.shape
    assert jnp.allclose(out_bf16, ref, rtol=5e-2, atol=5e-2), (
        float(jnp.max(jnp.abs(out_bf16 - ref))))

    print("KERNEL_OK")
</pallas_src>

<mosaic_0001>
module attributes {stable_mosaic.version = 11 : i64} {
  func.func @_fused_disc_kernel(%arg0: i32, %arg1: memref<1x12x384xf32, #tpu.memory_space<vmem>>, %arg2: memref<1x196xf32, #tpu.memory_space<vmem>>, %arg3: memref<4x32x12xf32, #tpu.memory_space<vmem>>, %arg4: memref<32x1xf32, #tpu.memory_space<vmem>>, %arg5: memref<49x16x32xf32, #tpu.memory_space<vmem>>, %arg6: memref<16x1xf32, #tpu.memory_space<vmem>>, %arg7: memref<25x8x16xf32, #tpu.memory_space<vmem>>, %arg8: memref<8x1xf32, #tpu.memory_space<vmem>>, %arg9: memref<1x8x196xf32, #tpu.memory_space<vmem>>, %arg10: memref<32x384xf32, #tpu.memory_space<vmem>>, %arg11: memref<16x384xf32, #tpu.memory_space<vmem>>) attributes {dimension_semantics = [#tpu.dimension_semantics<parallel>], iteration_bounds = array<i64: 2>, scalar_prefetch = 0 : i64, scratch_operands = 2 : i64, tpu.core_type = #tpu.core_type<tc>, window_params = [{transform_indices = @transform_0, window_bounds = array<i64: 1, 12, 384>}, {pipeline_mode = #tpu.pipeline_mode<synchronous>, transform_indices = @transform_1, window_bounds = array<i64: 1, 196>}, {pipeline_mode = #tpu.pipeline_mode<synchronous>, transform_indices = @transform_2, window_bounds = array<i64: 4, 32, 12>}, {pipeline_mode = #tpu.pipeline_mode<synchronous>, transform_indices = @transform_3, window_bounds = array<i64: 32, 1>}, {pipeline_mode = #tpu.pipeline_mode<synchronous>, transform_indices = @transform_4, window_bounds = array<i64: 49, 16, 32>}, {pipeline_mode = #tpu.pipeline_mode<synchronous>, transform_indices = @transform_5, window_bounds = array<i64: 16, 1>}, {pipeline_mode = #tpu.pipeline_mode<synchronous>, transform_indices = @transform_6, window_bounds = array<i64: 25, 8, 16>}, {pipeline_mode = #tpu.pipeline_mode<synchronous>, transform_indices = @transform_7, window_bounds = array<i64: 8, 1>}, {transform_indices = @transform_8, window_bounds = array<i64: 1, 8, 196>}]} {
    %c0 = arith.constant 0 : index
    %c0_0 = arith.constant 0 : index
    %0 = vector.load %arg2[%c0, %c0_0] : memref<1x196xf32, #tpu.memory_space<vmem>>, vector<1x196xf32>
    %cst = arith.constant 0.000000e+00 : f32
    %1 = vector.broadcast %cst : f32 to vector<32x196xf32>
    %c0_1 = arith.constant 0 : index
    %c0_2 = arith.constant 0 : index
    %c0_3 = arith.constant 0 : index
    %2 = vector.load %arg3[%c0_1, %c0_2, %c0_3] : memref<4x32x12xf32, #tpu.memory_space<vmem>>, vector<1x32x12xf32>
    %3 = vector.shape_cast %2 : vector<1x32x12xf32> to vector<32x12xf32>
    %c0_4 = arith.constant 0 : index
    %c0_5 = arith.constant 0 : index
    %c0_6 = arith.constant 0 : index
    %4 = vector.load %arg1[%c0_4, %c0_5, %c0_6] : memref<1x12x384xf32, #tpu.memory_space<vmem>>, vector<1x12x196xf32>
    %5 = vector.shape_cast %4 : vector<1x12x196xf32> to vector<12x196xf32>
    %cst_7 = arith.constant dense<0.000000e+00> : vector<32x196xf32>
    %6 = tpu.matmul %3, %5, %cst_7 {dimension_numbers = #tpu.dot_dimension_numbers<[1], [0], [0], [1], [0, 0, 1, 1], [], []>} : vector<32x12xf32>, vector<12x196xf32>, vector<32x196xf32> -> vector<32x196xf32>
    %7 = arith.addf %1, %6 : vector<32x196xf32>
    %c1 = arith.constant 1 : index
    %c0_8 = arith.constant 0 : index
    %c0_9 = arith.constant 0 : index
    %8 = vector.load %arg3[%c1, %c0_8, %c0_9] : memref<4x32x12xf32, #tpu.memory_space<vmem>>, vector<1x32x12xf32>
    %9 = vector.shape_cast %8 : vector<1x32x12xf32> to vector<32x12xf32>
    %c0_10 = arith.constant 0 : index
    %c0_11 = arith.constant 0 : index
    %c1_12 = arith.constant 1 : index
    %10 = vector.load %arg1[%c0_10, %c0_11, %c1_12] : memref<1x12x384xf32, #tpu.memory_space<vmem>>, vector<1x12x196xf32>
    %11 = vector.shape_cast %10 : vector<1x12x196xf32> to vector<12x196xf32>
    %cst_13 = arith.constant dense<0.000000e+00> : vector<32x196xf32>
    %12 = tpu.matmul %9, %11, %cst_13 {dimension_numbers = #tpu.dot_dimension_numbers<[1], [0], [0], [1], [0, 0, 1, 1], [], []>} : vector<32x12xf32>, vector<12x196xf32>, vector<32x196xf32> -> vector<32x196xf32>
    %13 = arith.addf %7, %12 : vector<32x196xf32>
    %c2 = arith.constant 2 : index
    %c0_14 = arith.constant 0 : index
    %c0_15 = arith.constant 0 : index
    %14 = vector.load %arg3[%c2, %c0_14, %c0_15] : memref<4x32x12xf32, #tpu.memory_space<vmem>>, vector<1x32x12xf32>
    %15 = vector.shape_cast %14 : vector<1x32x12xf32> to vector<32x12xf32>
    %c0_16 = arith.constant 0 : index
    %c0_17 = arith.constant 0 : index
    %c14 = arith.constant 14 : index
    %16 = vector.load %arg1[%c0_16, %c0_17, %c14] : memref<1x12x384xf32, #tpu.memory_space<vmem>>, vector<1x12x196xf32>
    %17 = vector.shape_cast %16 : vector<1x12x196xf32> to vector<12x196xf32>
    %cst_18 = arith.constant dense<0.000000e+00> : vector<32x196xf32>
    %18 = tpu.matmul %15, %17, %cst_18 {dimension_numbers = #tpu.dot_dimension_numbers<[1], [0], [0], [1], [0, 0, 1, 1], [], []>} : vector<32x12xf32>, vector<12x196xf32>, vector<32x196xf32> -> vector<32x196xf32>
    %19 = arith.addf %13, %18 : vector<32x196xf32>
    %c3 = arith.constant 3 : index
    %c0_19 = arith.constant 0 : index
    %c0_20 = arith.constant 0 : index
    %20 = vector.load %arg3[%c3, %c0_19, %c0_20] : memref<4x32x12xf32, #tpu.memory_space<vmem>>, vector<1x32x12xf32>
    %21 = vector.shape_cast %20 : vector<1x32x12xf32> to vector<32x12xf32>
    %c0_21 = arith.constant 0 : index
    %c0_22 = arith.constant 0 : index
    %c15 = arith.constant 15 : index
    %22 = vector.load %arg1[%c0_21, %c0_22, %c15] : memref<1x12x384xf32, #tpu.memory_space<vmem>>, vector<1x12x196xf32>
    %23 = vector.shape_cast %22 : vector<1x12x196xf32> to vector<12x196xf32>
    %cst_23 = arith.constant dense<0.000000e+00> : vector<32x196xf32>
    %24 = tpu.matmul %21, %23, %cst_23 {dimension_numbers = #tpu.dot_dimension_numbers<[1], [0], [0], [1], [0, 0, 1, 1], [], []>} : vector<32x12xf32>, vector<12x196xf32>, vector<32x196xf32> -> vector<32x196xf32>
    %25 = arith.addf %19, %24 : vector<32x196xf32>
    %c0_24 = arith.constant 0 : index
    %c0_25 = arith.constant 0 : index
    %26 = vector.load %arg4[%c0_24, %c0_25] : memref<32x1xf32, #tpu.memory_space<vmem>>, vector<32x1xf32>
    %27 = vector.broadcast %26 : vector<32x1xf32> to vector<32x196xf32>
    %28 = arith.addf %25, %27 : vector<32x196xf32>
    %cst_26 = arith.constant 0.000000e+00 : f32
    %29 = vector.broadcast %cst_26 : f32 to vector<32x196xf32>
    %30 = arith.cmpf ogt, %28, %29 : vector<32x196xf32>
    %cst_27 = arith.constant 0.00999999977 : f32
    %31 = vector.broadcast %cst_27 : f32 to vector<32x196xf32>
    %32 = arith.mulf %31, %28 : vector<32x196xf32>
    %33 = arith.select %30, %28, %32 : vector<32x196xi1>, vector<32x196xf32>
    %cst_28 = arith.constant 0.000000e+00 : f32
    %34 = vector.broadcast %cst_28 : f32 to vector<32x384xf32>
    %c0_29 = arith.constant 0 : index
    %c0_30 = arith.constant 0 : index
    %35 = vector.load %arg10[%c0_29, %c0_30] : memref<32x384xf32, #tpu.memory_space<vmem>>, vector<32x384xf32>
    tpu.vector_store %arg10[%c0_29, %c0_30], %34 {strides = array<i32>} : memref<32x384xf32, #tpu.memory_space<vmem>>, vector<32x384xf32>,
    %36 = vector.broadcast %0 : vector<1x196xf32> to vector<32x196xf32>
    %37 = arith.mulf %33, %36 : vector<32x196xf32>
    %c0_31 = arith.constant 0 : index
    %c45 = arith.constant 45 : index
    %38 = vector.load %arg10[%c0_31, %c45] : memref<32x384xf32, #tpu.memory_space<vmem>>, vector<32x196xf32>
    tpu.vector_store %arg10[%c0_31, %c45], %37 {strides = array<i32>} : memref<32x384xf32, #tpu.memory_space<vmem>>, vector<32x196xf32>,
    %cst_32 = arith.constant 0.000000e+00 : f32
    %39 = vector.broadcast %cst_32 : f32 to vector<16x196xf32>
    %c0_33 = arith.constant 0 : index
    %c0_34 = arith.constant 0 : index
    %c0_35 = arith.constant 0 : index
    %40 = vector.load %arg5[%c0_33, %c0_34, %c0_35] : memref<49x16x32xf32, #tpu.memory_space<vmem>>, vector<1x16x32xf32>
    %41 = vector.shape_cast %40 : vector<1x16x32xf32> to vector<16x32xf32>
    %c0_36 = arith.constant 0 : index
    %c0_37 = arith.constant 0 : index
    %42 = vector.load %arg10[%c0_36, %c0_37] : memref<32x384xf32, #tpu.memory_space<vmem>>, vector<32x196xf32>
    %cst_38 = arith.constant dense<0.000000e+00> : vector<16x196xf32>
    %43 = tpu.matmul %41, %42, %cst_38 {dimension_numbers = #tpu.dot_dimension_numbers<[1], [0], [0], [1], [0, 0, 1, 1], [], []>} : vector<16x32xf32>, vector<32x196xf32>, vector<16x196xf32> -> vector<16x196xf32>
    %44 = arith.addf %39, %43 : vector<16x196xf32>
    %c1_39 = arith.constant 1 : index
    %c0_40 = arith.constant 0 : index
    %c0_41 = arith.constant 0 : index
    %45 = vector.load %arg5[%c1_39, %c0_40, %c0_41] : memref<49x16x32xf32, #tpu.memory_space<vmem>>, vector<1x16x32xf32>
    %46 = vector.shape_cast %45 : vector<1x16x32xf32> to vector<16x32xf32>
    %c0_42 = arith.constant 0 : index
    %c1_43 = arith.constant 1 : index
    %47 = vector.load %arg10[%c0_42, %c1_43] : memref<32x384xf32, #tpu.memory_space<vmem>>, vector<32x196xf32>
    %cst_44 = arith.constant dense<0.000000e+00> : vector<16x196xf32>
    %48 = tpu.matmul %46, %47, %cst_44 {dimension_numbers = #tpu.dot_dimension_numbers<[1], [0], [0], [1], [0, 0, 1, 1], [], []>} : vector<16x32xf32>, vector<32x196xf32>, vector<16x196xf32> -> vector<16x196xf32>
    %49 = arith.addf %44, %48 : vector<16x196xf32>
    %c2_45 = arith.constant 2 : index
    %c0_46 = arith.constant 0 : index
    %c0_47 = arith.constant 0 : index
    %50 = vector.load %arg5[%c2_45, %c0_46, %c0_47] : memref<49x16x32xf32, #tpu.memory_space<vmem>>, vector<1x16x32xf32>
    %51 = vector.shape_cast %50 : vector<1x16x32xf32> to vector<16x32xf32>
    %c0_48 = arith.constant 0 : index
    %c2_49 = arith.constant 2 : index
    %52 = vector.load %arg10[%c0_48, %c2_49] : memref<32x384xf32, #tpu.memory_space<vmem>>, vector<32x196xf32>
    %cst_50 = arith.constant dense<0.000000e+00> : vector<16x196xf32>
    %53 = tpu.matmul %51, %52, %cst_50 {dimension_numbers = #tpu.dot_dimension_numbers<[1], [0], [0], [1], [0, 0, 1, 1], [], []>} : vector<16x32xf32>, vector<32x196xf32>, vector<16x196xf32> -> vector<16x196xf32>
    %54 = arith.addf %49, %53 : vector<16x196xf32>
    %c3_51 = arith.constant 3 : index
    %c0_52 = arith.constant 0 : index
    %c0_53 = arith.constant 0 : index
    %55 = vector.load %arg5[%c3_51, %c0_52, %c0_53] : memref<49x16x32xf32, #tpu.memory_space<vmem>>, vector<1x16x32xf32>
    %56 = vector.shape_cast %55 : vector<1x16x32xf32> to vector<16x32xf32>
    %c0_54 = arith.constant 0 : index
    %c3_55 = arith.constant 3 : index
    %57 = vector.load %arg10[%c0_54, %c3_55] : memref<32x384xf32, #tpu.memory_space<vmem>>, vector<32x196xf32>
    %cst_56 = arith.constant dense<0.000000e+00> : vector<16x196xf32>
    %58 = tpu.matmul %56, %57, %cst_56 {dimension_numbers = #tpu.dot_dimension_numbers<[1], [0], [0], [1], [0, 0, 1, 1], [], []>} : vector<16x32xf32>, vector<32x196xf32>, vector<16x196xf32> -> vector<16x196xf32>
    %59 = arith.addf %54, %58 : vector<16x196xf32>
    %c4 = arith.constant 4 : index
    %c0_57 = arith.constant 0 : index
    %c0_58 = arith.constant 0 : index
    %60 = vector.load %arg5[%c4, %c0_57, %c0_58] : memref<49x16x32xf32, #tpu.memory_space<vmem>>, vector<1x16x32xf32>
    %61 = vector.shape_cast %60 : vector<1x16x32xf32> to vector<16x32xf32>
    %c0_59 = arith.constant 0 : index
    %c4_60 = arith.constant 4 : index
    %62 = vector.load %arg10[%c0_59, %c4_60] : memref<32x384xf32, #tpu.memory_space<vmem>>, vector<32x196xf32>
    %cst_61 = arith.constant dense<0.000000e+00> : vector<16x196xf32>
    %63 = tpu.matmul %61, %62, %cst_61 {dimension_numbers = #tpu.dot_dimension_numbers<[1], [0], [0], [1], [0, 0, 1, 1], [], []>} : vector<16x32xf32>, vector<32x196xf32>, vector<16x196xf32> -> vector<16x196xf32>
    %64 = arith.addf %59, %63 : vector<16x196xf32>
    %c5 = arith.constant 5 : index
    %c0_62 = arith.constant 0 : index
    %c0_63 = arith.constant 0 : index
    %65 = vector.load %arg5[%c5, %c0_62, %c0_63] : memref<49x16x32xf32, #tpu.memory_space<vmem>>, vector<1x16x32xf32>
    %66 = vector.shape_cast %65 : vector<1x16x32xf32> to vector<16x32xf32>
    %c0_64 = arith.constant 0 : index
    %c5_65 = arith.constant 5 : index
    %67 = vector.load %arg10[%c0_64, %c5_65] : memref<32x384xf32, #tpu.memory_space<vmem>>, vector<32x196xf32>
    %cst_66 = arith.constant dense<0.000000e+00> : vector<16x196xf32>
    %68 = tpu.matmul %66, %67, %cst_66 {dimension_numbers = #tpu.dot_dimension_numbers<[1], [0], [0], [1], [0, 0, 1, 1], [], []>} : vector<16x32xf32>, vector<32x196xf32>, vector<16x196xf32> -> vector<16x196xf32>
    %69 = arith.addf %64, %68 : vector<16x196xf32>
    %c6 = arith.constant 6 : index
    %c0_67 = arith.constant 0 : index
    %c0_68 = arith.constant 0 : index
    %70 = vector.load %arg5[%c6, %c0_67, %c0_68] : memref<49x16x32xf32, #tpu.memory_space<vmem>>, vector<1x16x32xf32>
    %71 = vector.shape_cast %70 : vector<1x16x32xf32> to vector<16x32xf32>
    %c0_69 = arith.constant 0 : index
    %c6_70 = arith.constant 6 : index
    %72 = vector.load %arg10[%c0_69, %c6_70] : memref<32x384xf32, #tpu.memory_space<vmem>>, vector<32x196xf32>
    %cst_71 = arith.constant dense<0.000000e+00> : vector<16x196xf32>
    %73 = tpu.matmul %71, %72, %cst_71 {dimension_numbers = #tpu.dot_dimension_numbers<[1], [0], [0], [1], [0, 0, 1, 1], [], []>} : vector<16x32xf32>, vector<32x196xf32>, vector<16x196xf32> -> vector<16x196xf32>
    %74 = arith.addf %69, %73 : vector<16x196xf32>
    %c7 = arith.constant 7 : index
    %c0_72 = arith.constant 0 : index
    %c0_73 = arith.constant 0 : index
    %75 = vector.load %arg5[%c7, %c0_72, %c0_73] : memref<49x16x32xf32, #tpu.memory_space<vmem>>, vector<1x16x32xf32>
    %76 = vector.shape_cast %75 : vector<1x16x32xf32> to vector<16x32xf32>
    %c0_74 = arith.constant 0 : index
    %c14_75 = arith.constant 14 : index
    %77 = vector.load %arg10[%c0_74, %c14_75] : memref<32x384xf32, #tpu.memory_space<vmem>>, vector<32x196xf32>
    %cst_76 = arith.constant dense<0.000000e+00> : vector<16x196xf32>
    %78 = tpu.matmul %76, %77, %cst_76 {dimension_numbers = #tpu.dot_dimension_numbers<[1], [0], [0], [1], [0, 0, 1, 1], [], []>} : vector<16x32xf32>, vector<32x196xf32>, vector<16x196xf32> -> vector<16x196xf32>
    %79 = arith.addf %74, %78 : vector<16x196xf32>
    %c8 = arith.constant 8 : index
    %c0_77 = arith.constant 0 : index
    %c0_78 = arith.constant 0 : index
    %80 = vector.load %arg5[%c8, %c0_77, %c0_78] : memref<49x16x32xf32, #tpu.memory_space<vmem>>, vector<1x16x32xf32>
    %81 = vector.shape_cast %80 : vector<1x16x32xf32> to vector<16x32xf32>
    %c0_79 = arith.constant 0 : index
    %c15_80 = arith.constant 15 : index
    %82 = vector.load %arg10[%c0_79, %c15_80] : memref<32x384xf32, #tpu.memory_space<vmem>>, vector<32x196xf32>
    %cst_81 = arith.constant dense<0.000000e+00> : vector<16x196xf32>
    %83 = tpu.matmul %81, %82, %cst_81 {dimension_numbers = #tpu.dot_dimension_numbers<[1], [0], [0], [1], [0, 0, 1, 1], [], []>} : vector<16x32xf32>, vector<32x196xf32>, vector<16x196xf32> -> vector<16x196xf32>
    %84 = arith.addf %79, %83 : vector<16x196xf32>
    %c9 = arith.constant 9 : index
    %c0_82 = arith.constant 0 : index
    %c0_83 = arith.constant 0 : index
    %85 = vector.load %arg5[%c9, %c0_82, %c0_83] : memref<49x16x32xf32, #tpu.memory_space<vmem>>, vector<1x16x32xf32>
    %86 = vector.shape_cast %85 : vector<1x16x32xf32> to vector<16x32xf32>
    %c0_84 = arith.constant 0 : index
    %c16 = arith.constant 16 : index
    %87 = vector.load %arg10[%c0_84, %c16] : memref<32x384xf32, #tpu.memory_space<vmem>>, vector<32x196xf32>
    %cst_85 = arith.constant dense<0.000000e+00> : vector<16x196xf32>
    %88 = tpu.matmul %86, %87, %cst_85 {dimension_numbers = #tpu.dot_dimension_numbers<[1], [0], [0], [1], [0, 0, 1, 1], [], []>} : vector<16x32xf32>, vector<32x196xf32>, vector<16x196xf32> -> vector<16x196xf32>
    %89 = arith.addf %84, %88 : vector<16x196xf32>
    %c10 = arith.constant 10 : index
    %c0_86 = arith.constant 0 : index
    %c0_87 = arith.constant 0 : index
    %90 = vector.load %arg5[%c10, %c0_86, %c0_87] : memref<49x16x32xf32, #tpu.memory_space<vmem>>, vector<1x16x32xf32>
    %91 = vector.shape_cast %90 : vector<1x16x32xf32> to vector<16x32xf32>
    %c0_88 = arith.constant 0 : index
    %c17 = arith.constant 17 : index
    %92 = vector.load %arg10[%c0_88, %c17] : memref<32x384xf32, #tpu.memory_space<vmem>>, vector<32x196xf32>
    %cst_89 = arith.constant dense<0.000000e+00> : vector<16x196xf32>
    %93 = tpu.matmul %91, %92, %cst_89 {dimension_numbers = #tpu.dot_dimension_numbers<[1], [0], [0], [1], [0, 0, 1, 1], [], []>} : vector<16x32xf32>, vector<32x196xf32>, vector<16x196xf32> -> vector<16x196xf32>
    %94 = arith.addf %89, %93 : vector<16x196xf32>
    %c11 = arith.constant 11 : index
    %c0_90 = arith.constant 0 : index
    %c0_91 = arith.constant 0 : index
    %95 = vector.load %arg5[%c11, %c0_90, %c0_91] : memref<49x16x32xf32, #tpu.memory_space<vmem>>, vector<1x16x32xf32>
    %96 = vector.shape_cast %95 : vector<1x16x32xf32> to vector<16x32xf32>
    %c0_92 = arith.constant 0 : index
    %c18 = arith.constant 18 : index
    %97 = vector.load %arg10[%c0_92, %c18] : memref<32x384xf32, #tpu.memory_space<vmem>>, vector<32x196xf32>
    %cst_93 = arith.constant dense<0.000000e+00> : vector<16x196xf32>
    %98 = tpu.matmul %96, %97, %cst_93 {dimension_numbers = #tpu.dot_dimension_numbers<[1], [0], [0], [1], [0, 0, 1, 1], [], []>} : vector<16x32xf32>, vector<32x196xf32>, vector<16x196xf32> -> vector<16x196xf32>
    %99 = arith.addf %94, %98 : vector<16x196xf32>
    %c12 = arith.constant 12 : index
    %c0_94 = arith.constant 0 : index
    %c0_95 = arith.constant 0 : index
    %100 = vector.load %arg5[%c12, %c0_94, %c0_95] : memref<49x16x32xf32, #tpu.memory_space<vmem>>, vector<1x16x32xf32>
    %101 = vector.shape_cast %100 : vector<1x16x32xf32> to vector<16x32xf32>
    %c0_96 = arith.constant 0 : index
    %c19 = arith.constant 19 : index
    %102 = vector.load %arg10[%c0_96, %c19] : memref<32x384xf32, #tpu.memory_space<vmem>>, vector<32x196xf32>
    %cst_97 = arith.constant dense<0.000000e+00> : vector<16x196xf32>
    %103 = tpu.matmul %101, %102, %cst_97 {dimension_numbers = #tpu.dot_dimension_numbers<[1], [0], [0], [1], [0, 0, 1, 1], [], []>} : vector<16x32xf32>, vector<32x196xf32>, vector<16x196xf32> -> vector<16x196xf32>
    %104 = arith.addf %99, %103 : vector<16x196xf32>
    %c13 = arith.constant 13 : index
    %c0_98 = arith.constant 0 : index
    %c0_99 = arith.constant 0 : index
    %105 = vector.load %arg5[%c13, %c0_98, %c0_99] : memref<49x16x32xf32, #tpu.memory_space<vmem>>, vector<1x16x32xf32>
    %106 = vector.shape_cast %105 : vector<1x16x32xf32> to vector<16x32xf32>
    %c0_100 = arith.constant 0 : index
    %c20 = arith.constant 20 : index
    %107 = vector.load %arg10[%c0_100, %c20] : memref<32x384xf32, #tpu.memory_space<vmem>>, vector<32x196xf32>
    %cst_101 = arith.constant dense<0.000000e+00> : vector<16x196xf32>
    %108 = tpu.matmul %106, %107, %cst_101 {dimension_numbers = #tpu.dot_dimension_numbers<[1], [0], [0], [1], [0, 0, 1, 1], [], []>} : vector<16x32xf32>, vector<32x196xf32>, vector<16x196xf32> -> vector<16x196xf32>
    %109 = arith.addf %104, %108 : vector<16x196xf32>
    %c14_102 = arith.constant 14 : index
    %c0_103 = arith.constant 0 : index
    %c0_104 = arith.constant 0 : index
    %110 = vector.load %arg5[%c14_102, %c0_103, %c0_104] : memref<49x16x32xf32, #tpu.memory_space<vmem>>, vector<1x16x32xf32>
    %111 = vector.shape_cast %110 : vector<1x16x32xf32> to vector<16x32xf32>
    %c0_105 = arith.constant 0 : index
    %c28 = arith.constant 28 : index
    %112 = vector.load %arg10[%c0_105, %c28] : memref<32x384xf32, #tpu.memory_space<vmem>>, vector<32x196xf32>
    %cst_106 = arith.constant dense<0.000000e+00> : vector<16x196xf32>
    %113 = tpu.matmul %111, %112, %cst_106 {dimension_numbers = #tpu.dot_dimension_numbers<[1], [0], [0], [1], [0, 0, 1, 1], [], []>} : vector<16x32xf32>, vector<32x196xf32>, vector<16x196xf32> -> vector<16x196xf32>
    %114 = arith.addf %109, %113 : vector<16x196xf32>
    %c15_107 = arith.constant 15 : index
    %c0_108 = arith.constant 0 : index
    %c0_109 = arith.constant 0 : index
    %115 = vector.load %arg5[%c15_107, %c0_108, %c0_109] : memref<49x16x32xf32, #tpu.memory_space<vmem>>, vector<1x16x32xf32>
    %116 = vector.shape_cast %115 : vector<1x16x32xf32> to vector<16x32xf32>
    %c0_110 = arith.constant 0 : index
    %c29 = arith.constant 29 : index
    %117 = vector.load %arg10[%c0_110, %c29] : memref<32x384xf32, #tpu.memory_space<vmem>>, vector<32x196xf32>
    %cst_111 = arith.constant dense<0.000000e+00> : vector<16x196xf32>
    %118 = tpu.matmul %116, %117, %cst_111 {dimension_numbers = #tpu.dot_dimension_numbers<[1], [0], [0], [1], [0, 0, 1, 1], [], []>} : vector<16x32xf32>, vector<32x196xf32>, vector<16x196xf32> -> vector<16x196xf32>
    %119 = arith.addf %114, %118 : vector<16x196xf32>
    %c16_112 = arith.constant 16 : index
    %c0_113 = arith.constant 0 : index
    %c0_114 = arith.constant 0 : index
    %120 = vector.load %arg5[%c16_112, %c0_113, %c0_114] : memref<49x16x32xf32, #tpu.memory_space<vmem>>, vector<1x16x32xf32>
    %121 = vector.shape_cast %120 : vector<1x16x32xf32> to vector<16x32xf32>
    %c0_115 = arith.constant 0 : index
    %c30 = arith.constant 30 : index
    %122 = vector.load %arg10[%c0_115, %c30] : memref<32x384xf32, #tpu.memory_space<vmem>>, vector<32x196xf32>
    %cst_116 = arith.constant dense<0.000000e+00> : vector<16x196xf32>
    %123 = tpu.matmul %121, %122, %cst_116 {dimension_numbers = #tpu.dot_dimension_numbers<[1], [0], [0], [1], [0, 0, 1, 1], [], []>} : vector<16x32xf32>, vector<32x196xf32>, vector<16x196xf32> -> vector<16x196xf32>
    %124 = arith.addf %119, %123 : vector<16x196xf32>
    %c17_117 = arith.constant 17 : index
    %c0_118 = arith.constant 0 : index
    %c0_119 = arith.constant 0 : index
    %125 = vector.load %arg5[%c17_117, %c0_118, %c0_119] : memref<49x16x32xf32, #tpu.memory_space<vmem>>, vector<1x16x32xf32>
    %126 = vector.shape_cast %125 : vector<1x16x32xf32> to vector<16x32xf32>
    %c0_120 = arith.constant 0 : index
    %c31 = arith.constant 31 : index
    %127 = vector.load %arg10[%c0_120, %c31] : memref<32x384xf32, #tpu.memory_space<vmem>>, vector<32x196xf32>
    %cst_121 = arith.constant dense<0.000000e+00> : vector<16x196xf32>
    %128 = tpu.matmul %126, %127, %cst_121 {dimension_numbers = #tpu.dot_dimension_numbers<[1], [0], [0], [1], [0, 0, 1, 1], [], []>} : vector<16x32xf32>, vector<32x196xf32>, vector<16x196xf32> -> vector<16x196xf32>
    %129 = arith.addf %124, %128 : vector<16x196xf32>
    %c18_122 = arith.constant 18 : index
    %c0_123 = arith.constant 0 : index
    %c0_124 = arith.constant 0 : index
    %130 = vector.load %arg5[%c18_122, %c0_123, %c0_124] : memref<49x16x32xf32, #tpu.memory_space<vmem>>, vector<1x16x32xf32>
    %131 = vector.shape_cast %130 : vector<1x16x32xf32> to vector<16x32xf32>
    %c0_125 = arith.constant 0 : index
    %c32 = arith.constant 32 : index
    %132 = vector.load %arg10[%c0_125, %c32] : memref<32x384xf32, #tpu.memory_space<vmem>>, vector<32x196xf32>
    %cst_126 = arith.constant dense<0.000000e+00> : vector<16x196xf32>
    %133 = tpu.matmul %131, %132, %cst_126 {dimension_numbers = #tpu.dot_dimension_numbers<[1], [0], [0], [1], [0, 0, 1, 1], [], []>} : vector<16x32xf32>, vector<32x196xf32>, vector<16x196xf32> -> vector<16x196xf32>
    %134 = arith.addf %129, %133 : vector<16x196xf32>
    %c19_127 = arith.constant 19 : index
    %c0_128 = arith.constant 0 : index
    %c0_129 = arith.constant 0 : index
    %135 = vector.load %arg5[%c19_127, %c0_128, %c0_129] : memref<49x16x32xf32, #tpu.memory_space<vmem>>, vector<1x16x32xf32>
    %136 = vector.shape_cast %135 : vector<1x16x32xf32> to vector<16x32xf32>
    %c0_130 = arith.constant 0 : index
    %c33 = arith.constant 33 : index
    %137 = vector.load %arg10[%c0_130, %c33] : memref<32x384xf32, #tpu.memory_space<vmem>>, vector<32x196xf32>
    %cst_131 = arith.constant dense<0.000000e+00> : vector<16x196xf32>
    %138 = tpu.matmul %136, %137, %cst_131 {dimension_numbers = #tpu.dot_dimension_numbers<[1], [0], [0], [1], [0, 0, 1, 1], [], []>} : vector<16x32xf32>, vector<32x196xf32>, vector<16x196xf32> -> vector<16x196xf32>
    %139 = arith.addf %134, %138 : vector<16x196xf32>
    %c20_132 = arith.constant 20 : index
    %c0_133 = arith.constant 0 : index
    %c0_134 = arith.constant 0 : index
    %140 = vector.load %arg5[%c20_132, %c0_133, %c0_134] : memref<49x16x32xf32, #tpu.memory_space<vmem>>, vector<1x16x32xf32>
    %141 = vector.shape_cast %140 : vector<1x16x32xf32> to vector<16x32xf32>
    %c0_135 = arith.constant 0 : index
    %c34 = arith.constant 34 : index
    %142 = vector.load %arg10[%c0_135, %c34] : memref<32x384xf32, #tpu.memory_space<vmem>>, vector<32x196xf32>
    %cst_136 = arith.constant dense<0.000000e+00> : vector<16x196xf32>
    %143 = tpu.matmul %141, %142, %cst_136 {dimension_numbers = #tpu.dot_dimension_numbers<[1], [0], [0], [1], [0, 0, 1, 1], [], []>} : vector<16x32xf32>, vector<32x196xf32>, vector<16x196xf32> -> vector<16x196xf32>
    %144 = arith.addf %139, %143 : vector<16x196xf32>
    %c21 = arith.constant 21 : index
    %c0_137 = arith.constant 0 : index
    %c0_138 = arith.constant 0 : index
    %145 = vector.load %arg5[%c21, %c0_137, %c0_138] : memref<49x16x32xf32, #tpu.memory_space<vmem>>, vector<1x16x32xf32>
    %146 = vector.shape_cast %145 : vector<1x16x32xf32> to vector<16x32xf32>
    %c0_139 = arith.constant 0 : index
    %c42 = arith.constant 42 : index
    %147 = vector.load %arg10[%c0_139, %c42] : memref<32x384xf32, #tpu.memory_space<vmem>>, vector<32x196xf32>
    %cst_140 = arith.constant dense<0.000000e+00> : vector<16x196xf32>
    %148 = tpu.matmul %146, %147, %cst_140 {dimension_numbers = #tpu.dot_dimension_numbers<[1], [0], [0], [1], [0, 0, 1, 1], [], []>} : vector<16x32xf32>, vector<32x196xf32>, vector<16x196xf32> -> vector<16x196xf32>
    %149 = arith.addf %144, %148 : vector<16x196xf32>
    %c22 = arith.constant 22 : index
    %c0_141 = arith.constant 0 : index
    %c0_142 = arith.constant 0 : index
    %150 = vector.load %arg5[%c22, %c0_141, %c0_142] : memref<49x16x32xf32, #tpu.memory_space<vmem>>, vector<1x16x32xf32>
    %151 = vector.shape_cast %150 : vector<1x16x32xf32> to vector<16x32xf32>
    %c0_143 = arith.constant 0 : index
    %c43 = arith.constant 43 : index
    %152 = vector.load %arg10[%c0_143, %c43] : memref<32x384xf32, #tpu.memory_space<vmem>>, vector<32x196xf32>
    %cst_144 = arith.constant dense<0.000000e+00> : vector<16x196xf32>
    %153 = tpu.matmul %151, %152, %cst_144 {dimension_numbers = #tpu.dot_dimension_numbers<[1], [0], [0], [1], [0, 0, 1, 1], [], []>} : vector<16x32xf32>, vector<32x196xf32>, vector<16x196xf32> -> vector<16x196xf32>
    %154 = arith.addf %149, %153 : vector<16x196xf32>
    %c23 = arith.constant 23 : index
    %c0_145 = arith.constant 0 : index
    %c0_146 = arith.constant 0 : index
    %155 = vector.load %arg5[%c23, %c0_145, %c0_146] : memref<49x16x32xf32, #tpu.memory_space<vmem>>, vector<1x16x32xf32>
    %156 = vector.shape_cast %155 : vector<1x16x32xf32> to vector<16x32xf32>
    %c0_147 = arith.constant 0 : index
    %c44 = arith.constant 44 : index
    %157 = vector.load %arg10[%c0_147, %c44] : memref<32x384xf32, #tpu.memory_space<vmem>>, vector<32x196xf32>
    %cst_148 = arith.constant dense<0.000000e+00> : vector<16x196xf32>
    %158 = tpu.matmul %156, %157, %cst_148 {dimension_numbers = #tpu.dot_dimension_numbers<[1], [0], [0], [1], [0, 0, 1, 1], [], []>} : vector<16x32xf32>, vector<32x196xf32>, vector<16x196xf32> -> vector<16x196xf32>
    %159 = arith.addf %154, %158 : vector<16x196xf32>
    %c24 = arith.constant 24 : index
    %c0_149 = arith.constant 0 : index
    %c0_150 = arith.constant 0 : index
    %160 = vector.load %arg5[%c24, %c0_149, %c0_150] : memref<49x16x32xf32, #tpu.memory_space<vmem>>, vector<1x16x32xf32>
    %161 = vector.shape_cast %160 : vector<1x16x32xf32> to vector<16x32xf32>
    %c0_151 = arith.constant 0 : index
    %c45_152 = arith.constant 45 : index
    %162 = vector.load %arg10[%c0_151, %c45_152] : memref<32x384xf32, #tpu.memory_space<vmem>>, vector<32x196xf32>
    %cst_153 = arith.constant dense<0.000000e+00> : vector<16x196xf32>
    %163 = tpu.matmul %161, %162, %cst_153 {dimension_numbers = #tpu.dot_dimension_numbers<[1], [0], [0], [1], [0, 0, 1, 1], [], []>} : vector<16x32xf32>, vector<32x196xf32>, vector<16x196xf32> -> vector<16x196xf32>
    %164 = arith.addf %159, %163 : vector<16x196xf32>
    %c25 = arith.constant 25 : index
    %c0_154 = arith.constant 0 : index
    %c0_155 = arith.constant 0 : index
    %165 = vector.load %arg5[%c25, %c0_154, %c0_155] : memref<49x16x32xf32, #tpu.memory_space<vmem>>, vector<1x16x32xf32>
    %166 = vector.shape_cast %165 : vector<1x16x32xf32> to vector<16x32xf32>
    %c0_156 = arith.constant 0 : index
    %c46 = arith.constant 46 : index
    %167 = vector.load %arg10[%c0_156, %c46] : memref<32x384xf32, #tpu.memory_space<vmem>>, vector<32x196xf32>
    %cst_157 = arith.constant dense<0.000000e+00> : vector<16x196xf32>
    %168 = tpu.matmul %166, %167, %cst_157 {dimension_numbers = #tpu.dot_dimension_numbers<[1], [0], [0], [1], [0, 0, 1, 1], [], []>} : vector<16x32xf32>, vector<32x196xf32>, vector<16x196xf32> -> vector<16x196xf32>
    %169 = arith.addf %164, %168 : vector<16x196xf32>
    %c26 = arith.constant 26 : index
    %c0_158 = arith.constant 0 : index
    %c0_159 = arith.constant 0 : index
    %170 = vector.load %arg5[%c26, %c0_158, %c0_159] : memref<49x16x32xf32, #tpu.memory_space<vmem>>, vector<1x16x32xf32>
    %171 = vector.shape_cast %170 : vector<1x16x32xf32> to vector<16x32xf32>
    %c0_160 = arith.constant 0 : index
    %c47 = arith.constant 47 : index
    %172 = vector.load %arg10[%c0_160, %c47] : memref<32x384xf32, #tpu.memory_space<vmem>>, vector<32x196xf32>
    %cst_161 = arith.constant dense<0.000000e+00> : vector<16x196xf32>
    %173 = tpu.matmul %171, %172, %cst_161 {dimension_numbers = #tpu.dot_dimension_numbers<[1], [0], [0], [1], [0, 0, 1, 1], [], []>} : vector<16x32xf32>, vector<32x196xf32>, vector<16x196xf32> -> vector<16x196xf32>
    %174 = arith.addf %169, %173 : vector<16x196xf32>
    %c27 = arith.constant 27 : index
    %c0_162 = arith.constant 0 : index
    %c0_163 = arith.constant 0 : index
    %175 = vector.load %arg5[%c27, %c0_162, %c0_163] : memref<49x16x32xf32, #tpu.memory_space<vmem>>, vector<1x16x32xf32>
    %176 = vector.shape_cast %175 : vector<1x16x32xf32> to vector<16x32xf32>
    %c0_164 = arith.constant 0 : index
    %c48 = arith.constant 48 : index
    %177 = vector.load %arg10[%c0_164, %c48] : memref<32x384xf32, #tpu.memory_space<vmem>>, vector<32x196xf32>
    %cst_165 = arith.constant dense<0.000000e+00> : vector<16x196xf32>
    %178 = tpu.matmul %176, %177, %cst_165 {dimension_numbers = #tpu.dot_dimension_numbers<[1], [0], [0], [1], [0, 0, 1, 1], [], []>} : vector<16x32xf32>, vector<32x196xf32>, vector<16x196xf32> -> vector<16x196xf32>
    %179 = arith.addf %174, %178 : vector<16x196xf32>
    %c28_166 = arith.constant 28 : index
    %c0_167 = arith.constant 0 : index
    %c0_168 = arith.constant 0 : index
    %180 = vector.load %arg5[%c28_166, %c0_167, %c0_168] : memref<49x16x32xf32, #tpu.memory_space<vmem>>, vector<1x16x32xf32>
    %181 = vector.shape_cast %180 : vector<1x16x32xf32> to vector<16x32xf32>
    %c0_169 = arith.constant 0 : index
    %c56 = arith.constant 56 : index
    %182 = vector.load %arg10[%c0_169, %c56] : memref<32x384xf32, #tpu.memory_space<vmem>>, vector<32x196xf32>
    %cst_170 = arith.constant dense<0.000000e+00> : vector<16x196xf32>
    %183 = tpu.matmul %181, %182, %cst_170 {dimension_numbers = #tpu.dot_dimension_numbers<[1], [0], [0], [1], [0, 0, 1, 1], [], []>} : vector<16x32xf32>, vector<32x196xf32>, vector<16x196xf32> -> vector<16x196xf32>
    %184 = arith.addf %179, %183 : vector<16x196xf32>
    %c29_171 = arith.constant 29 : index
    %c0_172 = arith.constant 0 : index
    %c0_173 = arith.constant 0 : index
    %185 = vector.load %arg5[%c29_171, %c0_172, %c0_173] : memref<49x16x32xf32, #tpu.memory_space<vmem>>, vector<1x16x32xf32>
    %186 = vector.shape_cast %185 : vector<1x16x32xf32> to vector<16x32xf32>
    %c0_174 = arith.constant 0 : index
    %c57 = arith.constant 57 : index
    %187 = vector.load %arg10[%c0_174, %c57] : memref<32x384xf32, #tpu.memory_space<vmem>>, vector<32x196xf32>
    %cst_175 = arith.constant dense<0.000000e+00> : vector<16x196xf32>
    %188 = tpu.matmul %186, %187, %cst_175 {dimension_numbers = #tpu.dot_dimension_numbers<[1], [0], [0], [1], [0, 0, 1, 1], [], []>} : vector<16x32xf32>, vector<32x196xf32>, vector<16x196xf32> -> vector<16x196xf32>
    %189 = arith.addf %184, %188 : vector<16x196xf32>
    %c30_176 = arith.constant 30 : index
    %c0_177 = arith.constant 0 : index
    %c0_178 = arith.constant 0 : index
    %190 = vector.load %arg5[%c30_176, %c0_177, %c0_178] : memref<49x16x32xf32, #tpu.memory_space<vmem>>, vector<1x16x32xf32>
    %191 = vector.shape_cast %190 : vector<1x16x32xf32> to vector<16x32xf32>
    %c0_179 = arith.constant 0 : index
    %c58 = arith.constant 58 : index
    %192 = vector.load %arg10[%c0_179, %c58] : memref<32x384xf32, #tpu.memory_space<vmem>>, vector<32x196xf32>
    %cst_180 = arith.constant dense<0.000000e+00> : vector<16x196xf32>
    %193 = tpu.matmul %191, %192, %cst_180 {dimension_numbers = #tpu.dot_dimension_numbers<[1], [0], [0], [1], [0, 0, 1, 1], [], []>} : vector<16x32xf32>, vector<32x196xf32>, vector<16x196xf32> -> vector<16x196xf32>
    %194 = arith.addf %189, %193 : vector<16x196xf32>
    %c31_181 = arith.constant 31 : index
    %c0_182 = arith.constant 0 : index
    %c0_183 = arith.constant 0 : index
    %195 = vector.load %arg5[%c31_181, %c0_182, %c0_183] : memref<49x16x32xf32, #tpu.memory_space<vmem>>, vector<1x16x32xf32>
    %196 = vector.shape_cast %195 : vector<1x16x32xf32> to vector<16x32xf32>
    %c0_184 = arith.constant 0 : index
    %c59 = arith.constant 59 : index
    %197 = vector.load %arg10[%c0_184, %c59] : memref<32x384xf32, #tpu.memory_space<vmem>>, vector<32x196xf32>
    %cst_185 = arith.constant dense<0.000000e+00> : vector<16x196xf32>
    %198 = tpu.matmul %196, %197, %cst_185 {dimension_numbers = #tpu.dot_dimension_numbers<[1], [0], [0], [1], [0, 0, 1, 1], [], []>} : vector<16x32xf32>, vector<32x196xf32>, vector<16x196xf32> -> vector<16x196xf32>
    %199 = arith.addf %194, %198 : vector<16x196xf32>
    %c32_186 = arith.constant 32 : index
    %c0_187 = arith.constant 0 : index
    %c0_188 = arith.constant 0 : index
    %200 = vector.load %arg5[%c32_186, %c0_187, %c0_188] : memref<49x16x32xf32, #tpu.memory_space<vmem>>, vector<1x16x32xf32>
    %201 = vector.shape_cast %200 : vector<1x16x32xf32> to vector<16x32xf32>
    %c0_189 = arith.constant 0 : index
    %c60 = arith.constant 60 : index
    %202 = vector.load %arg10[%c0_189, %c60] : memref<32x384xf32, #tpu.memory_space<vmem>>, vector<32x196xf32>
    %cst_190 = arith.constant dense<0.000000e+00> : vector<16x196xf32>
    %203 = tpu.matmul %201, %202, %cst_190 {dimension_numbers = #tpu.dot_dimension_numbers<[1], [0], [0], [1], [0, 0, 1, 1], [], []>} : vector<16x32xf32>, vector<32x196xf32>, vector<16x196xf32> -> vector<16x196xf32>
    %204 = arith.addf %199, %203 : vector<16x196xf32>
    %c33_191 = arith.constant 33 : index
    %c0_192 = arith.constant 0 : index
    %c0_193 = arith.constant 0 : index
    %205 = vector.load %arg5[%c33_191, %c0_192, %c0_193] : memref<49x16x32xf32, #tpu.memory_space<vmem>>, vector<1x16x32xf32>
    %206 = vector.shape_cast %205 : vector<1x16x32xf32> to vector<16x32xf32>
    %c0_194 = arith.constant 0 : index
    %c61 = arith.constant 61 : index
    %207 = vector.load %arg10[%c0_194, %c61] : memref<32x384xf32, #tpu.memory_space<vmem>>, vector<32x196xf32>
    %cst_195 = arith.constant dense<0.000000e+00> : vector<16x196xf32>
    %208 = tpu.matmul %206, %207, %cst_195 {dimension_numbers = #tpu.dot_dimension_numbers<[1], [0], [0], [1], [0, 0, 1, 1], [], []>} : vector<16x32xf32>, vector<32x196xf32>, vector<16x196xf32> -> vector<16x196xf32>
    %209 = arith.addf %204, %208 : vector<16x196xf32>
    %c34_196 = arith.constant 34 : index
    %c0_197 = arith.constant 0 : index
    %c0_198 = arith.constant 0 : index
    %210 = vector.load %arg5[%c34_196, %c0_197, %c0_198] : memref<49x16x32xf32, #tpu.memory_space<vmem>>, vector<1x16x32xf32>
    %211 = vector.shape_cast %210 : vector<1x16x32xf32> to vector<16x32xf32>
    %c0_199 = arith.constant 0 : index
    %c62 = arith.constant 62 : index
    %212 = vector.load %arg10[%c0_199, %c62] : memref<32x384xf32, #tpu.memory_space<vmem>>, vector<32x196xf32>
    %cst_200 = arith.constant dense<0.000000e+00> : vector<16x196xf32>
    %213 = tpu.matmul %211, %212, %cst_200 {dimension_numbers = #tpu.dot_dimension_numbers<[1], [0], [0], [1], [0, 0, 1, 1], [], []>} : vector<16x32xf32>, vector<32x196xf32>, vector<16x196xf32> -> vector<16x196xf32>
    %214 = arith.addf %209, %213 : vector<16x196xf32>
    %c35 = arith.constant 35 : index
    %c0_201 = arith.constant 0 : index
    %c0_202 = arith.constant 0 : index
    %215 = vector.load %arg5[%c35, %c0_201, %c0_202] : memref<49x16x32xf32, #tpu.memory_space<vmem>>, vector<1x16x32xf32>
    %216 = vector.shape_cast %215 : vector<1x16x32xf32> to vector<16x32xf32>
    %c0_203 = arith.constant 0 : index
    %c70 = arith.constant 70 : index
    %217 = vector.load %arg10[%c0_203, %c70] : memref<32x384xf32, #tpu.memory_space<vmem>>, vector<32x196xf32>
    %cst_204 = arith.constant dense<0.000000e+00> : vector<16x196xf32>
    %218 = tpu.matmul %216, %217, %cst_204 {dimension_numbers = #tpu.dot_dimension_numbers<[1], [0], [0], [1], [0, 0, 1, 1], [], []>} : vector<16x32xf32>, vector<32x196xf32>, vector<16x196xf32> -> vector<16x196xf32>
    %219 = arith.addf %214, %218 : vector<16x196xf32>
    %c36 = arith.constant 36 : index
    %c0_205 = arith.constant 0 : index
    %c0_206 = arith.constant 0 : index
    %220 = vector.load %arg5[%c36, %c0_205, %c0_206] : memref<49x16x32xf32, #tpu.memory_space<vmem>>, vector<1x16x32xf32>
    %221 = vector.shape_cast %220 : vector<1x16x32xf32> to vector<16x32xf32>
    %c0_207 = arith.constant 0 : index
    %c71 = arith.constant 71 : index
    %222 = vector.load %arg10[%c0_207, %c71] : memref<32x384xf32, #tpu.memory_space<vmem>>, vector<32x196xf32>
    %cst_208 = arith.constant dense<0.000000e+00> : vector<16x196xf32>
    %223 = tpu.matmul %221, %222, %cst_208 {dimension_numbers = #tpu.dot_dimension_numbers<[1], [0], [0], [1], [0, 0, 1, 1], [], []>} : vector<16x32xf32>, vector<32x196xf32>, vector<16x196xf32> -> vector<16x196xf32>
    %224 = arith.addf %219, %223 : vector<16x196xf32>
    %c37 = arith.constant 37 : index
    %c0_209 = arith.constant 0 : index
    %c0_210 = arith.constant 0 : index
    %225 = vector.load %arg5[%c37, %c0_209, %c0_210] : memref<49x16x32xf32, #tpu.memory_space<vmem>>, vector<1x16x32xf32>
    %226 = vector.shape_cast %225 : vector<1x16x32xf32> to vector<16x32xf32>
    %c0_211 = arith.constant 0 : index
    %c72 = arith.constant 72 : index
    %227 = vector.load %arg10[%c0_211, %c72] : memref<32x384xf32, #tpu.memory_space<vmem>>, vector<32x196xf32>
    %cst_212 = arith.constant dense<0.000000e+00> : vector<16x196xf32>
    %228 = tpu.matmul %226, %227, %cst_212 {dimension_numbers = #tpu.dot_dimension_numbers<[1], [0], [0], [1], [0, 0, 1, 1], [], []>} : vector<16x32xf32>, vector<32x196xf32>, vector<16x196xf32> -> vector<16x196xf32>
    %229 = arith.addf %224, %228 : vector<16x196xf32>
    %c38 = arith.constant 38 : index
    %c0_213 = arith.constant 0 : index
    %c0_214 = arith.constant 0 : index
    %230 = vector.load %arg5[%c38, %c0_213, %c0_214] : memref<49x16x32xf32, #tpu.memory_space<vmem>>, vector<1x16x32xf32>
    %231 = vector.shape_cast %230 : vector<1x16x32xf32> to vector<16x32xf32>
    %c0_215 = arith.constant 0 : index
    %c73 = arith.constant 73 : index
    %232 = vector.load %arg10[%c0_215, %c73] : memref<32x384xf32, #tpu.memory_space<vmem>>, vector<32x196xf32>
    %cst_216 = arith.constant dense<0.000000e+00> : vector<16x196xf32>
    %233 = tpu.matmul %231, %232, %cst_216 {dimension_numbers = #tpu.dot_dimension_numbers<[1], [0], [0], [1], [0, 0, 1, 1], [], []>} : vector<16x32xf32>, vector<32x196xf32>, vector<16x196xf32> -> vector<16x196xf32>
    %234 = arith.addf %229, %233 : vector<16x196xf32>
    %c39 = arith.constant 39 : index
    %c0_217 = arith.constant 0 : index
    %c0_218 = arith.constant 0 : index
    %235 = vector.load %arg5[%c39, %c0_217, %c0_218] : memref<49x16x32xf32, #tpu.memory_space<vmem>>, vector<1x16x32xf32>
    %236 = vector.shape_cast %235 : vector<1x16x32xf32> to vector<16x32xf32>
    %c0_219 = arith.constant 0 : index
    %c74 = arith.constant 74 : index
    %237 = vector.load %arg10[%c0_219, %c74] : memref<32x384xf32, #tpu.memory_space<vmem>>, vector<32x196xf32>
    %cst_220 = arith.constant dense<0.000000e+00> : vector<16x196xf32>
    %238 = tpu.matmul %236, %237, %cst_220 {dimension_numbers = #tpu.dot_dimension_numbers<[1], [0], [0], [1], [0, 0, 1, 1], [], []>} : vector<16x32xf32>, vector<32x196xf32>, vector<16x196xf32> -> vector<16x196xf32>
    %239 = arith.addf %234, %238 : vector<16x196xf32>
    %c40 = arith.constant 40 : index
    %c0_221 = arith.constant 0 : index
    %c0_222 = arith.constant 0 : index
    %240 = vector.load %arg5[%c40, %c0_221, %c0_222] : memref<49x16x32xf32, #tpu.memory_space<vmem>>, vector<1x16x32xf32>
    %241 = vector.shape_cast %240 : vector<1x16x32xf32> to vector<16x32xf32>
    %c0_223 = arith.constant 0 : index
    %c75 = arith.constant 75 : index
    %242 = vector.load %arg10[%c0_223, %c75] : memref<32x384xf32, #tpu.memory_space<vmem>>, vector<32x196xf32>
    %cst_224 = arith.constant dense<0.000000e+00> : vector<16x196xf32>
    %243 = tpu.matmul %241, %242, %cst_224 {dimension_numbers = #tpu.dot_dimension_numbers<[1], [0], [0], [1], [0, 0, 1, 1], [], []>} : vector<16x32xf32>, vector<32x196xf32>, vector<16x196xf32> -> vector<16x196xf32>
    %244 = arith.addf %239, %243 : vector<16x196xf32>
    %c41 = arith.constant 41 : index
    %c0_225 = arith.constant 0 : index
    %c0_226 = arith.constant 0 : index
    %245 = vector.load %arg5[%c41, %c0_225, %c0_226] : memref<49x16x32xf32, #tpu.memory_space<vmem>>, vector<1x16x32xf32>
    %246 = vector.shape_cast %245 : vector<1x16x32xf32> to vector<16x32xf32>
    %c0_227 = arith.constant 0 : index
    %c76 = arith.constant 76 : index
    %247 = vector.load %arg10[%c0_227, %c76] : memref<32x384xf32, #tpu.memory_space<vmem>>, vector<32x196xf32>
    %cst_228 = arith.constant dense<0.000000e+00> : vector<16x196xf32>
    %248 = tpu.matmul %246, %247, %cst_228 {dimension_numbers = #tpu.dot_dimension_numbers<[1], [0], [0], [1], [0, 0, 1, 1], [], []>} : vector<16x32xf32>, vector<32x196xf32>, vector<16x196xf32> -> vector<16x196xf32>
    %249 = arith.addf %244, %248 : vector<16x196xf32>
    %c42_229 = arith.constant 42 : index
    %c0_230 = arith.constant 0 : index
    %c0_231 = arith.constant 0 : index
    %250 = vector.load %arg5[%c42_229, %c0_230, %c0_231] : memref<49x16x32xf32, #tpu.memory_space<vmem>>, vector<1x16x32xf32>
    %251 = vector.shape_cast %250 : vector<1x16x32xf32> to vector<16x32xf32>
    %c0_232 = arith.constant 0 : index
    %c84 = arith.constant 84 : index
    %252 = vector.load %arg10[%c0_232, %c84] : memref<32x384xf32, #tpu.memory_space<vmem>>, vector<32x196xf32>
    %cst_233 = arith.constant dense<0.000000e+00> : vector<16x196xf32>
    %253 = tpu.matmul %251, %252, %cst_233 {dimension_numbers = #tpu.dot_dimension_numbers<[1], [0], [0], [1], [0, 0, 1, 1], [], []>} : vector<16x32xf32>, vector<32x196xf32>, vector<16x196xf32> -> vector<16x196xf32>
    %254 = arith.addf %249, %253 : vector<16x196xf32>
    %c43_234 = arith.constant 43 : index
    %c0_235 = arith.constant 0 : index
    %c0_236 = arith.constant 0 : index
    %255 = vector.load %arg5[%c43_234, %c0_235, %c0_236] : memref<49x16x32xf32, #tpu.memory_space<vmem>>, vector<1x16x32xf32>
    %256 = vector.shape_cast %255 : vector<1x16x32xf32> to vector<16x32xf32>
    %c0_237 = arith.constant 0 : index
    %c85 = arith.constant 85 : index
    %257 = vector.load %arg10[%c0_237, %c85] : memref<32x384xf32, #tpu.memory_space<vmem>>, vector<32x196xf32>
    %cst_238 = arith.constant dense<0.000000e+00> : vector<16x196xf32>
    %258 = tpu.matmul %256, %257, %cst_238 {dimension_numbers = #tpu.dot_dimension_numbers<[1], [0], [0], [1], [0, 0, 1, 1], [], []>} : vector<16x32xf32>, vector<32x196xf32>, vector<16x196xf32> -> vector<16x196xf32>
    %259 = arith.addf %254, %258 : vector<16x196xf32>
    %c44_239 = arith.constant 44 : index
    %c0_240 = arith.constant 0 : index
    %c0_241 = arith.constant 0 : index
    %260 = vector.load %arg5[%c44_239, %c0_240, %c0_241] : memref<49x16x32xf32, #tpu.memory_space<vmem>>, vector<1x16x32xf32>
    %261 = vector.shape_cast %260 : vector<1x16x32xf32> to vector<16x32xf32>
    %c0_242 = arith.constant 0 : index
    %c86 = arith.constant 86 : index
    %262 = vector.load %arg10[%c0_242, %c86] : memref<32x384xf32, #tpu.memory_space<vmem>>, vector<32x196xf32>
    %cst_243 = arith.constant dense<0.000000e+00> : vector<16x196xf32>
    %263 = tpu.matmul %261, %262, %cst_243 {dimension_numbers = #tpu.dot_dimension_numbers<[1], [0], [0], [1], [0, 0, 1, 1], [], []>} : vector<16x32xf32>, vector<32x196xf32>, vector<16x196xf32> -> vector<16x196xf32>
    %264 = arith.addf %259, %263 : vector<16x196xf32>
    %c45_244 = arith.constant 45 : index
    %c0_245 = arith.constant 0 : index
    %c0_246 = arith.constant 0 : index
    %265 = vector.load %arg5[%c45_244, %c0_245, %c0_246] : memref<49x16x32xf32, #tpu.memory_space<vmem>>, vector<1x16x32xf32>
    %266 = vector.shape_cast %265 : vector<1x16x32xf32> to vector<16x32xf32>
    %c0_247 = arith.constant 0 : index
    %c87 = arith.constant 87 : index
    %267 = vector.load %arg10[%c0_247, %c87] : memref<32x384xf32, #tpu.memory_space<vmem>>, vector<32x196xf32>
    %cst_248 = arith.constant dense<0.000000e+00> : vector<16x196xf32>
    %268 = tpu.matmul %266, %267, %cst_248 {dimension_numbers = #tpu.dot_dimension_numbers<[1], [0], [0], [1], [0, 0, 1, 1], [], []>} : vector<16x32xf32>, vector<32x196xf32>, vector<16x196xf32> -> vector<16x196xf32>
    %269 = arith.addf %264, %268 : vector<16x196xf32>
    %c46_249 = arith.constant 46 : index
    %c0_250 = arith.constant 0 : index
    %c0_251 = arith.constant 0 : index
    %270 = vector.load %arg5[%c46_249, %c0_250, %c0_251] : memref<49x16x32xf32, #tpu.memory_space<vmem>>, vector<1x16x32xf32>
    %271 = vector.shape_cast %270 : vector<1x16x32xf32> to vector<16x32xf32>
    %c0_252 = arith.constant 0 : index
    %c88 = arith.constant 88 : index
    %272 = vector.load %arg10[%c0_252, %c88] : memref<32x384xf32, #tpu.memory_space<vmem>>, vector<32x196xf32>
    %cst_253 = arith.constant dense<0.000000e+00> : vector<16x196xf32>
    %273 = tpu.matmul %271, %272, %cst_253 {dimension_numbers = #tpu.dot_dimension_numbers<[1], [0], [0], [1], [0, 0, 1, 1], [], []>} : vector<16x32xf32>, vector<32x196xf32>, vector<16x196xf32> -> vector<16x196xf32>
    %274 = arith.addf %269, %273 : vector<16x196xf32>
    %c47_254 = arith.constant 47 : index
    %c0_255 = arith.constant 0 : index
    %c0_256 = arith.constant 0 : index
    %275 = vector.load %arg5[%c47_254, %c0_255, %c0_256] : memref<49x16x32xf32, #tpu.memory_space<vmem>>, vector<1x16x32xf32>
    %276 = vector.shape_cast %275 : vector<1x16x32xf32> to vector<16x32xf32>
    %c0_257 = arith.constant 0 : index
    %c89 = arith.constant 89 : index
    %277 = vector.load %arg10[%c0_257, %c89] : memref<32x384xf32, #tpu.memory_space<vmem>>, vector<32x196xf32>
    %cst_258 = arith.constant dense<0.000000e+00> : vector<16x196xf32>
    %278 = tpu.matmul %276, %277, %cst_258 {dimension_numbers = #tpu.dot_dimension_numbers<[1], [0], [0], [1], [0, 0, 1, 1], [], []>} : vector<16x32xf32>, vector<32x196xf32>, vector<16x196xf32> -> vector<16x196xf32>
    %279 = arith.addf %274, %278 : vector<16x196xf32>
    %c48_259 = arith.constant 48 : index
    %c0_260 = arith.constant 0 : index
    %c0_261 = arith.constant 0 : index
    %280 = vector.load %arg5[%c48_259, %c0_260, %c0_261] : memref<49x16x32xf32, #tpu.memory_space<vmem>>, vector<1x16x32xf32>
    %281 = vector.shape_cast %280 : vector<1x16x32xf32> to vector<16x32xf32>
    %c0_262 = arith.constant 0 : index
    %c90 = arith.constant 90 : index
    %282 = vector.load %arg10[%c0_262, %c90] : memref<32x384xf32, #tpu.memory_space<vmem>>, vector<32x196xf32>
    %cst_263 = arith.constant dense<0.000000e+00> : vector<16x196xf32>
    %283 = tpu.matmul %281, %282, %cst_263 {dimension_numbers = #tpu.dot_dimension_numbers<[1], [0], [0], [1], [0, 0, 1, 1], [], []>} : vector<16x32xf32>, vector<32x196xf32>, vector<16x196xf32> -> vector<16x196xf32>
    %284 = arith.addf %279, %283 : vector<16x196xf32>
    %c0_264 = arith.constant 0 : index
    %c0_265 = arith.constant 0 : index
    %285 = vector.load %arg6[%c0_264, %c0_265] : memref<16x1xf32, #tpu.memory_space<vmem>>, vector<16x1xf32>
    %286 = vector.broadcast %285 : vector<16x1xf32> to vector<16x196xf32>
    %287 = arith.addf %284, %286 : vector<16x196xf32>
    %cst_266 = arith.constant 0.000000e+00 : f32
    %288 = vector.broadcast %cst_266 : f32 to vector<16x196xf32>
    %289 = arith.cmpf ogt, %287, %288 : vector<16x196xf32>
    %cst_267 = arith.constant 0.00999999977 : f32
    %290 = vector.broadcast %cst_267 : f32 to vector<16x196xf32>
    %291 = arith.mulf %290, %287 : vector<16x196xf32>
    %292 = arith.select %289, %287, %291 : vector<16x196xi1>, vector<16x196xf32>
    %cst_268 = arith.constant 0.000000e+00 : f32
    %293 = vector.broadcast %cst_268 : f32 to vector<16x384xf32>
    %c0_269 = arith.constant 0 : index
    %c0_270 = arith.constant 0 : index
    %294 = vector.load %arg11[%c0_269, %c0_270] : memref<16x384xf32, #tpu.memory_space<vmem>>, vector<16x384xf32>
    tpu.vector_store %arg11[%c0_269, %c0_270], %293 {strides = array<i32>} : memref<16x384xf32, #tpu.memory_space<vmem>>, vector<16x384xf32>,
    %295 = vector.broadcast %0 : vector<1x196xf32> to vector<16x196xf32>
    %296 = arith.mulf %292, %295 : vector<16x196xf32>
    %c0_271 = arith.constant 0 : index
    %c45_272 = arith.constant 45 : index
    %297 = vector.load %arg11[%c0_271, %c45_272] : memref<16x384xf32, #tpu.memory_space<vmem>>, vector<16x196xf32>
    tpu.vector_store %arg11[%c0_271, %c45_272], %296 {strides = array<i32>} : memref<16x384xf32, #tpu.memory_space<vmem>>, vector<16x196xf32>,
    %cst_273 = arith.constant 0.000000e+00 : f32
    %298 = vector.broadcast %cst_273 : f32 to vector<8x196xf32>
    %c0_274 = arith.constant 0 : index
    %c0_275 = arith.constant 0 : index
    %c0_276 = arith.constant 0 : index
    %299 = vector.load %arg7[%c0_274, %c0_275, %c0_276] : memref<25x8x16xf32, #tpu.memory_space<vmem>>, vector<1x8x16xf32>
    %300 = vector.shape_cast %299 : vector<1x8x16xf32> to vector<8x16xf32>
    %c0_277 = arith.constant 0 : index
    %c15_278 = arith.constant 15 : index
    %301 = vector.load %arg11[%c0_277, %c15_278] : memref<16x384xf32, #tpu.memory_space<vmem>>, vector<16x196xf32>
    %cst_279 = arith.constant dense<0.000000e+00> : vector<8x196xf32>
    %302 = tpu.matmul %300, %301, %cst_279 {dimension_numbers = #tpu.dot_dimension_numbers<[1], [0], [0], [1], [0, 0, 1, 1], [], []>} : vector<8x16xf32>, vector<16x196xf32>, vector<8x196xf32> -> vector<8x196xf32>
    %303 = arith.addf %298, %302 : vector<8x196xf32>
    %c1_280 = arith.constant 1 : index
    %c0_281 = arith.constant 0 : index
    %c0_282 = arith.constant 0 : index
    %304 = vector.load %arg7[%c1_280, %c0_281, %c0_282] : memref<25x8x16xf32, #tpu.memory_space<vmem>>, vector<1x8x16xf32>
    %305 = vector.shape_cast %304 : vector<1x8x16xf32> to vector<8x16xf32>
    %c0_283 = arith.constant 0 : index
    %c16_284 = arith.constant 16 : index
    %306 = vector.load %arg11[%c0_283, %c16_284] : memref<16x384xf32, #tpu.memory_space<vmem>>, vector<16x196xf32>
    %cst_285 = arith.constant dense<0.000000e+00> : vector<8x196xf32>
    %307 = tpu.matmul %305, %306, %cst_285 {dimension_numbers = #tpu.dot_dimension_numbers<[1], [0], [0], [1], [0, 0, 1, 1], [], []>} : vector<8x16xf32>, vector<16x196xf32>, vector<8x196xf32> -> vector<8x196xf32>
    %308 = arith.addf %303, %307 : vector<8x196xf32>
    %c2_286 = arith.constant 2 : index
    %c0_287 = arith.constant 0 : index
    %c0_288 = arith.constant 0 : index
    %309 = vector.load %arg7[%c2_286, %c0_287, %c0_288] : memref<25x8x16xf32, #tpu.memory_space<vmem>>, vector<1x8x16xf32>
    %310 = vector.shape_cast %309 : vector<1x8x16xf32> to vector<8x16xf32>
    %c0_289 = arith.constant 0 : index
    %c17_290 = arith.constant 17 : index
    %311 = vector.load %arg11[%c0_289, %c17_290] : memref<16x384xf32, #tpu.memory_space<vmem>>, vector<16x196xf32>
    %cst_291 = arith.constant dense<0.000000e+00> : vector<8x196xf32>
    %312 = tpu.matmul %310, %311, %cst_291 {dimension_numbers = #tpu.dot_dimension_numbers<[1], [0], [0], [1], [0, 0, 1, 1], [], []>} : vector<8x16xf32>, vector<16x196xf32>, vector<8x196xf32> -> vector<8x196xf32>
    %313 = arith.addf %308, %312 : vector<8x196xf32>
    %c3_292 = arith.constant 3 : index
    %c0_293 = arith.constant 0 : index
    %c0_294 = arith.constant 0 : index
    %314 = vector.load %arg7[%c3_292, %c0_293, %c0_294] : memref<25x8x16xf32, #tpu.memory_space<vmem>>, vector<1x8x16xf32>
    %315 = vector.shape_cast %314 : vector<1x8x16xf32> to vector<8x16xf32>
    %c0_295 = arith.constant 0 : index
    %c18_296 = arith.constant 18 : index
    %316 = vector.load %arg11[%c0_295, %c18_296] : memref<16x384xf32, #tpu.memory_space<vmem>>, vector<16x196xf32>
    %cst_297 = arith.constant dense<0.000000e+00> : vector<8x196xf32>
    %317 = tpu.matmul %315, %316, %cst_297 {dimension_numbers = #tpu.dot_dimension_numbers<[1], [0], [0], [1], [0, 0, 1, 1], [], []>} : vector<8x16xf32>, vector<16x196xf32>, vector<8x196xf32> -> vector<8x196xf32>
    %318 = arith.addf %313, %317 : vector<8x196xf32>
    %c4_298 = arith.constant 4 : index
    %c0_299 = arith.constant 0 : index
    %c0_300 = arith.constant 0 : index
    %319 = vector.load %arg7[%c4_298, %c0_299, %c0_300] : memref<25x8x16xf32, #tpu.memory_space<vmem>>, vector<1x8x16xf32>
    %320 = vector.shape_cast %319 : vector<1x8x16xf32> to vector<8x16xf32>
    %c0_301 = arith.constant 0 : index
    %c19_302 = arith.constant 19 : index
    %321 = vector.load %arg11[%c0_301, %c19_302] : memref<16x384xf32, #tpu.memory_space<vmem>>, vector<16x196xf32>
    %cst_303 = arith.constant dense<0.000000e+00> : vector<8x196xf32>
    %322 = tpu.matmul %320, %321, %cst_303 {dimension_numbers = #tpu.dot_dimension_numbers<[1], [0], [0], [1], [0, 0, 1, 1], [], []>} : vector<8x16xf32>, vector<16x196xf32>, vector<8x196xf32> -> vector<8x196xf32>
    %323 = arith.addf %318, %322 : vector<8x196xf32>
    %c5_304 = arith.constant 5 : index
    %c0_305 = arith.constant 0 : index
    %c0_306 = arith.constant 0 : index
    %324 = vector.load %arg7[%c5_304, %c0_305, %c0_306] : memref<25x8x16xf32, #tpu.memory_space<vmem>>, vector<1x8x16xf32>
    %325 = vector.shape_cast %324 : vector<1x8x16xf32> to vector<8x16xf32>
    %c0_307 = arith.constant 0 : index
    %c29_308 = arith.constant 29 : index
    %326 = vector.load %arg11[%c0_307, %c29_308] : memref<16x384xf32, #tpu.memory_space<vmem>>, vector<16x196xf32>
    %cst_309 = arith.constant dense<0.000000e+00> : vector<8x196xf32>
    %327 = tpu.matmul %325, %326, %cst_309 {dimension_numbers = #tpu.dot_dimension_numbers<[1], [0], [0], [1], [0, 0, 1, 1], [], []>} : vector<8x16xf32>, vector<16x196xf32>, vector<8x196xf32> -> vector<8x196xf32>
    %328 = arith.addf %323, %327 : vector<8x196xf32>
    %c6_310 = arith.constant 6 : index
    %c0_311 = arith.constant 0 : index
    %c0_312 = arith.constant 0 : index
    %329 = vector.load %arg7[%c6_310, %c0_311, %c0_312] : memref<25x8x16xf32, #tpu.memory_space<vmem>>, vector<1x8x16xf32>
    %330 = vector.shape_cast %329 : vector<1x8x16xf32> to vector<8x16xf32>
    %c0_313 = arith.constant 0 : index
    %c30_314 = arith.constant 30 : index
    %331 = vector.load %arg11[%c0_313, %c30_314] : memref<16x384xf32, #tpu.memory_space<vmem>>, vector<16x196xf32>
    %cst_315 = arith.constant dense<0.000000e+00> : vector<8x196xf32>
    %332 = tpu.matmul %330, %331, %cst_315 {dimension_numbers = #tpu.dot_dimension_numbers<[1], [0], [0], [1], [0, 0, 1, 1], [], []>} : vector<8x16xf32>, vector<16x196xf32>, vector<8x196xf32> -> vector<8x196xf32>
    %333 = arith.addf %328, %332 : vector<8x196xf32>
    %c7_316 = arith.constant 7 : index
    %c0_317 = arith.constant 0 : index
    %c0_318 = arith.constant 0 : index
    %334 = vector.load %arg7[%c7_316, %c0_317, %c0_318] : memref<25x8x16xf32, #tpu.memory_space<vmem>>, vector<1x8x16xf32>
    %335 = vector.shape_cast %334 : vector<1x8x16xf32> to vector<8x16xf32>
    %c0_319 = arith.constant 0 : index
    %c31_320 = arith.constant 31 : index
    %336 = vector.load %arg11[%c0_319, %c31_320] : memref<16x384xf32, #tpu.memory_space<vmem>>, vector<16x196xf32>
    %cst_321 = arith.constant dense<0.000000e+00> : vector<8x196xf32>
    %337 = tpu.matmul %335, %336, %cst_321 {dimension_numbers = #tpu.dot_dimension_numbers<[1], [0], [0], [1], [0, 0, 1, 1], [], []>} : vector<8x16xf32>, vector<16x196xf32>, vector<8x196xf32> -> vector<8x196xf32>
    %338 = arith.addf %333, %337 : vector<8x196xf32>
    %c8_322 = arith.constant 8 : index
    %c0_323 = arith.constant 0 : index
    %c0_324 = arith.constant 0 : index
    %339 = vector.load %arg7[%c8_322, %c0_323, %c0_324] : memref<25x8x16xf32, #tpu.memory_space<vmem>>, vector<1x8x16xf32>
    %340 = vector.shape_cast %339 : vector<1x8x16xf32> to vector<8x16xf32>
    %c0_325 = arith.constant 0 : index
    %c32_326 = arith.constant 32 : index
    %341 = vector.load %arg11[%c0_325, %c32_326] : memref<16x384xf32, #tpu.memory_space<vmem>>, vector<16x196xf32>
    %cst_327 = arith.constant dense<0.000000e+00> : vector<8x196xf32>
    %342 = tpu.matmul %340, %341, %cst_327 {dimension_numbers = #tpu.dot_dimension_numbers<[1], [0], [0], [1], [0, 0, 1, 1], [], []>} : vector<8x16xf32>, vector<16x196xf32>, vector<8x196xf32> -> vector<8x196xf32>
    %343 = arith.addf %338, %342 : vector<8x196xf32>
    %c9_328 = arith.constant 9 : index
    %c0_329 = arith.constant 0 : index
    %c0_330 = arith.constant 0 : index
    %344 = vector.load %arg7[%c9_328, %c0_329, %c0_330] : memref<25x8x16xf32, #tpu.memory_space<vmem>>, vector<1x8x16xf32>
    %345 = vector.shape_cast %344 : vector<1x8x16xf32> to vector<8x16xf32>
    %c0_331 = arith.constant 0 : index
    %c33_332 = arith.constant 33 : index
    %346 = vector.load %arg11[%c0_331, %c33_332] : memref<16x384xf32, #tpu.memory_space<vmem>>, vector<16x196xf32>
    %cst_333 = arith.constant dense<0.000000e+00> : vector<8x196xf32>
    %347 = tpu.matmul %345, %346, %cst_333 {dimension_numbers = #tpu.dot_dimension_numbers<[1], [0], [0], [1], [0, 0, 1, 1], [], []>} : vector<8x16xf32>, vector<16x196xf32>, vector<8x196xf32> -> vector<8x196xf32>
    %348 = arith.addf %343, %347 : vector<8x196xf32>
    %c10_334 = arith.constant 10 : index
    %c0_335 = arith.constant 0 : index
    %c0_336 = arith.constant 0 : index
    %349 = vector.load %arg7[%c10_334, %c0_335, %c0_336] : memref<25x8x16xf32, #tpu.memory_space<vmem>>, vector<1x8x16xf32>
    %350 = vector.shape_cast %349 : vector<1x8x16xf32> to vector<8x16xf32>
    %c0_337 = arith.constant 0 : index
    %c43_338 = arith.constant 43 : index
    %351 = vector.load %arg11[%c0_337, %c43_338] : memref<16x384xf32, #tpu.memory_space<vmem>>, vector<16x196xf32>
    %cst_339 = arith.constant dense<0.000000e+00> : vector<8x196xf32>
    %352 = tpu.matmul %350, %351, %cst_339 {dimension_numbers = #tpu.dot_dimension_numbers<[1], [0], [0], [1], [0, 0, 1, 1], [], []>} : vector<8x16xf32>, vector<16x196xf32>, vector<8x196xf32> -> vector<8x196xf32>
    %353 = arith.addf %348, %352 : vector<8x196xf32>
    %c11_340 = arith.constant 11 : index
    %c0_341 = arith.constant 0 : index
    %c0_342 = arith.constant 0 : index
    %354 = vector.load %arg7[%c11_340, %c0_341, %c0_342] : memref<25x8x16xf32, #tpu.memory_space<vmem>>, vector<1x8x16xf32>
    %355 = vector.shape_cast %354 : vector<1x8x16xf32> to vector<8x16xf32>
    %c0_343 = arith.constant 0 : index
    %c44_344 = arith.constant 44 : index
    %356 = vector.load %arg11[%c0_343, %c44_344] : memref<16x384xf32, #tpu.memory_space<vmem>>, vector<16x196xf32>
    %cst_345 = arith.constant dense<0.000000e+00> : vector<8x196xf32>
    %357 = tpu.matmul %355, %356, %cst_345 {dimension_numbers = #tpu.dot_dimension_numbers<[1], [0], [0], [1], [0, 0, 1, 1], [], []>} : vector<8x16xf32>, vector<16x196xf32>, vector<8x196xf32> -> vector<8x196xf32>
    %358 = arith.addf %353, %357 : vector<8x196xf32>
    %c12_346 = arith.constant 12 : index
    %c0_347 = arith.constant 0 : index
    %c0_348 = arith.constant 0 : index
    %359 = vector.load %arg7[%c12_346, %c0_347, %c0_348] : memref<25x8x16xf32, #tpu.memory_space<vmem>>, vector<1x8x16xf32>
    %360 = vector.shape_cast %359 : vector<1x8x16xf32> to vector<8x16xf32>
    %c0_349 = arith.constant 0 : index
    %c45_350 = arith.constant 45 : index
    %361 = vector.load %arg11[%c0_349, %c45_350] : memref<16x384xf32, #tpu.memory_space<vmem>>, vector<16x196xf32>
    %cst_351 = arith.constant dense<0.000000e+00> : vector<8x196xf32>
    %362 = tpu.matmul %360, %361, %cst_351 {dimension_numbers = #tpu.dot_dimension_numbers<[1], [0], [0], [1], [0, 0, 1, 1], [], []>} : vector<8x16xf32>, vector<16x196xf32>, vector<8x196xf32> -> vector<8x196xf32>
    %363 = arith.addf %358, %362 : vector<8x196xf32>
    %c13_352 = arith.constant 13 : index
    %c0_353 = arith.constant 0 : index
    %c0_354 = arith.constant 0 : index
    %364 = vector.load %arg7[%c13_352, %c0_353, %c0_354] : memref<25x8x16xf32, #tpu.memory_space<vmem>>, vector<1x8x16xf32>
    %365 = vector.shape_cast %364 : vector<1x8x16xf32> to vector<8x16xf32>
    %c0_355 = arith.constant 0 : index
    %c46_356 = arith.constant 46 : index
    %366 = vector.load %arg11[%c0_355, %c46_356] : memref<16x384xf32, #tpu.memory_space<vmem>>, vector<16x196xf32>
    %cst_357 = arith.constant dense<0.000000e+00> : vector<8x196xf32>
    %367 = tpu.matmul %365, %366, %cst_357 {dimension_numbers = #tpu.dot_dimension_numbers<[1], [0], [0], [1], [0, 0, 1, 1], [], []>} : vector<8x16xf32>, vector<16x196xf32>, vector<8x196xf32> -> vector<8x196xf32>
    %368 = arith.addf %363, %367 : vector<8x196xf32>
    %c14_358 = arith.constant 14 : index
    %c0_359 = arith.constant 0 : index
    %c0_360 = arith.constant 0 : index
    %369 = vector.load %arg7[%c14_358, %c0_359, %c0_360] : memref<25x8x16xf32, #tpu.memory_space<vmem>>, vector<1x8x16xf32>
    %370 = vector.shape_cast %369 : vector<1x8x16xf32> to vector<8x16xf32>
    %c0_361 = arith.constant 0 : index
    %c47_362 = arith.constant 47 : index
    %371 = vector.load %arg11[%c0_361, %c47_362] : memref<16x384xf32, #tpu.memory_space<vmem>>, vector<16x196xf32>
    %cst_363 = arith.constant dense<0.000000e+00> : vector<8x196xf32>
    %372 = tpu.matmul %370, %371, %cst_363 {dimension_numbers = #tpu.dot_dimension_numbers<[1], [0], [0], [1], [0, 0, 1, 1], [], []>} : vector<8x16xf32>, vector<16x196xf32>, vector<8x196xf32> -> vector<8x196xf32>
    %373 = arith.addf %368, %372 : vector<8x196xf32>
    %c15_364 = arith.constant 15 : index
    %c0_365 = arith.constant 0 : index
    %c0_366 = arith.constant 0 : index
    %374 = vector.load %arg7[%c15_364, %c0_365, %c0_366] : memref<25x8x16xf32, #tpu.memory_space<vmem>>, vector<1x8x16xf32>
    %375 = vector.shape_cast %374 : vector<1x8x16xf32> to vector<8x16xf32>
    %c0_367 = arith.constant 0 : index
    %c57_368 = arith.constant 57 : index
    %376 = vector.load %arg11[%c0_367, %c57_368] : memref<16x384xf32, #tpu.memory_space<vmem>>, vector<16x196xf32>
    %cst_369 = arith.constant dense<0.000000e+00> : vector<8x196xf32>
    %377 = tpu.matmul %375, %376, %cst_369 {dimension_numbers = #tpu.dot_dimension_numbers<[1], [0], [0], [1], [0, 0, 1, 1], [], []>} : vector<8x16xf32>, vector<16x196xf32>, vector<8x196xf32> -> vector<8x196xf32>
    %378 = arith.addf %373, %377 : vector<8x196xf32>
    %c16_370 = arith.constant 16 : index
    %c0_371 = arith.constant 0 : index
    %c0_372 = arith.constant 0 : index
    %379 = vector.load %arg7[%c16_370, %c0_371, %c0_372] : memref<25x8x16xf32, #tpu.memory_space<vmem>>, vector<1x8x16xf32>
    %380 = vector.shape_cast %379 : vector<1x8x16xf32> to vector<8x16xf32>
    %c0_373 = arith.constant 0 : index
    %c58_374 = arith.constant 58 : index
    %381 = vector.load %arg11[%c0_373, %c58_374] : memref<16x384xf32, #tpu.memory_space<vmem>>, vector<16x196xf32>
    %cst_375 = arith.constant dense<0.000000e+00> : vector<8x196xf32>
    %382 = tpu.matmul %380, %381, %cst_375 {dimension_numbers = #tpu.dot_dimension_numbers<[1], [0], [0], [1], [0, 0, 1, 1], [], []>} : vector<8x16xf32>, vector<16x196xf32>, vector<8x196xf32> -> vector<8x196xf32>
    %383 = arith.addf %378, %382 : vector<8x196xf32>
    %c17_376 = arith.constant 17 : index
    %c0_377 = arith.constant 0 : index
    %c0_378 = arith.constant 0 : index
    %384 = vector.load %arg7[%c17_376, %c0_377, %c0_378] : memref<25x8x16xf32, #tpu.memory_space<vmem>>, vector<1x8x16xf32>
    %385 = vector.shape_cast %384 : vector<1x8x16xf32> to vector<8x16xf32>
    %c0_379 = arith.constant 0 : index
    %c59_380 = arith.constant 59 : index
    %386 = vector.load %arg11[%c0_379, %c59_380] : memref<16x384xf32, #tpu.memory_space<vmem>>, vector<16x196xf32>
    %cst_381 = arith.constant dense<0.000000e+00> : vector<8x196xf32>
    %387 = tpu.matmul %385, %386, %cst_381 {dimension_numbers = #tpu.dot_dimension_numbers<[1], [0], [0], [1], [0, 0, 1, 1], [], []>} : vector<8x16xf32>, vector<16x196xf32>, vector<8x196xf32> -> vector<8x196xf32>
    %388 = arith.addf %383, %387 : vector<8x196xf32>
    %c18_382 = arith.constant 18 : index
    %c0_383 = arith.constant 0 : index
    %c0_384 = arith.constant 0 : index
    %389 = vector.load %arg7[%c18_382, %c0_383, %c0_384] : memref<25x8x16xf32, #tpu.memory_space<vmem>>, vector<1x8x16xf32>
    %390 = vector.shape_cast %389 : vector<1x8x16xf32> to vector<8x16xf32>
    %c0_385 = arith.constant 0 : index
    %c60_386 = arith.constant 60 : index
    %391 = vector.load %arg11[%c0_385, %c60_386] : memref<16x384xf32, #tpu.memory_space<vmem>>, vector<16x196xf32>
    %cst_387 = arith.constant dense<0.000000e+00> : vector<8x196xf32>
    %392 = tpu.matmul %390, %391, %cst_387 {dimension_numbers = #tpu.dot_dimension_numbers<[1], [0], [0], [1], [0, 0, 1, 1], [], []>} : vector<8x16xf32>, vector<16x196xf32>, vector<8x196xf32> -> vector<8x196xf32>
    %393 = arith.addf %388, %392 : vector<8x196xf32>
    %c19_388 = arith.constant 19 : index
    %c0_389 = arith.constant 0 : index
    %c0_390 = arith.constant 0 : index
    %394 = vector.load %arg7[%c19_388, %c0_389, %c0_390] : memref<25x8x16xf32, #tpu.memory_space<vmem>>, vector<1x8x16xf32>
    %395 = vector.shape_cast %394 : vector<1x8x16xf32> to vector<8x16xf32>
    %c0_391 = arith.constant 0 : index
    %c61_392 = arith.constant 61 : index
    %396 = vector.load %arg11[%c0_391, %c61_392] : memref<16x384xf32, #tpu.memory_space<vmem>>, vector<16x196xf32>
    %cst_393 = arith.constant dense<0.000000e+00> : vector<8x196xf32>
    %397 = tpu.matmul %395, %396, %cst_393 {dimension_numbers = #tpu.dot_dimension_numbers<[1], [0], [0], [1], [0, 0, 1, 1], [], []>} : vector<8x16xf32>, vector<16x196xf32>, vector<8x196xf32> -> vector<8x196xf32>
    %398 = arith.addf %393, %397 : vector<8x196xf32>
    %c20_394 = arith.constant 20 : index
    %c0_395 = arith.constant 0 : index
    %c0_396 = arith.constant 0 : index
    %399 = vector.load %arg7[%c20_394, %c0_395, %c0_396] : memref<25x8x16xf32, #tpu.memory_space<vmem>>, vector<1x8x16xf32>
    %400 = vector.shape_cast %399 : vector<1x8x16xf32> to vector<8x16xf32>
    %c0_397 = arith.constant 0 : index
    %c71_398 = arith.constant 71 : index
    %401 = vector.load %arg11[%c0_397, %c71_398] : memref<16x384xf32, #tpu.memory_space<vmem>>, vector<16x196xf32>
    %cst_399 = arith.constant dense<0.000000e+00> : vector<8x196xf32>
    %402 = tpu.matmul %400, %401, %cst_399 {dimension_numbers = #tpu.dot_dimension_numbers<[1], [0], [0], [1], [0, 0, 1, 1], [], []>} : vector<8x16xf32>, vector<16x196xf32>, vector<8x196xf32> -> vector<8x196xf32>
    %403 = arith.addf %398, %402 : vector<8x196xf32>
    %c21_400 = arith.constant 21 : index
    %c0_401 = arith.constant 0 : index
    %c0_402 = arith.constant 0 : index
    %404 = vector.load %arg7[%c21_400, %c0_401, %c0_402] : memref<25x8x16xf32, #tpu.memory_space<vmem>>, vector<1x8x16xf32>
    %405 = vector.shape_cast %404 : vector<1x8x16xf32> to vector<8x16xf32>
    %c0_403 = arith.constant 0 : index
    %c72_404 = arith.constant 72 : index
    %406 = vector.load %arg11[%c0_403, %c72_404] : memref<16x384xf32, #tpu.memory_space<vmem>>, vector<16x196xf32>
    %cst_405 = arith.constant dense<0.000000e+00> : vector<8x196xf32>
    %407 = tpu.matmul %405, %406, %cst_405 {dimension_numbers = #tpu.dot_dimension_numbers<[1], [0], [0], [1], [0, 0, 1, 1], [], []>} : vector<8x16xf32>, vector<16x196xf32>, vector<8x196xf32> -> vector<8x196xf32>
    %408 = arith.addf %403, %407 : vector<8x196xf32>
    %c22_406 = arith.constant 22 : index
    %c0_407 = arith.constant 0 : index
    %c0_408 = arith.constant 0 : index
    %409 = vector.load %arg7[%c22_406, %c0_407, %c0_408] : memref<25x8x16xf32, #tpu.memory_space<vmem>>, vector<1x8x16xf32>
    %410 = vector.shape_cast %409 : vector<1x8x16xf32> to vector<8x16xf32>
    %c0_409 = arith.constant 0 : index
    %c73_410 = arith.constant 73 : index
    %411 = vector.load %arg11[%c0_409, %c73_410] : memref<16x384xf32, #tpu.memory_space<vmem>>, vector<16x196xf32>
    %cst_411 = arith.constant dense<0.000000e+00> : vector<8x196xf32>
    %412 = tpu.matmul %410, %411, %cst_411 {dimension_numbers = #tpu.dot_dimension_numbers<[1], [0], [0], [1], [0, 0, 1, 1], [], []>} : vector<8x16xf32>, vector<16x196xf32>, vector<8x196xf32> -> vector<8x196xf32>
    %413 = arith.addf %408, %412 : vector<8x196xf32>
    %c23_412 = arith.constant 23 : index
    %c0_413 = arith.constant 0 : index
    %c0_414 = arith.constant 0 : index
    %414 = vector.load %arg7[%c23_412, %c0_413, %c0_414] : memref<25x8x16xf32, #tpu.memory_space<vmem>>, vector<1x8x16xf32>
    %415 = vector.shape_cast %414 : vector<1x8x16xf32> to vector<8x16xf32>
    %c0_415 = arith.constant 0 : index
    %c74_416 = arith.constant 74 : index
    %416 = vector.load %arg11[%c0_415, %c74_416] : memref<16x384xf32, #tpu.memory_space<vmem>>, vector<16x196xf32>
    %cst_417 = arith.constant dense<0.000000e+00> : vector<8x196xf32>
    %417 = tpu.matmul %415, %416, %cst_417 {dimension_numbers = #tpu.dot_dimension_numbers<[1], [0], [0], [1], [0, 0, 1, 1], [], []>} : vector<8x16xf32>, vector<16x196xf32>, vector<8x196xf32> -> vector<8x196xf32>
    %418 = arith.addf %413, %417 : vector<8x196xf32>
    %c24_418 = arith.constant 24 : index
    %c0_419 = arith.constant 0 : index
    %c0_420 = arith.constant 0 : index
    %419 = vector.load %arg7[%c24_418, %c0_419, %c0_420] : memref<25x8x16xf32, #tpu.memory_space<vmem>>, vector<1x8x16xf32>
    %420 = vector.shape_cast %419 : vector<1x8x16xf32> to vector<8x16xf32>
    %c0_421 = arith.constant 0 : index
    %c75_422 = arith.constant 75 : index
    %421 = vector.load %arg11[%c0_421, %c75_422] : memref<16x384xf32, #tpu.memory_space<vmem>>, vector<16x196xf32>
    %cst_423 = arith.constant dense<0.000000e+00> : vector<8x196xf32>
    %422 = tpu.matmul %420, %421, %cst_423 {dimension_numbers = #tpu.dot_dimension_numbers<[1], [0], [0], [1], [0, 0, 1, 1], [], []>} : vector<8x16xf32>, vector<16x196xf32>, vector<8x196xf32> -> vector<8x196xf32>
    %423 = arith.addf %418, %422 : vector<8x196xf32>
    %c0_424 = arith.constant 0 : index
    %c0_425 = arith.constant 0 : index
    %424 = vector.load %arg8[%c0_424, %c0_425] : memref<8x1xf32, #tpu.memory_space<vmem>>, vector<8x1xf32>
    %425 = vector.broadcast %424 : vector<8x1xf32> to vector<8x196xf32>
    %426 = arith.addf %423, %425 : vector<8x196xf32>
    %427 = arith.negf %426 : vector<8x196xf32>
    %428 = math.exp %427 : vector<8x196xf32>
    %cst_426 = arith.constant 1.000000e+00 : f32
    %429 = vector.broadcast %cst_426 : f32 to vector<8x196xf32>
    %430 = arith.addf %429, %428 : vector<8x196xf32>
    %431 = arith.divf %429, %430 : vector<8x196xf32>
    %c0_427 = arith.constant 0 : index
    %c0_428 = arith.constant 0 : index
    %c0_429 = arith.constant 0 : index
    %432 = vector.load %arg9[%c0_427, %c0_428, %c0_429] : memref<1x8x196xf32, #tpu.memory_space<vmem>>, vector<1x8x196xf32>
    %433 = vector.shape_cast %432 : vector<1x8x196xf32> to vector<8x196xf32>
    %434 = vector.shape_cast %431 : vector<8x196xf32> to vector<1x8x196xf32>
    tpu.vector_store %arg9[%c0_427, %c0_428, %c0_429], %434 {strides = array<i32>} : memref<1x8x196xf32, #tpu.memory_space<vmem>>, vector<1x8x196xf32>,
    return
  }
  func.func @transform_0(%arg0: i32) -> (i32, i32, i32) {
    %c0_i32 = arith.constant 0 : i32
    %c0_i32_0 = arith.constant 0 : i32
    %c0_i32_1 = arith.constant 0 : i32
    return %arg0, %c0_i32, %c0_i32_0 : i32, i32, i32
  }
  func.func @transform_1(%arg0: i32) -> (i32, i32) {
    %c0_i32 = arith.constant 0 : i32
    %c0_i32_0 = arith.constant 0 : i32
    %c0_i32_1 = arith.constant 0 : i32
    return %c0_i32, %c0_i32_0 : i32, i32
  }
  func.func @transform_2(%arg0: i32) -> (i32, i32, i32) {
    %c0_i32 = arith.constant 0 : i32
    %c0_i32_0 = arith.constant 0 : i32
    %c0_i32_1 = arith.constant 0 : i32
    %c0_i32_2 = arith.constant 0 : i32
    return %c0_i32, %c0_i32_0, %c0_i32_1 : i32, i32, i32
  }
  func.func @transform_3(%arg0: i32) -> (i32, i32) {
    %c0_i32 = arith.constant 0 : i32
    %c0_i32_0 = arith.constant 0 : i32
    %c0_i32_1 = arith.constant 0 : i32
    return %c0_i32, %c0_i32_0 : i32, i32
  }
  func.func @transform_4(%arg0: i32) -> (i32, i32, i32) {
    %c0_i32 = arith.constant 0 : i32
    %c0_i32_0 = arith.constant 0 : i32
    %c0_i32_1 = arith.constant 0 : i32
    %c0_i32_2 = arith.constant 0 : i32
    return %c0_i32, %c0_i32_0, %c0_i32_1 : i32, i32, i32
  }
  func.func @transform_5(%arg0: i32) -> (i32, i32) {
    %c0_i32 = arith.constant 0 : i32
    %c0_i32_0 = arith.constant 0 : i32
    %c0_i32_1 = arith.constant 0 : i32
    return %c0_i32, %c0_i32_0 : i32, i32
  }
  func.func @transform_6(%arg0: i32) -> (i32, i32, i32) {
    %c0_i32 = arith.constant 0 : i32
    %c0_i32_0 = arith.constant 0 : i32
    %c0_i32_1 = arith.constant 0 : i32
    %c0_i32_2 = arith.constant 0 : i32
    return %c0_i32, %c0_i32_0, %c0_i32_1 : i32, i32, i32
  }
  func.func @transform_7(%arg0: i32) -> (i32, i32) {
    %c0_i32 = arith.constant 0 : i32
    %c0_i32_0 = arith.constant 0 : i32
    %c0_i32_1 = arith.constant 0 : i32
    return %c0_i32, %c0_i32_0 : i32, i32
  }
  func.func @transform_8(%arg0: i32) -> (i32, i32, i32) {
    %c0_i32 = arith.constant 0 : i32
    %c0_i32_0 = arith.constant 0 : i32
    %c0_i32_1 = arith.constant 0 : i32
    return %arg0, %c0_i32, %c0_i32_0 : i32, i32, i32
  }
}

</mosaic_0001>

<bundles_post_ra>
// kernel: patch_discriminator.1
= control target key start
LH: loop header
LB: loop body
LE: loop exit
PB: predicated region body
PF: predicated region fallthrough
CT: control target
= control target key end

     0   :  { %s12147_s27 = smov 0   ;;  %s15246_s0 = inlined_call_operand.vmem [shape: f32[2,12,384], index: 0, kind: input, shape index: {}]   ;;  %s15247_s1 = inlined_call_operand.vmem [shape: f32[1,196], index: 1, kind: input, shape index: {}]   ;;  %s15248_s2 = inlined_call_operand.vmem [shape: f32[4,32,12], index: 2, kind: input, shape index: {}]   ;;  %s15249_s3 = inlined_call_operand.vmem [shape: f32[32,1], index: 3, kind: input, shape index: {}]   ;;  %s15250_s4 = inlined_call_operand.vmem [shape: f32[49,16,32], index: 4, kind: input, shape index: {}]   ;;  %s15251_s5 = inlined_call_operand.vmem [shape: f32[16,1], index: 5, kind: input, shape index: {}]   ;;  %s15252_s6 = inlined_call_operand.vmem [shape: f32[25,8,16], index: 6, kind: input, shape index: {}]   ;;  %s15253_s7 = inlined_call_operand.vmem [shape: f32[8,1], index: 7, kind: input, shape index: {}]   ;;  %s15254_s8 = inlined_call_operand.vmem [shape: f32[2,8,196], index: 8, kind: output, shape index: {}]  }
   0x1   :  { %15479 = sst [smem:[#allocation90_spill]] %s15246_s0 }
   0x2   :  { %15480 = sst [smem:[#allocation91_spill]] %s15247_s1 }
   0x3   :  { %15481 = sst [smem:[#allocation92_spill]] %s15248_s2 }
   0x4   :  { %15482 = sst [smem:[#allocation93_spill]] %s15249_s3 }
   0x5   :  { %15483 = sst [smem:[#allocation94_spill]] %s15252_s6 }
   0x6   :  { %15484 = sst [smem:[#allocation95_spill]] %s15253_s7 }
   0x7   :  { %15485 = sst [smem:[#allocation96_spill]] %s15254_s8 }
   0x8 LB: > { %15486 = sst [smem:[#allocation4_spill]] %s12048_s27  ;;  %s9456_s28 = sadd.s32 4294967295, %s12048_s27   ;;  %s12048_s27 = sphi %s12147_s27, %s18_s27  }
   0x9   : > { %p9460_p0 = scmp.ge.s32.totalorder %s12048_s27, 1  ;;  %p262_p1 = scmp.lt.s32.totalorder %s12048_s27, 3 }
   0xb   : > { %p263_p2 = pnand %p9460_p0, %p262_p1 }
   0xd   : > { %266 = sbr.rel (%p263_p2) target bundleno = 2040 (0x7f8), region = 52 }
  0x14   : > { %p296_p3 = scmp.lt.s32.totalorder %s9456_s28, 1  ;;  %s15488_s0 = sld [smem:[#allocation90_spill]]  ;;  %v12050_v3 = vmov 0.0   ;;  %v12054_v11 = vmov 0   ;;  %vm350_vm0 = vcmask 1043456   ;;  %vm332_vm1 = vcmask 1039360  }
  0x15   : > { %419 = vmatprep.mubr.f32.mxu0 %v12050_v3  ;;  %867 = vst [vmem:[#allocation2] sm:$0xff] %v12050_v3  ;;  %868 = vst [vmem:[#allocation2 + $0x8] sm:$0xff] %v12050_v3  ;;  %2688 = vmatprep.mubr.f32.mxu1 %v12050_v3  ;;  %s15285_s11 = smov 127   ;;  %s15259_s12 = smov 114   ;;  %vm12055_vm2 = vmmov 1   ;;  %vm337_vm4 = vcmask 97280   ;;  %v880_v61 = vlaneseq }
  0x16   : > { %s15924_s28 = smov (!%p296_p3, %s9456_s28), 1  ;;  %869 = vst [vmem:[#allocation2 + $0x10] sm:$0xff] %v12050_v3  ;;  %870 = vst [vmem:[#allocation2 + $0x18] sm:$0xff] %v12050_v3  ;;  %s15257_s13 = smov 113   ;;  %10623 = vset.pattern.permute.xlu0 %v12054_v11  ;;  %10624 = vset.pattern.permute.xlu1 %v12054_v11  ;;  %vm15429_vm5 = vcmask 932864   ;;  %vm15428_vm6 = vcmask 924672  }
  0x17   : > { %15487 = sst [smem:[#allocation5_spill]] %s15924_s28  ;;  %s10532_s29 = smul.u32 48, %s15924_s28  ;;  %871 = vst [vmem:[#allocation2 + $0x20] sm:$0xff] %v12050_v3  ;;  %873 = vst [vmem:[#allocation2 + $0x30] sm:$0xff] %v12050_v3  ;;  %v881_v62 = vshrl.u32 %v880_v61, 7  ;;  %vm15419_vm15 = vcmask 1047912  }
  0x18   : > { %874 = vst [vmem:[#allocation2 + $0x38] sm:$0xff] %v12050_v3  ;;  %876 = vst [vmem:[#allocation2 + $0x48] sm:$0xff] %v12050_v3  ;;  %s15489_s3 = sld [smem:[#allocation93_spill]]  ;;  %s15492_s2 = sld [smem:[#allocation92_spill]] }
  0x19   : > { %877 = vst [vmem:[#allocation2 + $0x50] sm:$0xff] %v12050_v3  ;;  %6995 = vst [vmem:[#allocation3] sm:$0xff] %v12050_v3  ;;  %v882_v63 = vsub.s32 0, %v881_v62  ;;  %s15493_s1 = sld [smem:[#allocation91_spill]]  ;;  %s15255_s22 = smov 45  }
  0x1a   : > { %s300_s10 = scalar_lea.vmem %s15488_s0, %s10532_s29  ;;  %6996 = vst [vmem:[#allocation3 + $0x8] sm:$0xff] %v12050_v3  ;;  %6998 = vst [vmem:[#allocation3 + $0x18] sm:$0xff] %v12050_v3  ;;  %s12057_s23 = smov 100  }
  0x1b   : > { %v12161_v0 = vld [vmem:[%s300_s10] sm:$0xff]  ;;  %v12163_v1 = vld [vmem:[%s300_s10 + $0x8] sm:$0xff]  ;;  %v12165_v2 = vld [vmem:[%s300_s10 + $0x18] sm:$0xf]  ;;  %6999 = vst [vmem:[#allocation3 + $0x20] sm:$0xff] %v12050_v3  ;;  %s15286_s24 = smov 57  }
  0x1c   : > { %v10593_v4 = vpack.i.bf16 %v12163_v1, %v12161_v0  ;;  %v314_v5 = vld [vmem:[%s300_s10 + $0x20] sm:$0xf]  ;;  %v9757_v8 = vpack.c.bf16 %v12165_v2, %v12161_v0  ;;  %vm12206_vm3 = vmpackc.low %vm350_vm0, %vm12055_vm2  ;;  %vm15418_vm0 = vcmask 367616   ;;  %s15296_s25 = smov 99   ;;  %s15283_s26 = smov 56   ;;  %vm2605_vm2 = vcmask 818176  }
  0x1d   : > { %v10598_v6 = vpack.i.bf16 %v314_v5, %v12165_v2  ;;  %v9754_v7 = vpack.c.bf16 %v314_v5, %v12163_v1  ;;  %v886_v2 = vsub.s32 1, %v881_v62  ;;  %s15261_s29 = smov 98   ;;  %s15281_s30 = smov 55  }
  0x1e   : > { %10594 = vrot.lane.b32.xlu0 %v10593_v4, %s15285_s11  ;;  %10604 = vrot.lane.b32.xlu1 %v10593_v4, %s15259_s12  ;;  %v811_v9 = vld [vmem:[%s15489_s3] sm:$0xff]  ;;  %v812_v10 = vld [vmem:[%s15489_s3 + $0x8] sm:$0xff]  ;;  %s15263_s9 = smov 97   ;;  %s15370_s10 = smov 54  }
  0x1f   : > { %v814_v12 = vld [vmem:[%s15489_s3 + $0x18] sm:$0xff]  ;;  %v813_v13 = vld [vmem:[%s15489_s3 + $0x10] sm:$0xff]  ;;  %v9464_v29 = vld [vmem:[%s15492_s2 + $0x20] sm:$0xff]  ;;  %s15265_s14 = smov 96   ;;  %s15288_s15 = smov 58  }
  0x20   : > { %v9465_v31 = vld [vmem:[%s15492_s2 + $0x28] sm:$0xff]  ;;  %v9466_v32 = vld [vmem:[%s15492_s2 + $0x30] sm:$0xff]  ;;  %v9467_v37 = vld [vmem:[%s15492_s2 + $0x38] sm:$0xff]  ;;  %s15267_s16 = smov 95   ;;  %s15269_s17 = smov 94  }
  0x21   : > { %v307_v43 = vld [vmem:[%s15492_s2] sm:$0xff]  ;;  %v308_v45 = vld [vmem:[%s15492_s2 + $0x8] sm:$0xff]  ;;  %v309_v46 = vld [vmem:[%s15492_s2 + $0x10] sm:$0xff]  ;;  %s15271_s18 = smov 86   ;;  %s15273_s19 = smov 85  }
  0x22   : > { %10599 = vrot.lane.b32.xlu0 %v10598_v6, %s15285_s11  ;;  %10609 = vrot.lane.b32.xlu1 %v10598_v6, %s15259_s12  ;;  %v310_v49 = vld [vmem:[%s15492_s2 + $0x18] sm:$0xff]  ;;  %v9480_v53 = vld [vmem:[%s15492_s2 + $0x40] sm:$0xff]  ;;  %s15341_s20 = smov 84   ;;  %s15275_s21 = smov 83  }
  0x23   : > { %v9481_v54 = vld [vmem:[%s15492_s2 + $0x48] sm:$0xff]  ;;  %v9482_v55 = vld [vmem:[%s15492_s2 + $0x50] sm:$0xff]  ;;  %v9483_v56 = vld [vmem:[%s15492_s2 + $0x58] sm:$0xff]  ;;  %s15316_s12 = smov 80   ;;  %s15571_s0 = smov 43  }
  0x24   : > { %v9490_v57 = vld [vmem:[%s15492_s2 + $0x60] sm:$0xff]  ;;  %v9491_v58 = vld [vmem:[%s15492_s2 + $0x68] sm:$0xff]  ;;  %v9492_v59 = vld [vmem:[%s15492_s2 + $0x70] sm:$0xff]  ;;  %s15578_s3 = smov 42   ;;  %s15580_s27 = smov 66  }
  0x25   : > { %v9493_v60 = vld [vmem:[%s15492_s2 + $0x78] sm:$0xff]  ;;  %v306_v1 = vld [vmem:[%s15493_s1] sm:$0x3]  ;;  %s15377_s1 = smov 42   ;;  %s15574_s2 = smov 67  }
  0x26   : > { %10619 = vrot.lane.b32.xlu1 %v10598_v6, %s15257_s13  ;;  %10614 = vrot.lane.b32.xlu0 %v10593_v4, %s15257_s13  ;;  %v12317_v11 = vrot.slane %v306_v1, %v886_v2  ;;  %s15279_s13 = smov 81   ;;  %s15584_s8 = smov 127  }
  0x27   : > { %s15601_s28 = smov 124   ;;  %s15607_s6 = smov 123  }
  0x28   : > { %15495 = vst [vmem:[#allocation7_spill] sm:$0xff] %v12317_v11  ;;  %s15611_s7 = smov 40  }
  0x2a   : > { %817 = vperm.xlu0 %10623, %v811_v9   ;;  %822 = vperm.xlu1 %10624, %v812_v10   ;;  %v12315_v9 = vrot.slane %v306_v1, %v882_v63 }
  0x2c   : > { %15494 = vst [vmem:[#allocation6_spill] sm:$0xff] %v12315_v9 }
  0x2e   : > { %832 = vperm.xlu0 %10623, %v814_v12   ;;  %827 = vperm.xlu1 %10624, %v813_v13  }
  0x90   : > { %v10595_v14 = vpop.permute.xlu0 %10594  ;;  %v10605_v15 = vpop.permute.xlu1 %10604 }
  0x91   : > { %v10596_v16 = vunpack.i.l.bf16 %v10595_v14  ;;  %v10597_v17 = vunpack.i.h.bf16 %v10595_v14  ;;  %v10607_v23 = vunpack.i.h.bf16 %v10605_v15  ;;  %v10606_v33 = vunpack.i.l.bf16 %v10605_v15 }
  0x93   : > { %v333_v25 = vsel %vm332_vm1, %v10596_v16, %v10597_v17  ;;  %v563_v38 = vsel %vm15429_vm5, %v10606_v33, %v10607_v23 }
  0x94   : > { %v10600_v18 = vpop.permute.xlu0 %10599  ;;  %v10610_v19 = vpop.permute.xlu1 %10609 }
  0x95   : > { %v10601_v20 = vunpack.i.l.bf16 %v10600_v18  ;;  %v10602_v21 = vunpack.i.h.bf16 %v10600_v18  ;;  %v10612_v27 = vunpack.i.h.bf16 %v10610_v19  ;;  %v10611_v34 = vunpack.i.l.bf16 %v10610_v19 }
  0x97   : > { %v9748_v24 = vpack.c.bf16 %v10602_v21, %v10597_v17  ;;  %v334_v26 = vsel %vm332_vm1, %v10601_v20, %v10602_v21  ;;  %v9760_v30 = vpack.c.bf16 %v10612_v27, %v10607_v23  ;;  %v564_v39 = vsel %vm15429_vm5, %v10611_v34, %v10612_v27 }
  0x98   : > { %v9751_v28 = vpack.c.bf16 %v334_v26, %v333_v25  ;;  %v10620_v35 = vpop.permute.xlu1 %10619  ;;  %v10615_v36 = vpop.permute.xlu0 %10614  ;;  %v9763_v42 = vpack.c.bf16 %v564_v39, %v563_v38  ;;  %vm1417_vm5 = vcmask 1014784  }
  0x99   : > { %9750 = vmatprep.subr.msk.bf16.mxu0 %vm12206_vm3, %v9748_v24  ;;  %v10622_v40 = vunpack.i.h.bf16 %v10620_v35  ;;  %v10617_v41 = vunpack.i.h.bf16 %v10615_v36  ;;  %v10621_v47 = vunpack.i.l.bf16 %v10620_v35  ;;  %v10616_v48 = vunpack.i.l.bf16 %v10615_v36 }
  0x9a   : > { %9753 = vmatpush1.bf16.msk.msra.mxu0 %vm12206_vm3, %v9751_v28 }
  0x9b   : > { %9756 = vmatprep.subr.msk.bf16.mxu0 %vm12206_vm3, %v9754_v7  ;;  %v9766_v44 = vpack.c.bf16 %v10622_v40, %v10617_v41  ;;  %v695_v50 = vsel %vm15428_vm6, %v10621_v47, %v10622_v40  ;;  %v694_v51 = vsel %vm15428_vm6, %v10616_v48, %v10617_v41 }
  0x9c   : > { %v9769_v52 = vpack.c.bf16 %v695_v50, %v694_v51 }
  0x9d   : > { %9470 = vmatmul.mubr.msk.f32.vlgmr.msra.gmra.mrb[0].mxu0 %vm337_vm4, %v9464_v29 }
  0x9e   : > { %425 = vmatprep.mubr.f32.mxu0 %v12050_v3  ;;  %9759 = vmatpush1.bf16.msk.msra.mxu0 %vm12206_vm3, %v9757_v8 }
  0x9f   : > { %9762 = vmatprep.subr.msk.bf16.mxu0 %vm12206_vm3, %v9760_v30 }
  0xa1   : > { %9471 = vmatmul.mubr.msk.f32.gmra.mrb[2].mxu0 %vm337_vm4, %v9465_v31 }
  0xa2   : > { %431 = vmatprep.mubr.f32.mxu0 %v12050_v3 }
  0xa5   : > { %9472 = vmatmul.mubr.msk.f32.gmra.mrb[4].mxu0 %vm337_vm4, %v9466_v32 }
  0xa6   : > { %437 = vmatprep.mubr.f32.mxu0 %v12050_v3 }
  0xa9   : > { %9473 = vmatmul.mubr.msk.f32.gmra.mrb[6].mxu0 %vm337_vm4, %v9467_v37  ;;  %v818_v0 = vpop.permute.xlu0 %817  ;;  %v823_v5 = vpop.permute.xlu1 %822 }
  0xaa   : > { %524 = vmatprep.mubr.f32.mxu0 %v12050_v3 }
  0xad   : > { %9476 = vmatmul.mubr.msk.f32.vlgmr.msra.gmra.mrb[0].mxu0 %vm337_vm4, %v307_v43  ;;  %v828_v18 = vpop.permute.xlu1 %827  ;;  %v833_v33 = vpop.permute.xlu0 %832 }
  0xae   : > { %9765 = vmatpush1.bf16.msk.msra.mxu0 %vm12206_vm3, %v9763_v42  ;;  %530 = vmatprep.mubr.f32.mxu0 %v12050_v3 }
  0xaf   : > { %9768 = vmatprep.subr.msk.bf16.mxu0 %vm12206_vm3, %v9766_v44 }
  0xb1   : > { %9477 = vmatmul.mubr.msk.f32.gmra.mrb[2].mxu0 %vm337_vm4, %v308_v45 }
  0xb2   : > { %536 = vmatprep.mubr.f32.mxu0 %v12050_v3 }
  0xb5   : > { %9478 = vmatmul.mubr.msk.f32.gmra.mrb[4].mxu0 %vm337_vm4, %v309_v46 }
  0xb6   : > { %542 = vmatprep.mubr.f32.mxu0 %v12050_v3 }
  0xb9   : > { %9479 = vmatmul.mubr.msk.f32.gmra.mrb[6].mxu0 %vm337_vm4, %v310_v49 }
  0xba   : > { %647 = vmatprep.mubr.f32.mxu0 %v12050_v3 }
  0xbd   : > { %9486 = vmatmul.mubr.msk.f32.vlgmr.msra.gmra.mrb[0].mxu0 %vm337_vm4, %v9480_v53 }
  0xbe   : > { %653 = vmatprep.mubr.f32.mxu0 %v12050_v3  ;;  %9771 = vmatpush1.bf16.msk.msra.mxu0 %vm12206_vm3, %v9769_v52  ;;  %vm15415_vm3 = vcmask 809984  }
  0xc1   : > { %9487 = vmatmul.mubr.msk.f32.gmra.mrb[2].mxu0 %vm337_vm4, %v9481_v54 }
  0xc2   : > { %659 = vmatprep.mubr.f32.mxu0 %v12050_v3 }
  0xc5   : > { %9488 = vmatmul.mubr.msk.f32.gmra.mrb[4].mxu0 %vm337_vm4, %v9482_v55 }
  0xc6   : > { %665 = vmatprep.mubr.f32.mxu0 %v12050_v3 }
  0xc9   : > { %9489 = vmatmul.mubr.msk.f32.gmra.mrb[6].mxu0 %vm337_vm4, %v9483_v56 }
  0xca   : > { %778 = vmatprep.mubr.f32.mxu0 %v12050_v3 }
  0xcd   : > { %9496 = vmatmul.mubr.msk.f32.vlgmr.msra.gmra.mrb[0].mxu0 %vm337_vm4, %v9490_v57 }
  0xce   : > { %784 = vmatprep.mubr.f32.mxu0 %v12050_v3 }
  0xd1   : > { %9497 = vmatmul.mubr.msk.f32.gmra.mrb[2].mxu0 %vm337_vm4, %v9491_v58 }
  0xd2   : > { %790 = vmatprep.mubr.f32.mxu0 %v12050_v3 }
  0xd5   : > { %9498 = vmatmul.mubr.msk.f32.gmra.mrb[4].mxu0 %vm337_vm4, %v9492_v59 }
  0xd6   : > { %796 = vmatprep.mubr.f32.mxu0 %v12050_v3 }
  0xd9   : > { %9499 = vmatmul.mubr.msk.f32.gmra.mrb[6].mxu0 %vm337_vm4, %v9493_v60  ;;  %vm993_vm4 = vcmask 261120  }
  0xda   : > { %1064 = vmatprep.mubr.f32.mxu0 %v12050_v3 }
 0x1a0   : > { %v780_v4 = vpop.f32.mrb[0].mxu0 }
 0x1a1   : > { %v835_v6 = vadd.f32 %v818_v0, %v780_v4  ;;  %v782_v7 = vpop.f32.mrb[1].mxu0 }
 0x1a2   : > { %v836_v8 = vadd.f32 %v818_v0, %v782_v7 }
 0x1a3   : > { %vm843_vm7 = vcmp.gt.f32.partialorder %v835_v6, 0.0  ;;  %v851_v10 = vmul.f32 0.01, %v835_v6 }
 0x1a4   : > { %vm844_vm8 = vcmp.gt.f32.partialorder %v836_v8, 0.0  ;;  %v852_v12 = vmul.f32 0.01, %v836_v8  ;;  %v786_v13 = vpop.f32.mrb[2].mxu0 }
 0x1a5   : > { %v837_v14 = vadd.f32 %v823_v5, %v786_v13  ;;  %v788_v15 = vpop.f32.mrb[3].mxu0  ;;  %v859_v16 = vsel %vm843_vm7, %v835_v6, %v851_v10  ;;  %vm15408_vm7 = vcmask 801792  }
 0x1a6   : > { %v838_v17 = vadd.f32 %v823_v5, %v788_v15  ;;  %v890_v19 = vmul.f32 %v12315_v9, %v859_v16  ;;  %v860_v20 = vsel %vm844_vm8, %v836_v8, %v852_v12  ;;  %vm15405_vm8 = vcmask 793600  }
 0x1a7   : > { %vm845_vm9 = vcmp.gt.f32.partialorder %v837_v14, 0.0  ;;  %v853_v21 = vmul.f32 0.01, %v837_v14  ;;  %v891_v22 = vmul.f32 %v12317_v11, %v860_v20 }
 0x1a8   : > { %vm846_vm10 = vcmp.gt.f32.partialorder %v838_v17, 0.0  ;;  %v854_v23 = vmul.f32 0.01, %v838_v17  ;;  %906 = vrot.lane.b32.xlu1 %v890_v19, %s15255_s22  ;;  %v792_v24 = vpop.f32.mrb[4].mxu0 }
 0x1a9   : > { %v839_v25 = vadd.f32 %v828_v18, %v792_v24  ;;  %908 = vrot.lane.b32.xlu0 %v891_v22, %s15255_s22  ;;  %v794_v26 = vpop.f32.mrb[5].mxu0  ;;  %v861_v27 = vsel %vm845_vm9, %v837_v14, %v853_v21  ;;  %vm15403_vm9 = vcmask 785408  }
 0x1aa   : > { %v840_v28 = vadd.f32 %v828_v18, %v794_v26  ;;  %v892_v29 = vmul.f32 %v12315_v9, %v861_v27  ;;  %v862_v30 = vsel %vm846_vm10, %v838_v17, %v854_v23  ;;  %vm15395_vm10 = vcmask 777216  }
 0x1ab   : > { %vm847_vm11 = vcmp.gt.f32.partialorder %v839_v25, 0.0  ;;  %v855_v31 = vmul.f32 0.01, %v839_v25  ;;  %v893_v32 = vmul.f32 %v12317_v11, %v862_v30 }
 0x1ac   : > { %vm848_vm12 = vcmp.gt.f32.partialorder %v840_v28, 0.0  ;;  %v856_v34 = vmul.f32 0.01, %v840_v28  ;;  %910 = vrot.lane.b32.xlu1 %v892_v29, %s15255_s22  ;;  %v798_v35 = vpop.f32.mrb[6].mxu0 }
 0x1ad   : > { %v841_v36 = vadd.f32 %v833_v33, %v798_v35  ;;  %912 = vrot.lane.b32.xlu0 %v893_v32, %s15255_s22  ;;  %v800_v37 = vpop.f32.mrb[7].mxu0  ;;  %v863_v38 = vsel %vm847_vm11, %v839_v25, %v855_v31  ;;  %vm3319_vm11 = vcmask 769024  }
 0x1ae   : > { %v842_v39 = vadd.f32 %v833_v33, %v800_v37  ;;  %v894_v40 = vmul.f32 %v12315_v9, %v863_v38  ;;  %v864_v41 = vsel %vm848_vm12, %v840_v28, %v856_v34  ;;  %vm3438_vm12 = vcmask 703488  }
 0x1af   : > { %vm849_vm13 = vcmp.gt.f32.partialorder %v841_v36, 0.0  ;;  %v857_v42 = vmul.f32 0.01, %v841_v36  ;;  %v895_v43 = vmul.f32 %v12317_v11, %v864_v41 }
 0x1b0   : > { %vm850_vm14 = vcmp.gt.f32.partialorder %v842_v39, 0.0  ;;  %v858_v44 = vmul.f32 0.01, %v842_v39  ;;  %914 = vrot.lane.b32.xlu1 %v894_v40, %s15255_s22 }
 0x1b1   : > { %916 = vrot.lane.b32.xlu0 %v895_v43, %s15255_s22  ;;  %v865_v45 = vsel %vm849_vm13, %v841_v36, %v857_v42  ;;  %vm15394_vm13 = vcmask 695296  }
 0x1b2   : > { %v896_v46 = vmul.f32 %v12315_v9, %v865_v45  ;;  %v866_v47 = vsel %vm850_vm14, %v842_v39, %v858_v44  ;;  %vm15392_vm14 = vcmask 687104  }
 0x1b3   : > { %v897_v48 = vmul.f32 %v12317_v11, %v866_v47 }
 0x1b4   : > { %918 = vrot.lane.b32.xlu1 %v896_v46, %s15255_s22 }
 0x1b5   : > { %920 = vrot.lane.b32.xlu0 %v897_v48, %s15255_s22  ;;  %s15277_s22 = smov 82  }
 0x21a   : > { %v907_v49 = vpop.permute.xlu1 %906 }
 0x21b   : > { %936 = vst.msk [vmem:[#allocation2] sm:$0xff] %vm15419_vm15, %v907_v49  ;;  %v909_v50 = vpop.permute.xlu0 %908 }
 0x21c   : > { %v923_v51 = vsel %vm15418_vm0, %v907_v49, %v909_v50 }
 0x21d   : > { %937 = vst.msk [vmem:[#allocation2 + $0x8] sm:$0xff] %vm15428_vm6, %v923_v51 }
 0x21e   : > { %v911_v52 = vpop.permute.xlu1 %910 }
 0x21f   : > { %938 = vst.msk [vmem:[#allocation2 + $0x18] sm:$0xff] %vm15419_vm15, %v911_v52  ;;  %v913_v53 = vpop.permute.xlu0 %912 }
 0x220   : > { %v924_v54 = vsel %vm15418_vm0, %v911_v52, %v913_v53 }
 0x221   : > { %939 = vst.msk [vmem:[#allocation2 + $0x20] sm:$0xff] %vm15428_vm6, %v924_v54 }
 0x222   : > { %v915_v55 = vpop.permute.xlu1 %914  ;;  %v12342_v57 = vld [vmem:[#allocation2] sm:$0xff] }
 0x223   : > { %940 = vst.msk [vmem:[#allocation2 + $0x30] sm:$0xff] %vm15419_vm15, %v915_v55  ;;  %v917_v56 = vpop.permute.xlu0 %916  ;;  %15496 = vst [vmem:[#allocation8_spill] sm:$0xff] %v12342_v57 }
 0x224   : > { %v12344_v58 = vld [vmem:[#allocation2 + $0x8] sm:$0xff]  ;;  %v925_v59 = vsel %vm15418_vm0, %v915_v55, %v917_v56 }
 0x225   : > { %15497 = vst [vmem:[#allocation9_spill] sm:$0xff] %v12344_v58  ;;  %941 = vst.msk [vmem:[#allocation2 + $0x38] sm:$0xff] %vm15428_vm6, %v925_v59  ;;  %v12350_v60 = vpack.i.bf16 %v12344_v58, %v12342_v57  ;;  %v12371_v5 = vpack.i.bf16 %v12050_v3, %v12344_v58 }
 0x226   : > { %v12352_v61 = vld [vmem:[#allocation2 + $0x18] sm:$0xff]  ;;  %v919_v62 = vpop.permute.xlu1 %918 }
 0x227   : > { %15498 = vst [vmem:[#allocation10_spill] sm:$0xff] %v12352_v61  ;;  %942 = vst.msk [vmem:[#allocation2 + $0x48] sm:$0xff] %vm15419_vm15, %v919_v62  ;;  %10626 = vrot.lane.b32.xlu1 %v12350_v60, %s15285_s11  ;;  %10631 = vrot.lane.b32.xlu0 %v12350_v60, %s12057_s23  ;;  %v921_v63 = vpop.permute.xlu0 %920  ;;  %v12361_v0 = vpack.i.bf16 %v12352_v61, %v12342_v57  ;;  %vm5029_vm15 = vcmask 539648  }
 0x228   : > { %v12363_v1 = vld [vmem:[#allocation2 + $0x20] sm:$0xff]  ;;  %v926_v2 = vsel %vm15418_vm0, %v919_v62, %v921_v63  ;;  %vm15463_vm0 = vcmask 547840  }
 0x229   : > { %15499 = vst [vmem:[#allocation11_spill] sm:$0xff] %v12361_v0  ;;  %15500 = vst [vmem:[#allocation12_spill] sm:$0xff] %v12363_v1  ;;  %v12375_v6 = vpack.i.bf16 %v12363_v1, %v12352_v61  ;;  %v12513_v19 = vpack.i.bf16 %v12050_v3, %v12363_v1 }
 0x22a   : > { %943 = vst.msk [vmem:[#allocation2 + $0x50] sm:$0xff] %vm15428_vm6, %v926_v2  ;;  %v12383_v8 = vld [vmem:[#allocation2 + $0x30] sm:$0xff]  ;;  %vm1298_vm6 = vcmask 1022976  }
 0x22b   : > { %10741 = vrot.lane.b32.xlu1 %v12371_v5, %s15286_s24  ;;  %10636 = vrot.lane.b32.xlu0 %v12350_v60, %s15296_s25  ;;  %15501 = vst [vmem:[#allocation13_spill] sm:$0xff] %v12383_v8 }
 0x22c   : > { %v12385_v10 = vld [vmem:[#allocation2 + $0x38] sm:$0xff] }
 0x22d   : > { %15502 = vst [vmem:[#allocation14_spill] sm:$0xff] %v12385_v10  ;;  %v12389_v12 = vpack.i.bf16 %v12385_v10, %v12383_v8  ;;  %v12571_v34 = vpack.i.bf16 %v12050_v3, %v12385_v10 }
 0x22e   : > { %v12391_v13 = vld [vmem:[#allocation2 + $0x48] sm:$0xff] }
 0x22f   : > { %15503 = vst [vmem:[#allocation15_spill] sm:$0xff] %v12391_v13  ;;  %10751 = vrot.lane.b32.xlu1 %v12371_v5, %s15283_s26  ;;  %10641 = vrot.lane.b32.xlu0 %v12350_v60, %s15261_s29  ;;  %v12399_v14 = vpack.i.bf16 %v12391_v13, %v12383_v8 }
 0x231   : > { %v12401_v15 = vld [vmem:[#allocation2 + $0x50] sm:$0xff] }
 0x232   : > { %15504 = vst [vmem:[#allocation16_spill] sm:$0xff] %v12401_v15  ;;  %v12407_v17 = vpack.i.bf16 %v12401_v15, %v12391_v13 }
 0x233   : > { %10761 = vrot.lane.b32.xlu1 %v12371_v5, %s15281_s30  ;;  %10646 = vrot.lane.b32.xlu0 %v12350_v60, %s15263_s9 }
 0x237   : > { %10771 = vrot.lane.b32.xlu1 %v12371_v5, %s15370_s10  ;;  %10651 = vrot.lane.b32.xlu0 %v12350_v60, %s15265_s14 }
 0x23b   : > { %10786 = vrot.lane.b32.xlu1 %v12361_v0, %s15288_s15  ;;  %10656 = vrot.lane.b32.xlu0 %v12350_v60, %s15267_s16 }
 0x23f   : > { %10791 = vrot.lane.b32.xlu1 %v12361_v0, %s15286_s24  ;;  %10661 = vrot.lane.b32.xlu0 %v12350_v60, %s15269_s17 }
 0x243   : > { %10796 = vrot.lane.b32.xlu1 %v12361_v0, %s15283_s26  ;;  %10666 = vrot.lane.b32.xlu0 %v12350_v60, %s15271_s18 }
 0x247   : > { %10801 = vrot.lane.b32.xlu1 %v12361_v0, %s15281_s30  ;;  %10671 = vrot.lane.b32.xlu0 %v12350_v60, %s15273_s19 }
 0x24b   : > { %10811 = vrot.lane.b32.xlu1 %v12375_v6, %s12057_s23  ;;  %10676 = vrot.lane.b32.xlu0 %v12350_v60, %s15341_s20 }
 0x24f   : > { %10816 = vrot.lane.b32.xlu1 %v12375_v6, %s15296_s25  ;;  %10681 = vrot.lane.b32.xlu0 %v12350_v60, %s15275_s21 }
 0x253   : > { %10821 = vrot.lane.b32.xlu1 %v12375_v6, %s15261_s29  ;;  %10686 = vrot.lane.b32.xlu0 %v12350_v60, %s15277_s22  ;;  %s15313_s29 = smov 72  }
 0x257   : > { %10826 = vrot.lane.b32.xlu1 %v12375_v6, %s15263_s9  ;;  %10691 = vrot.lane.b32.xlu0 %v12350_v60, %s15279_s13  ;;  %s15309_s9 = smov 71  }
 0x25b   : > { %10831 = vrot.lane.b32.xlu1 %v12375_v6, %s15265_s14  ;;  %10696 = vrot.lane.b32.xlu0 %v12350_v60, %s15316_s12  ;;  %s15298_s14 = smov 70  }
 0x25f   : > { %10836 = vrot.lane.b32.xlu1 %v12375_v6, %s15267_s16  ;;  %10701 = vrot.lane.b32.xlu0 %v12350_v60, %s15313_s29  ;;  %s15302_s16 = smov 69  }
 0x263   : > { %10841 = vrot.lane.b32.xlu1 %v12375_v6, %s15269_s17  ;;  %10706 = vrot.lane.b32.xlu0 %v12350_v60, %s15309_s9  ;;  %s15307_s17 = smov 68  }
 0x267   : > { %10846 = vrot.lane.b32.xlu1 %v12375_v6, %s15271_s18  ;;  %10711 = vrot.lane.b32.xlu0 %v12350_v60, %s15298_s14  ;;  %s15293_s18 = smov 67  }
 0x26b   : > { %10851 = vrot.lane.b32.xlu1 %v12375_v6, %s15273_s19  ;;  %10716 = vrot.lane.b32.xlu0 %v12350_v60, %s15302_s16  ;;  %s15295_s19 = smov 66  }
 0x26f   : > { %10856 = vrot.lane.b32.xlu1 %v12375_v6, %s15341_s20  ;;  %10721 = vrot.lane.b32.xlu0 %v12350_v60, %s15307_s17 }
 0x273   : > { %10861 = vrot.lane.b32.xlu1 %v12375_v6, %s15275_s21  ;;  %10726 = vrot.lane.b32.xlu0 %v12371_v5, %s15293_s18  ;;  %s15290_s21 = smov 126  }
 0x277   : > { %10866 = vrot.lane.b32.xlu1 %v12375_v6, %s15277_s22  ;;  %10731 = vrot.lane.b32.xlu0 %v12371_v5, %s15295_s19  ;;  %s15291_s22 = smov 125  }
 0x27b   : > { %10871 = vrot.lane.b32.xlu1 %v12375_v6, %s15279_s13  ;;  %10736 = vrot.lane.b32.xlu0 %v12371_v5, %s15288_s15  ;;  %s15292_s13 = smov 124  }
 0x27f   : > { %10876 = vrot.lane.b32.xlu1 %v12375_v6, %s15316_s12  ;;  %10746 = vrot.lane.b32.xlu0 %v12350_v60, %s15290_s21 }
 0x283   : > { %10881 = vrot.lane.b32.xlu1 %v12375_v6, %s15313_s29  ;;  %10756 = vrot.lane.b32.xlu0 %v12350_v60, %s15291_s22 }
 0x287   : > { %10886 = vrot.lane.b32.xlu1 %v12375_v6, %s15309_s9  ;;  %10766 = vrot.lane.b32.xlu0 %v12350_v60, %s15292_s13 }
 0x28b   : > { %10891 = vrot.lane.b32.xlu1 %v12375_v6, %s15298_s14  ;;  %10776 = vrot.lane.b32.xlu0 %v12361_v0, %s15293_s18 }
 0x28f   : > { %10896 = vrot.lane.b32.xlu1 %v12375_v6, %s15302_s16  ;;  %10781 = vrot.lane.b32.xlu0 %v12361_v0, %s15295_s19 }
 0x293   : > { %10901 = vrot.lane.b32.xlu1 %v12375_v6, %s15307_s17  ;;  %10806 = vrot.lane.b32.xlu0 %v12375_v6, %s15285_s11 }
 0x297   : > { %10906 = vrot.lane.b32.xlu1 %v12513_v19, %s15293_s18  ;;  %10921 = vrot.lane.b32.xlu0 %v12513_v19, %s15286_s24  ;;  %s15514_s24 = smov 95  }
 0x299   : > { %v12519_v20 = vpop.permute.xlu1 %10626  ;;  %v10632_v21 = vpop.permute.xlu0 %10631 }
 0x29a   : > { %v10633_v38 = vunpack.i.l.bf16 %v10632_v21  ;;  %v10634_v39 = vunpack.i.h.bf16 %v10632_v21 }
 0x29b   : > { %10911 = vrot.lane.b32.xlu1 %v12513_v19, %s15295_s19  ;;  %10931 = vrot.lane.b32.xlu0 %v12513_v19, %s15283_s26  ;;  %s15510_s26 = smov 97  }
 0x29c   : > { %v2606_v45 = vsel %vm2605_vm2, %v10633_v38, %v10634_v39 }
 0x29d   : > { %v12525_v22 = vpop.permute.xlu1 %10741  ;;  %v12527_v23 = vpop.permute.xlu0 %10636 }
 0x29f   : > { %10916 = vrot.lane.b32.xlu1 %v12513_v19, %s15288_s15  ;;  %10941 = vrot.lane.b32.xlu0 %v12513_v19, %s15281_s30  ;;  %s15508_s30 = smov 98   ;;  %s15515_s15 = smov 94  }
 0x2a1   : > { %v12533_v24 = vpop.permute.xlu1 %10751  ;;  %v12535_v25 = vpop.permute.xlu0 %10641 }
 0x2a3   : > { %10926 = vrot.lane.b32.xlu1 %v12375_v6, %s15290_s21  ;;  %10951 = vrot.lane.b32.xlu0 %v12513_v19, %s15370_s10 }
 0x2a5   : > { %v12541_v26 = vpop.permute.xlu1 %10761  ;;  %v12543_v27 = vpop.permute.xlu0 %10646 }
 0x2a6   : > { %15505 = vst [vmem:[#allocation17_spill] sm:$0xff] %v12541_v26  ;;  %v10638_v26 = vunpack.i.l.bf16 %v12527_v23 }
 0x2a7   : > { %10936 = vrot.lane.b32.xlu1 %v12375_v6, %s15291_s22  ;;  %10961 = vrot.lane.b32.xlu0 %v12389_v12, %s12057_s23 }
 0x2a9   : > { %v12549_v28 = vpop.permute.xlu1 %10771  ;;  %v12551_v29 = vpop.permute.xlu0 %10651 }
 0x2aa   : > { %15506 = vst [vmem:[#allocation18_spill] sm:$0xff] %v12549_v28 }
 0x2ab   : > { %10946 = vrot.lane.b32.xlu1 %v12375_v6, %s15292_s13  ;;  %10966 = vrot.lane.b32.xlu0 %v12389_v12, %s15296_s25 }
 0x2ad   : > { %v12557_v30 = vpop.permute.xlu1 %10786  ;;  %v12559_v31 = vpop.permute.xlu0 %10656 }
 0x2ae   : > { %15507 = vst [vmem:[#allocation19_spill] sm:$0xff] %v12557_v30 }
 0x2af   : > { %10956 = vrot.lane.b32.xlu1 %v12389_v12, %s15285_s11  ;;  %10971 = vrot.lane.b32.xlu0 %v12389_v12, %s15508_s30  ;;  %s15512_s11 = smov 96  }
 0x2b1   : > { %v12565_v32 = vpop.permute.xlu1 %10791  ;;  %v12567_v33 = vpop.permute.xlu0 %10661 }
 0x2b2   : > { %15509 = vst [vmem:[#allocation20_spill] sm:$0xff] %v12565_v32 }
 0x2b3   : > { %11056 = vrot.lane.b32.xlu1 %v12571_v34, %s15293_s18  ;;  %10976 = vrot.lane.b32.xlu0 %v12389_v12, %s15510_s26 }
 0x2b5   : > { %v12577_v35 = vpop.permute.xlu1 %10796  ;;  %v12579_v36 = vpop.permute.xlu0 %10666 }
 0x2b6   : > { %15511 = vst [vmem:[#allocation21_spill] sm:$0xff] %v12577_v35 }
 0x2b7   : > { %11061 = vrot.lane.b32.xlu1 %v12571_v34, %s15295_s19  ;;  %10981 = vrot.lane.b32.xlu0 %v12389_v12, %s15512_s11 }
 0x2b9   : > { %v12585_v37 = vpop.permute.xlu1 %10801  ;;  %v12587_v3 = vpop.permute.xlu0 %10671 }
 0x2ba   : > { %15513 = vst [vmem:[#allocation22_spill] sm:$0xff] %v12585_v37 }
 0x2bb   : > { %11076 = vrot.lane.b32.xlu1 %v12389_v12, %s15290_s21  ;;  %10986 = vrot.lane.b32.xlu0 %v12389_v12, %s15514_s24  ;;  %s15516_s21 = smov 86  }
 0x2bd   : > { %v10812_v40 = vpop.permute.xlu1 %10811  ;;  %v12593_v41 = vpop.permute.xlu0 %10676 }
 0x2be   : > { %v10813_v42 = vunpack.i.l.bf16 %v10812_v40  ;;  %v10814_v43 = vunpack.i.h.bf16 %v10812_v40 }
 0x2bf   : > { %11086 = vrot.lane.b32.xlu1 %v12389_v12, %s15291_s22  ;;  %10991 = vrot.lane.b32.xlu0 %v12389_v12, %s15515_s15  ;;  %s15517_s22 = smov 85  }
 0x2c0   : > { %v9884_v44 = vpack.c.bf16 %v10814_v43, %v10634_v39  ;;  %v2607_v46 = vsel %vm2605_vm2, %v10813_v42, %v10814_v43 }
 0x2c1   : > { %v12601_v47 = vpop.permute.xlu1 %10816  ;;  %v12603_v48 = vpop.permute.xlu0 %10681  ;;  %v9886_v49 = vpack.c.bf16 %v2607_v46, %v2606_v45 }
 0x2c2   : > { %9885 = vmatprep.subr.bf16.mxu1 %v9884_v44  ;;  %v10819_v37 = vunpack.i.h.bf16 %v12601_v47 }
 0x2c3   : > { %11096 = vrot.lane.b32.xlu1 %v12389_v12, %s15292_s13  ;;  %10996 = vrot.lane.b32.xlu0 %v12389_v12, %s15516_s21  ;;  %s15518_s13 = smov 83  }
 0x2c4   : > { %9887 = vmatpush1.bf16.msra.mxu1 %v9886_v49 }
 0x2c5   : > { %v12609_v50 = vpop.permute.xlu1 %10821  ;;  %v12611_v51 = vpop.permute.xlu0 %10686 }
 0x2c7   : > { %11101 = vrot.lane.b32.xlu1 %v12399_v14, %s15293_s18  ;;  %11001 = vrot.lane.b32.xlu0 %v12389_v12, %s15517_s22  ;;  %s15520_s18 = smov 82  }
 0x2c9   : > { %v12617_v52 = vpop.permute.xlu1 %10826  ;;  %v12619_v53 = vpop.permute.xlu0 %10691 }
 0x2cb   : > { %11106 = vrot.lane.b32.xlu1 %v12399_v14, %s15295_s19  ;;  %11006 = vrot.lane.b32.xlu0 %v12389_v12, %s15341_s20  ;;  %s15522_s19 = smov 81  }
 0x2cd   : > { %v12625_v54 = vpop.permute.xlu1 %10831  ;;  %v12627_v55 = vpop.permute.xlu0 %10696 }
 0x2cf   : > { %11011 = vrot.lane.b32.xlu0 %v12389_v12, %s15518_s13  ;;  %11131 = vrot.lane.b32.xlu1 %v12407_v17, %s12057_s23  ;;  %s15366_s23 = smov 123  }
 0x2d1   : > { %v12633_v56 = vpop.permute.xlu1 %10836  ;;  %v12635_v59 = vpop.permute.xlu0 %10701 }
 0x2d2   : > { %15519 = vst [vmem:[#allocation23_spill] sm:$0xff] %v12635_v59  ;;  %v10639_v59 = vunpack.i.h.bf16 %v12527_v23  ;;  %v9554_v23 = vld [vmem:[%s15250_s4 + $0xe0] sm:$0xff] }
 0x2d3   : > { %11016 = vrot.lane.b32.xlu0 %v12389_v12, %s15520_s18  ;;  %11136 = vrot.lane.b32.xlu1 %v12361_v0, %s15370_s10 }
 0x2d5   : > { %v12641_v62 = vpop.permute.xlu1 %10841  ;;  %v12643_v63 = vpop.permute.xlu0 %10706 }
 0x2d6   : > { %15521 = vst [vmem:[#allocation24_spill] sm:$0xff] %v12643_v63 }
 0x2d7   : > { %11021 = vrot.lane.b32.xlu0 %v12389_v12, %s15522_s19  ;;  %11151 = vrot.lane.b32.xlu1 %v12407_v17, %s15296_s25  ;;  %s15364_s25 = smov 53  }
 0x2d9   : > { %v12649_v2 = vpop.permute.xlu1 %10846  ;;  %v12651_v21 = vpop.permute.xlu0 %10711 }
 0x2da   : > { %15523 = vst [vmem:[#allocation25_spill] sm:$0xff] %v12651_v21 }
 0x2db   : > { %11026 = vrot.lane.b32.xlu0 %v12389_v12, %s15316_s12  ;;  %11156 = vrot.lane.b32.xlu1 %v12375_v6, %s15366_s23  ;;  %s15356_s12 = smov 52  }
 0x2dd   : > { %v12657_v38 = vpop.permute.xlu1 %10851  ;;  %v12659_v39 = vpop.permute.xlu0 %10716 }
 0x2de   : > { %15524 = vst [vmem:[#allocation26_spill] sm:$0xff] %v12659_v39 }
 0x2df   : > { %11031 = vrot.lane.b32.xlu0 %v12389_v12, %s15313_s29  ;;  %11166 = vrot.lane.b32.xlu1 %v12407_v17, %s15508_s30  ;;  %s15539_s29 = smov 55  }
 0x2e1   : > { %v12665_v40 = vpop.permute.xlu1 %10856  ;;  %v12667_v42 = vpop.permute.xlu0 %10721 }
 0x2e2   : > { %15525 = vst [vmem:[#allocation27_spill] sm:$0xff] %v12667_v42 }
 0x2e3   : > { %11036 = vrot.lane.b32.xlu0 %v12389_v12, %s15309_s9  ;;  %11171 = vrot.lane.b32.xlu1 %v12371_v5, %s15364_s25  ;;  %s15536_s9 = smov 56  }
 0x2e5   : > { %v12673_v43 = vpop.permute.xlu1 %10861  ;;  %v12675_v44 = vpop.permute.xlu0 %10726 }
 0x2e6   : > { %15526 = vst [vmem:[#allocation28_spill] sm:$0xff] %v12675_v44 }
 0x2e7   : > { %11181 = vrot.lane.b32.xlu1 %v12407_v17, %s15510_s26  ;;  %11041 = vrot.lane.b32.xlu0 %v12389_v12, %s15298_s14  ;;  %s15530_s14 = smov 58  }
 0x2e9   : > { %v12681_v45 = vpop.permute.xlu1 %10866  ;;  %v12683_v46 = vpop.permute.xlu0 %10731 }
 0x2ea   : > { %15527 = vst [vmem:[#allocation29_spill] sm:$0xff] %v12683_v46 }
 0x2eb   : > { %11186 = vrot.lane.b32.xlu1 %v12389_v12, %s15366_s23  ;;  %11046 = vrot.lane.b32.xlu0 %v12389_v12, %s15302_s16  ;;  %s15533_s16 = smov 57  }
 0x2ed   : > { %v12689_v49 = vpop.permute.xlu1 %10871  ;;  %v12691_v16 = vpop.permute.xlu0 %10736 }
 0x2ee   : > { %15528 = vst [vmem:[#allocation30_spill] sm:$0xff] %v12691_v16 }
 0x2ef   : > { %11191 = vrot.lane.b32.xlu1 %v12407_v17, %s15512_s11  ;;  %11051 = vrot.lane.b32.xlu0 %v12389_v12, %s15307_s17  ;;  %s15344_s17 = smov 122  }
 0x2f1   : > { %v12697_v18 = vpop.permute.xlu1 %10876  ;;  %v12699_v4 = vpop.permute.xlu0 %10746 }
 0x2f2   : > { %15529 = vst [vmem:[#allocation31_spill] sm:$0xff] %v12699_v4 }
 0x2f3   : > { %11196 = vrot.lane.b32.xlu1 %v12361_v0, %s15364_s25  ;;  %11066 = vrot.lane.b32.xlu0 %v12571_v34, %s15530_s14 }
 0x2f5   : > { %v12705_v7 = vpop.permute.xlu1 %10881  ;;  %v12707_v11 = vpop.permute.xlu0 %10756 }
 0x2f6   : > { %15531 = vst [vmem:[#allocation32_spill] sm:$0xff] %v12705_v7  ;;  %15532 = vst [vmem:[#allocation33_spill] sm:$0xff] %v12707_v11 }
 0x2f7   : > { %11211 = vrot.lane.b32.xlu1 %v12407_v17, %s15514_s24  ;;  %11071 = vrot.lane.b32.xlu0 %v12571_v34, %s15533_s16 }
 0x2f9   : > { %v12713_v9 = vpop.permute.xlu1 %10886  ;;  %v12715_v8 = vpop.permute.xlu0 %10766 }
 0x2fa   : > { %15534 = vst [vmem:[#allocation34_spill] sm:$0xff] %v12713_v9  ;;  %15535 = vst [vmem:[#allocation35_spill] sm:$0xff] %v12715_v8  ;;  %v10629_v8 = vunpack.i.h.bf16 %v12519_v20 }
 0x2fb   : > { %11216 = vrot.lane.b32.xlu1 %v12375_v6, %s15344_s17  ;;  %11081 = vrot.lane.b32.xlu0 %v12571_v34, %s15536_s9 }
 0x2fd   : > { %v12721_v13 = vpop.permute.xlu1 %10891  ;;  %v12723_v57 = vpop.permute.xlu0 %10776 }
 0x2fe   : > { %15537 = vst [vmem:[#allocation36_spill] sm:$0xff] %v12721_v13  ;;  %15538 = vst [vmem:[#allocation37_spill] sm:$0xff] %v12723_v57  ;;  %v10628_v57 = vunpack.i.l.bf16 %v12519_v20 }
 0x2ff   : > { %11226 = vrot.lane.b32.xlu1 %v12407_v17, %s15515_s15  ;;  %11091 = vrot.lane.b32.xlu0 %v12571_v34, %s15539_s29  ;;  %s15552_s15 = smov 114  }
 0x301   : > { %v12729_v61 = vpop.permute.xlu1 %10896  ;;  %v12731_v58 = vpop.permute.xlu0 %10781 }
 0x302   : > { %15540 = vst [vmem:[#allocation38_spill] sm:$0xff] %v12729_v61  ;;  %15541 = vst [vmem:[#allocation39_spill] sm:$0xff] %v12731_v58  ;;  %v981_v58 = vsel %vm332_vm1, %v10628_v57, %v10629_v8 }
 0x303   : > { %11231 = vrot.lane.b32.xlu1 %v12371_v5, %s15356_s12  ;;  %11111 = vrot.lane.b32.xlu0 %v12399_v14, %s15530_s14 }
 0x305   : > { %v12739_v11 = vpop.permute.xlu1 %10901  ;;  %v10807_v4 = vpop.permute.xlu0 %10806 }
 0x306   : > { %15542 = vst [vmem:[#allocation40_spill] sm:$0xff] %v12739_v11  ;;  %v10809_v13 = vunpack.i.h.bf16 %v10807_v4  ;;  %v10808_v16 = vunpack.i.l.bf16 %v10807_v4 }
 0x307   : > { %11241 = vrot.lane.b32.xlu1 %v12407_v17, %s15516_s21  ;;  %11116 = vrot.lane.b32.xlu0 %v12399_v14, %s15533_s16  ;;  %s15367_s21 = smov 44  }
 0x308   : > { %v982_v61 = vsel %vm332_vm1, %v10808_v16, %v10809_v13  ;;  %v9772_v46 = vpack.c.bf16 %v10809_v13, %v10629_v8 }
 0x309   : > { %v12747_v44 = vpop.permute.xlu1 %10906  ;;  %v12749_v42 = vpop.permute.xlu0 %10921  ;;  %v9774_v20 = vpack.c.bf16 %v982_v61, %v981_v58 }
 0x30a   : > { %15543 = vst [vmem:[#allocation41_spill] sm:$0xff] %v12747_v44  ;;  %15544 = vst [vmem:[#allocation42_spill] sm:$0xff] %v12749_v42  ;;  %9773 = vmatprep.subr.bf16.mxu0 %v9772_v46  ;;  %v12853_v44 = vld [vmem:[#allocation2 + $0x10] sm:$0xff] }
 0x30b   : > { %11246 = vrot.lane.b32.xlu1 %v12389_v12, %s15344_s17  ;;  %11121 = vrot.lane.b32.xlu0 %v12399_v14, %s15536_s9  ;;  %v12857_v30 = vpack.i.bf16 %v12853_v44, %v12363_v1  ;;  %v10818_v1 = vunpack.i.l.bf16 %v12601_v47 }
 0x30c   : > { %9775 = vmatpush1.bf16.msra.mxu0 %v9774_v20 }
 0x30d   : > { %v12755_v4 = vpop.permute.xlu1 %10911  ;;  %v12757_v11 = vpop.permute.xlu0 %10931 }
 0x30e   : > { %15545 = vst [vmem:[#allocation43_spill] sm:$0xff] %v12755_v4  ;;  %15546 = vst [vmem:[#allocation44_spill] sm:$0xff] %v12757_v11 }
 0x30f   : > { %11251 = vrot.lane.b32.xlu1 %v12407_v17, %s15517_s22  ;;  %11126 = vrot.lane.b32.xlu0 %v12399_v14, %s15539_s29 }
 0x311   : > { %v12763_v57 = vpop.permute.xlu1 %10916  ;;  %v12765_v58 = vpop.permute.xlu0 %10941 }
 0x312   : > { %15547 = vst [vmem:[#allocation45_spill] sm:$0xff] %v12763_v57  ;;  %15548 = vst [vmem:[#allocation46_spill] sm:$0xff] %v12765_v58 }
 0x313   : > { %11256 = vrot.lane.b32.xlu1 %v12361_v0, %s15356_s12  ;;  %11141 = vrot.lane.b32.xlu0 %v12571_v34, %s15370_s10 }
 0x315   : > { %v12771_v61 = vpop.permute.xlu1 %10926  ;;  %v12773_v8 = vpop.permute.xlu0 %10951 }
 0x316   : > { %15549 = vst [vmem:[#allocation47_spill] sm:$0xff] %v12771_v61  ;;  %15550 = vst [vmem:[#allocation48_spill] sm:$0xff] %v12773_v8 }
 0x317   : > { %11271 = vrot.lane.b32.xlu1 %v12407_v17, %s15341_s20  ;;  %11146 = vrot.lane.b32.xlu0 %v12350_v60, %s15366_s23  ;;  %s15560_s20 = smov 80   ;;  %s15617_s23 = smov 52  }
 0x319   : > { %v12779_v13 = vpop.permute.xlu1 %10936  ;;  %v10962_v16 = vpop.permute.xlu0 %10961 }
 0x31a   : > { %15551 = vst [vmem:[#allocation49_spill] sm:$0xff] %v12779_v13  ;;  %v10963_v9 = vunpack.i.l.bf16 %v10962_v16 }
 0x31b   : > { %11276 = vrot.lane.b32.xlu1 %v12375_v6, %s15552_s15  ;;  %11161 = vrot.lane.b32.xlu0 %v12399_v14, %s15370_s10  ;;  %s15570_s10 = smov 69  }
 0x31d   : > { %v12785_v46 = vpop.permute.xlu1 %10946  ;;  %v12787_v20 = vpop.permute.xlu0 %10966 }
 0x31e   : > { %15553 = vst [vmem:[#allocation50_spill] sm:$0xff] %v12785_v46  ;;  %v10969_v47 = vunpack.i.h.bf16 %v12787_v20 }
 0x31f   : > { %11286 = vrot.lane.b32.xlu1 %v12407_v17, %s15518_s13  ;;  %11176 = vrot.lane.b32.xlu0 %v12513_v19, %s15364_s25 }
 0x321   : > { %v12793_v8 = vpop.permute.xlu1 %10956  ;;  %v12795_v13 = vpop.permute.xlu0 %10971 }
 0x322   : > { %15554 = vst [vmem:[#allocation51_spill] sm:$0xff] %v12793_v8 }
 0x323   : > { %11291 = vrot.lane.b32.xlu1 %v12371_v5, %s15367_s21  ;;  %11201 = vrot.lane.b32.xlu0 %v12571_v34, %s15364_s25 }
 0x325   : > { %v12801_v46 = vpop.permute.xlu1 %11056  ;;  %v12803_v61 = vpop.permute.xlu0 %10976 }
 0x326   : > { %15555 = vst [vmem:[#allocation52_spill] sm:$0xff] %v12801_v46 }
 0x327   : > { %11301 = vrot.lane.b32.xlu1 %v12407_v17, %s15520_s18  ;;  %11206 = vrot.lane.b32.xlu0 %v12350_v60, %s15344_s17  ;;  %s15562_s17 = smov 113  }
 0x329   : > { %v12809_v8 = vpop.permute.xlu1 %11061  ;;  %v12811_v58 = vpop.permute.xlu0 %10981 }
 0x32a   : > { %15556 = vst [vmem:[#allocation53_spill] sm:$0xff] %v12809_v8 }
 0x32b   : > { %11306 = vrot.lane.b32.xlu1 %v12389_v12, %s15552_s15  ;;  %11221 = vrot.lane.b32.xlu0 %v12399_v14, %s15364_s25  ;;  %s15588_s25 = smov 111  }
 0x32d   : > { %v12817_v57 = vpop.permute.xlu1 %11076  ;;  %v12819_v46 = vpop.permute.xlu0 %10986 }
 0x32e   : > { %15557 = vst [vmem:[#allocation54_spill] sm:$0xff] %v12817_v57 }
 0x32f   : > { %11311 = vrot.lane.b32.xlu1 %v12407_v17, %s15522_s19  ;;  %11236 = vrot.lane.b32.xlu0 %v12513_v19, %s15356_s12 }
 0x331   : > { %v12825_v11 = vpop.permute.xlu1 %11086  ;;  %v12827_v8 = vpop.permute.xlu0 %10991 }
 0x332   : > { %15558 = vst [vmem:[#allocation55_spill] sm:$0xff] %v12825_v11 }
 0x333   : > { %11316 = vrot.lane.b32.xlu1 %v12361_v0, %s15367_s21  ;;  %11261 = vrot.lane.b32.xlu0 %v12571_v34, %s15356_s12 }
 0x335   : > { %v12833_v4 = vpop.permute.xlu1 %11096  ;;  %v12835_v57 = vpop.permute.xlu0 %10996 }
 0x336   : > { %15559 = vst [vmem:[#allocation56_spill] sm:$0xff] %v12833_v4 }
 0x337   : > { %11331 = vrot.lane.b32.xlu1 %v12407_v17, %s15560_s20  ;;  %11266 = vrot.lane.b32.xlu0 %v12350_v60, %s15552_s15  ;;  %s15564_s20 = smov 72  }
 0x339   : > { %v12841_v19 = vpop.permute.xlu1 %11101  ;;  %v12843_v11 = vpop.permute.xlu0 %11001 }
 0x33a   : > { %15561 = vst [vmem:[#allocation57_spill] sm:$0xff] %v12841_v19  ;;  %v10964_v19 = vunpack.i.h.bf16 %v10962_v16 }
 0x33b   : > { %11336 = vrot.lane.b32.xlu1 %v12375_v6, %s15562_s17  ;;  %11281 = vrot.lane.b32.xlu0 %v12399_v14, %s15356_s12  ;;  %s15372_s12 = smov 43  }
 0x33c   : > { %v2608_v32 = vsel %vm2605_vm2, %v10963_v9, %v10964_v19  ;;  %v9892_v9 = vpack.c.bf16 %v10819_v37, %v10639_v59 }
 0x33d   : > { %v12849_v42 = vpop.permute.xlu1 %11106  ;;  %v12851_v4 = vpop.permute.xlu0 %11006 }
 0x33e   : > { %15563 = vst [vmem:[#allocation58_spill] sm:$0xff] %v12849_v42 }
 0x33f   : > { %11346 = vrot.lane.b32.xlu1 %v12407_v17, %s15564_s20  ;;  %11296 = vrot.lane.b32.xlu0 %v12857_v30, %s15367_s21  ;;  %s15566_s20 = smov 71  }
 0x341   : > { %v11132_v39 = vpop.permute.xlu1 %11131  ;;  %v12863_v21 = vpop.permute.xlu0 %11011 }
 0x342   : > { %v11134_v42 = vunpack.i.h.bf16 %v11132_v39  ;;  %v11133_v63 = vunpack.i.l.bf16 %v11132_v39 }
 0x343   : > { %11351 = vrot.lane.b32.xlu1 %v12371_v5, %s15372_s12  ;;  %11321 = vrot.lane.b32.xlu0 %v12571_v34, %s15367_s21  ;;  %v2726_v34 = vsel %vm15415_vm3, %v10818_v1, %v10819_v37  ;;  %v10824_v1 = vunpack.i.h.bf16 %v12609_v50  ;;  %v10823_v37 = vunpack.i.l.bf16 %v12609_v50  ;;  %v10644_v50 = vunpack.i.h.bf16 %v12535_v25 }
 0x344   : > { %v9888_v35 = vpack.c.bf16 %v11134_v42, %v10964_v19  ;;  %v2609_v16 = vsel %vm2605_vm2, %v11133_v63, %v11134_v42  ;;  %v10968_v63 = vunpack.i.l.bf16 %v12787_v20  ;;  %vm15391_vm2 = vcmask 678912  }
 0x345   : > { %v12874_v7 = vpop.permute.xlu1 %11136  ;;  %v12876_v39 = vpop.permute.xlu0 %11016  ;;  %v9890_v28 = vpack.c.bf16 %v2609_v16, %v2608_v32 }
 0x346   : > { %15565 = vst [vmem:[#allocation59_spill] sm:$0xff] %v12874_v7  ;;  %9889 = vmatprep.subr.bf16.mxu1 %v9888_v35  ;;  %v2725_v35 = vsel %vm15415_vm3, %v10638_v26, %v10639_v59  ;;  %v2727_v20 = vsel %vm15415_vm3, %v10968_v63, %v10969_v47  ;;  %v10643_v63 = vunpack.i.l.bf16 %v12535_v25 }
 0x347   : > { %11361 = vrot.lane.b32.xlu1 %v12407_v17, %s15566_s20  ;;  %11326 = vrot.lane.b32.xlu0 %v12350_v60, %s15562_s17 }
 0x348   : > { %9891 = vmatpush1.bf16.msra.mxu1 %v9890_v28  ;;  %v9894_v28 = vpack.c.bf16 %v2726_v34, %v2725_v35  ;;  %v9555_v34 = vld [vmem:[%s15250_s4 + $0xe8] sm:$0xff] }
 0x349   : > { %9893 = vmatprep.subr.bf16.mxu1 %v9892_v9  ;;  %v11152_v32 = vpop.permute.xlu1 %11151  ;;  %v12886_v42 = vpop.permute.xlu0 %11021 }
 0x34a   : > { %v11154_v19 = vunpack.i.h.bf16 %v11152_v32  ;;  %v11153_v16 = vunpack.i.l.bf16 %v11152_v32 }
 0x34b   : > { %11366 = vrot.lane.b32.xlu1 %v12389_v12, %s15562_s17  ;;  %11341 = vrot.lane.b32.xlu0 %v12399_v14, %s15367_s21  ;;  %s15568_s21 = smov 70  }
 0x34c   : > { %v2728_v9 = vsel %vm15415_vm3, %v11153_v16, %v11154_v19  ;;  %9556 = vmatmul.mubr.msk.f32.vlgmr.msra.gmra.mrb[0].mxu1 %vm993_vm4, %v9554_v23  ;;  %v9896_v26 = vpack.c.bf16 %v11154_v19, %v10969_v47  ;;  %v2845_v47 = vsel %vm15408_vm7, %v10823_v37, %v10824_v1  ;;  %v10974_v23 = vunpack.i.h.bf16 %v12795_v13  ;;  %v9558_v37 = vld [vmem:[%s15250_s4 + $0xf0] sm:$0xff] }
 0x34d   : > { %9895 = vmatpush1.bf16.msra.mxu1 %v9894_v28  ;;  %v12901_v59 = vpop.permute.xlu1 %11156  ;;  %v12903_v32 = vpop.permute.xlu0 %11026  ;;  %2694 = vmatprep.mubr.f32.mxu1 %v12853_v44  ;;  %v9898_v35 = vpack.c.bf16 %v2728_v9, %v2727_v20  ;;  %v10973_v19 = vunpack.i.l.bf16 %v12795_v13  ;;  %v9900_v16 = vpack.c.bf16 %v10824_v1, %v10644_v50  ;;  %v12924_v20 = vpack.i.bf16 %v12853_v44, %v12385_v10 }
 0x34e   : > { %15567 = vst [vmem:[#allocation60_spill] sm:$0xff] %v12901_v59  ;;  %9897 = vmatprep.subr.bf16.mxu1 %v9896_v26  ;;  %v2844_v9 = vsel %vm15408_vm7, %v10643_v63, %v10644_v50  ;;  %v10829_v1 = vunpack.i.h.bf16 %v12617_v52  ;;  %vm5160_vm3 = vcmask 474112  }
 0x34f   : > { %11371 = vrot.lane.b32.xlu1 %v12407_v17, %s15568_s21  ;;  %11356 = vrot.lane.b32.xlu0 %v12857_v30, %s15372_s12  ;;  %v2846_v10 = vsel %vm15408_vm7, %v10973_v19, %v10974_v23  ;;  %v10648_v19 = vunpack.i.l.bf16 %v12543_v27 }
 0x350   : > { %9557 = vmatmul.mubr.msk.f32.gmra.mrb[2].mxu1 %vm993_vm4, %v9555_v34  ;;  %v9902_v34 = vpack.c.bf16 %v2845_v47, %v2844_v9  ;;  %v9559_v47 = vld [vmem:[%s15250_s4 + $0xf8] sm:$0xff]  ;;  %v10978_v9 = vunpack.i.l.bf16 %v12803_v61 }
 0x351   : > { %9899 = vmatpush1.bf16.msra.mxu1 %v9898_v35  ;;  %v11167_v28 = vpop.permute.xlu1 %11166  ;;  %v12919_v25 = vpop.permute.xlu0 %11031  ;;  %2807 = vmatprep.mubr.f32.mxu1 %v12853_v44  ;;  %v10828_v35 = vunpack.i.l.bf16 %v12617_v52  ;;  %v10649_v52 = vunpack.i.h.bf16 %v12543_v27 }
 0x352   : > { %9901 = vmatprep.subr.bf16.mxu1 %v9900_v16  ;;  %v11169_v13 = vunpack.i.h.bf16 %v11167_v28  ;;  %v11168_v26 = vunpack.i.l.bf16 %v11167_v28 }
 0x353   : > { %11376 = vrot.lane.b32.xlu1 %v12361_v0, %s15372_s12  ;;  %11381 = vrot.lane.b32.xlu0 %v12924_v20, %s15372_s12  ;;  %s15374_s12 = smov 112  }
 0x354   : > { %v2847_v59 = vsel %vm15408_vm7, %v11168_v26, %v11169_v13  ;;  %9560 = vmatmul.mubr.msk.f32.vlgmr.msra.gmra.mrb[0].mxu1 %vm993_vm4, %v9558_v37  ;;  %v9904_v50 = vpack.c.bf16 %v11169_v13, %v10974_v23  ;;  %v2964_v23 = vsel %vm15405_vm8, %v10828_v35, %v10829_v1  ;;  %v10979_v37 = vunpack.i.h.bf16 %v12803_v61  ;;  %v9562_v13 = vld [vmem:[%s15250_s4 + $0x100] sm:$0xff] }
 0x355   : > { %9903 = vmatpush1.bf16.msra.mxu1 %v9902_v34  ;;  %v12939_v63 = vpop.permute.xlu1 %11171  ;;  %v12941_v16 = vpop.permute.xlu0 %11036  ;;  %2813 = vmatprep.mubr.f32.mxu1 %v12853_v44  ;;  %v9906_v28 = vpack.c.bf16 %v2847_v59, %v2846_v10  ;;  %v9908_v10 = vpack.c.bf16 %v10829_v1, %v10649_v52  ;;  %v2963_v26 = vsel %vm15405_vm8, %v10648_v19, %v10649_v52  ;;  %v10834_v61 = vunpack.i.h.bf16 %v12625_v54 }
 0x356   : > { %15569 = vst [vmem:[#allocation61_spill] sm:$0xff] %v12939_v63  ;;  %9905 = vmatprep.subr.bf16.mxu1 %v9904_v50  ;;  %v9910_v1 = vpack.c.bf16 %v2964_v23, %v2963_v26  ;;  %v10833_v50 = vunpack.i.l.bf16 %v12625_v54  ;;  %v9563_v23 = vld [vmem:[%s15250_s4 + $0x108] sm:$0xff]  ;;  %v10654_v54 = vunpack.i.h.bf16 %v12551_v29  ;;  %v10983_v26 = vunpack.i.l.bf16 %v12811_v58 }
 0x357   : > { %11391 = vrot.lane.b32.xlu1 %v12407_v17, %s15570_s10  ;;  %11386 = vrot.lane.b32.xlu0 %v12350_v60, %s15374_s12  ;;  %vm15451_vm7 = vcmask 556032  }
 0x358   : > { %9561 = vmatmul.mubr.msk.f32.gmra.mrb[2].mxu1 %vm993_vm4, %v9559_v47  ;;  %v2965_v47 = vsel %vm15405_vm8, %v10978_v9, %v10979_v37  ;;  %v10653_v9 = vunpack.i.l.bf16 %v12551_v29 }
 0x359   : > { %9907 = vmatpush1.bf16.msra.mxu1 %v9906_v28  ;;  %v11182_v27 = vpop.permute.xlu1 %11181  ;;  %v12957_v59 = vpop.permute.xlu0 %11041  ;;  %2926 = vmatprep.mubr.f32.mxu1 %v12853_v44 }
 0x35a   : > { %9909 = vmatprep.subr.bf16.mxu1 %v9908_v10  ;;  %v11184_v34 = vunpack.i.h.bf16 %v11182_v27  ;;  %v11183_v35 = vunpack.i.l.bf16 %v11182_v27 }
 0x35b   : > { %11396 = vrot.lane.b32.xlu1 %v12375_v6, %s15374_s12  ;;  %11401 = vrot.lane.b32.xlu0 %v12399_v14, %s15571_s0  ;;  %s15573_s12 = smov 68  }
 0x35c   : > { %v2966_v28 = vsel %vm15405_vm8, %v11183_v35, %v11184_v34  ;;  %9564 = vmatmul.mubr.msk.f32.vlgmr.msra.gmra.mrb[0].mxu1 %vm993_vm4, %v9562_v13  ;;  %v9912_v52 = vpack.c.bf16 %v11184_v34, %v10979_v37  ;;  %v3083_v37 = vsel %vm15403_vm9, %v10833_v50, %v10834_v61  ;;  %v10984_v13 = vunpack.i.h.bf16 %v12811_v58  ;;  %v9566_v50 = vld [vmem:[%s15250_s4 + $0x110] sm:$0xff] }
 0x35d   : > { %9911 = vmatpush1.bf16.msra.mxu1 %v9910_v1  ;;  %v12973_v19 = vpop.permute.xlu1 %11186  ;;  %v12975_v10 = vpop.permute.xlu0 %11046  ;;  %2932 = vmatprep.mubr.f32.mxu1 %v12853_v44  ;;  %v9914_v27 = vpack.c.bf16 %v2966_v28, %v2965_v47  ;;  %v9916_v34 = vpack.c.bf16 %v10834_v61, %v10654_v54  ;;  %v12996_v1 = vpack.i.bf16 %v12853_v44, %v12401_v15  ;;  %v10839_v61 = vunpack.i.h.bf16 %v12633_v56 }
 0x35e   : > { %15572 = vst [vmem:[#allocation62_spill] sm:$0xff] %v12973_v19  ;;  %9913 = vmatprep.subr.bf16.mxu1 %v9912_v52  ;;  %v3082_v47 = vsel %vm15403_vm9, %v10653_v9, %v10654_v54  ;;  %vm15464_vm8 = vcmask 572416  }
 0x35f   : > { %11406 = vrot.lane.b32.xlu1 %v12407_v17, %s15573_s12  ;;  %11416 = vrot.lane.b32.xlu0 %v12857_v30, %s15377_s1  ;;  %v9918_v52 = vpack.c.bf16 %v3083_v37, %v3082_v47  ;;  %v9567_v37 = vld [vmem:[%s15250_s4 + $0x118] sm:$0xff]  ;;  %v10988_v47 = vunpack.i.l.bf16 %v12819_v46 }
 0x360   : > { %9565 = vmatmul.mubr.msk.f32.gmra.mrb[2].mxu1 %vm993_vm4, %v9563_v23  ;;  %v10838_v23 = vunpack.i.l.bf16 %v12633_v56  ;;  %v10659_v56 = vunpack.i.h.bf16 %v12559_v31 }
 0x361   : > { %9915 = vmatpush1.bf16.msra.mxu1 %v9914_v27  ;;  %v11192_v29 = vpop.permute.xlu1 %11191  ;;  %v12991_v35 = vpop.permute.xlu0 %11051  ;;  %3045 = vmatprep.mubr.f32.mxu1 %v12853_v44  ;;  %v3084_v27 = vsel %vm15403_vm9, %v10983_v26, %v10984_v13  ;;  %v10658_v26 = vunpack.i.l.bf16 %v12559_v31 }
 0x362   : > { %9917 = vmatprep.subr.bf16.mxu1 %v9916_v34  ;;  %v11194_v58 = vunpack.i.h.bf16 %v11192_v29  ;;  %v11193_v28 = vunpack.i.l.bf16 %v11192_v29 }
 0x363   : > { %11411 = vrot.lane.b32.xlu1 %v12371_v5, %s15377_s1  ;;  %11431 = vrot.lane.b32.xlu0 %v12996_v1, %s15574_s2  ;;  %s15577_s1 = smov 112  }
 0x364   : > { %v3085_v15 = vsel %vm15403_vm9, %v11193_v28, %v11194_v58  ;;  %9568 = vmatmul.mubr.msk.f32.vlgmr.msra.gmra.mrb[0].mxu1 %vm993_vm4, %v9566_v50  ;;  %v9920_v54 = vpack.c.bf16 %v11194_v58, %v10984_v13  ;;  %v3202_v13 = vsel %vm15395_vm10, %v10838_v23, %v10839_v61  ;;  %v10989_v50 = vunpack.i.h.bf16 %v12819_v46  ;;  %v9570_v28 = vld [vmem:[%s15250_s4 + $0x120] sm:$0xff] }
 0x365   : > { %9919 = vmatpush1.bf16.msra.mxu1 %v9918_v52  ;;  %v13011_v9 = vpop.permute.xlu1 %11196  ;;  %v13013_v34 = vpop.permute.xlu0 %11066  ;;  %3051 = vmatprep.mubr.f32.mxu1 %v12853_v44  ;;  %v9922_v29 = vpack.c.bf16 %v3085_v15, %v3084_v27  ;;  %v9924_v15 = vpack.c.bf16 %v10839_v61, %v10659_v56  ;;  %v3201_v52 = vsel %vm15395_vm10, %v10658_v26, %v10659_v56  ;;  %v10844_v46 = vunpack.i.h.bf16 %v12641_v62 }
 0x366   : > { %15575 = vst [vmem:[#allocation63_spill] sm:$0xff] %v13011_v9  ;;  %15576 = vst [vmem:[#allocation64_spill] sm:$0xff] %v13013_v34  ;;  %9921 = vmatprep.subr.bf16.mxu1 %v9920_v54  ;;  %v9926_v61 = vpack.c.bf16 %v3202_v13, %v3201_v52  ;;  %v10843_v54 = vunpack.i.l.bf16 %v12641_v62  ;;  %v9571_v13 = vld [vmem:[%s15250_s4 + $0x128] sm:$0xff]  ;;  %v10664_v62 = vunpack.i.h.bf16 %v12567_v33  ;;  %v10993_v52 = vunpack.i.l.bf16 %v12827_v8 }
 0x367   : > { %11421 = vrot.lane.b32.xlu1 %v12389_v12, %s15577_s1  ;;  %11436 = vrot.lane.b32.xlu0 %v12924_v20, %s15578_s3  ;;  %vm4390_vm9 = vcmask 580608  }
 0x368   : > { %9569 = vmatmul.mubr.msk.f32.gmra.mrb[2].mxu1 %vm993_vm4, %v9567_v37  ;;  %v3203_v37 = vsel %vm15395_vm10, %v10988_v47, %v10989_v50  ;;  %v10663_v47 = vunpack.i.l.bf16 %v12567_v33 }
 0x369   : > { %9923 = vmatpush1.bf16.msra.mxu1 %v9922_v29  ;;  %v11212_v58 = vpop.permute.xlu1 %11211  ;;  %v13029_v31 = vpop.permute.xlu0 %11071  ;;  %3164 = vmatprep.mubr.f32.mxu1 %v12853_v44 }
 0x36a   : > { %15579 = vst [vmem:[#allocation65_spill] sm:$0xff] %v13029_v31  ;;  %9925 = vmatprep.subr.bf16.mxu1 %v9924_v15  ;;  %v11214_v23 = vunpack.i.h.bf16 %v11212_v58  ;;  %v11213_v27 = vunpack.i.l.bf16 %v11212_v58 }
 0x36b   : > { %11426 = vrot.lane.b32.xlu1 %v12361_v0, %s15578_s3  ;;  %11441 = vrot.lane.b32.xlu0 %v12996_v1, %s15580_s27  ;;  %s15380_s27 = smov 111  }
 0x36c   : > { %v3204_v29 = vsel %vm15395_vm10, %v11213_v27, %v11214_v23  ;;  %9572 = vmatmul.mubr.msk.f32.vlgmr.msra.gmra.mrb[0].mxu1 %vm993_vm4, %v9570_v28  ;;  %v9928_v56 = vpack.c.bf16 %v11214_v23, %v10989_v50  ;;  %v3321_v50 = vsel %vm3319_vm11, %v10843_v54, %v10844_v46  ;;  %v10994_v28 = vunpack.i.h.bf16 %v12827_v8 }
 0x36d   : > { %9927 = vmatpush1.bf16.msra.mxu1 %v9926_v61  ;;  %v13045_v26 = vpop.permute.xlu1 %11216  ;;  %v13047_v15 = vpop.permute.xlu0 %11081  ;;  %3170 = vmatprep.mubr.f32.mxu1 %v12853_v44  ;;  %v9930_v58 = vpack.c.bf16 %v3204_v29, %v3203_v37  ;;  %v9932_v23 = vpack.c.bf16 %v10844_v46, %v10664_v62  ;;  %v9574_v61 = vld [vmem:[%s15250_s4 + $0x130] sm:$0xff]  ;;  %v3320_v37 = vsel %vm3319_vm11, %v10663_v47, %v10664_v62  ;;  %v10849_v8 = vunpack.i.h.bf16 %v12649_v2 }
 0x36e   : > { %15581 = vst [vmem:[#allocation66_spill] sm:$0xff] %v13045_v26  ;;  %15582 = vst [vmem:[#allocation67_spill] sm:$0xff] %v13047_v15  ;;  %9929 = vmatprep.subr.bf16.mxu1 %v9928_v56  ;;  %v9934_v46 = vpack.c.bf16 %v3321_v50, %v3320_v37  ;;  %v10848_v56 = vunpack.i.l.bf16 %v12649_v2  ;;  %v9575_v50 = vld [vmem:[%s15250_s4 + $0x138] sm:$0xff]  ;;  %v10669_v2 = vunpack.i.h.bf16 %v12579_v36  ;;  %v10998_v37 = vunpack.i.l.bf16 %v12835_v57 }
 0x36f   : > { %11451 = vrot.lane.b32.xlu1 %v12375_v6, %s15380_s27  ;;  %11446 = vrot.lane.b32.xlu0 %v12350_v60, %s15380_s27  ;;  %s15382_s27 = smov 41   ;;  %vm4271_vm10 = vcmask 588800  }
 0x370   : > { %9573 = vmatmul.mubr.msk.f32.gmra.mrb[2].mxu1 %vm993_vm4, %v9571_v13  ;;  %v3322_v13 = vsel %vm3319_vm11, %v10993_v52, %v10994_v28  ;;  %v10668_v52 = vunpack.i.l.bf16 %v12579_v36 }
 0x371   : > { %9931 = vmatpush1.bf16.msra.mxu1 %v9930_v58  ;;  %v11227_v33 = vpop.permute.xlu1 %11226  ;;  %v13063_v27 = vpop.permute.xlu0 %11091  ;;  %3283 = vmatprep.mubr.f32.mxu1 %v12853_v44 }
 0x372   : > { %15583 = vst [vmem:[#allocation68_spill] sm:$0xff] %v13063_v27  ;;  %9933 = vmatprep.subr.bf16.mxu1 %v9932_v23  ;;  %v11229_v54 = vunpack.i.h.bf16 %v11227_v33  ;;  %v11228_v29 = vunpack.i.l.bf16 %v11227_v33 }
 0x373   : > { %11466 = vrot.lane.b32.xlu1 %v12371_v5, %s15382_s27  ;;  %11456 = vrot.lane.b32.xlu0 %v12407_v17, %s15584_s8  ;;  %s15592_s8 = smov 126  }
 0x374   : > { %v3323_v58 = vsel %vm3319_vm11, %v11228_v29, %v11229_v54  ;;  %9576 = vmatmul.mubr.msk.f32.vlgmr.msra.gmra.mrb[0].mxu1 %vm993_vm4, %v9574_v61  ;;  %v9936_v62 = vpack.c.bf16 %v11229_v54, %v10994_v28  ;;  %v3440_v28 = vsel %vm3438_vm12, %v10848_v56, %v10849_v8  ;;  %v10999_v61 = vunpack.i.h.bf16 %v12835_v57 }
 0x375   : > { %9935 = vmatpush1.bf16.msra.mxu1 %v9934_v46  ;;  %v13079_v47 = vpop.permute.xlu1 %11231  ;;  %v13081_v23 = vpop.permute.xlu0 %11111  ;;  %3289 = vmatprep.mubr.f32.mxu1 %v12853_v44  ;;  %v9938_v33 = vpack.c.bf16 %v3323_v58, %v3322_v13  ;;  %v9940_v54 = vpack.c.bf16 %v10849_v8, %v10669_v2  ;;  %v9578_v46 = vld [vmem:[%s15250_s4 + $0x140] sm:$0xff]  ;;  %v3439_v13 = vsel %vm3438_vm12, %v10668_v52, %v10669_v2  ;;  %v10854_v57 = vunpack.i.h.bf16 %v12657_v38 }
 0x376   : > { %15585 = vst [vmem:[#allocation69_spill] sm:$0xff] %v13079_v47  ;;  %15586 = vst [vmem:[#allocation70_spill] sm:$0xff] %v13081_v23  ;;  %9937 = vmatprep.subr.bf16.mxu1 %v9936_v62  ;;  %v9942_v8 = vpack.c.bf16 %v3440_v28, %v3439_v13  ;;  %v10853_v62 = vunpack.i.l.bf16 %v12657_v38  ;;  %v9579_v28 = vld [vmem:[%s15250_s4 + $0x148] sm:$0xff]  ;;  %v10674_v38 = vunpack.i.h.bf16 %v12587_v3  ;;  %v11003_v13 = vunpack.i.l.bf16 %v12843_v11 }
 0x377   : > { %11476 = vrot.lane.b32.xlu1 %v12996_v1, %s15530_s14  ;;  %11461 = vrot.lane.b32.xlu0 %v12399_v14, %s15578_s3  ;;  %vm15390_vm11 = vcmask 670720   ;;  %s12098_s14 = smov 109   ;;  %v15654_v23 = vld [vmem:[#allocation33_spill] sm:$0xff] }
 0x378   : > { %9577 = vmatmul.mubr.msk.f32.gmra.mrb[2].mxu1 %vm993_vm4, %v9575_v50  ;;  %v3441_v50 = vsel %vm3438_vm12, %v10998_v37, %v10999_v61  ;;  %v10673_v37 = vunpack.i.l.bf16 %v12587_v3  ;;  %v10758_v31 = vunpack.i.l.bf16 %v15654_v23  ;;  %v15664_v34 = vunpack.i.h.bf16 %v15654_v23 }
 0x379   : > { %9939 = vmatpush1.bf16.msra.mxu1 %v9938_v33  ;;  %v11242_v29 = vpop.permute.xlu1 %11241  ;;  %v13097_v36 = vpop.permute.xlu0 %11116  ;;  %3402 = vmatprep.mubr.f32.mxu1 %v12853_v44 }
 0x37a   : > { %15587 = vst [vmem:[#allocation71_spill] sm:$0xff] %v13097_v36  ;;  %9941 = vmatprep.subr.bf16.mxu1 %v9940_v54  ;;  %v11244_v56 = vunpack.i.h.bf16 %v11242_v29  ;;  %v11243_v58 = vunpack.i.l.bf16 %v11242_v29  ;;  %v15640_v36 = vld [vmem:[#allocation27_spill] sm:$0xff] }
 0x37b   : > { %11481 = vrot.lane.b32.xlu1 %v12389_v12, %s15588_s25  ;;  %11471 = vrot.lane.b32.xlu0 %v12857_v30, %s15382_s27  ;;  %v15430_v47 = vunpack.i.h.bf16 %v15640_v36  ;;  %v10723_v27 = vunpack.i.l.bf16 %v15640_v36 }
 0x37c   : > { %v3442_v33 = vsel %vm3438_vm12, %v11243_v58, %v11244_v56  ;;  %9580 = vmatmul.mubr.msk.f32.vlgmr.msra.gmra.mrb[0].mxu1 %vm993_vm4, %v9578_v46  ;;  %v9944_v2 = vpack.c.bf16 %v11244_v56, %v10999_v61  ;;  %v3559_v61 = vsel %vm15394_vm13, %v10853_v62, %v10854_v57  ;;  %v11004_v46 = vunpack.i.h.bf16 %v12843_v11 }
 0x37d   : > { %9943 = vmatpush1.bf16.msra.mxu1 %v9942_v8  ;;  %v13113_v52 = vpop.permute.xlu1 %11246  ;;  %v13115_v54 = vpop.permute.xlu0 %11121  ;;  %3408 = vmatprep.mubr.f32.mxu1 %v12853_v44  ;;  %v9946_v29 = vpack.c.bf16 %v3442_v33, %v3441_v50  ;;  %v9948_v56 = vpack.c.bf16 %v10854_v57, %v10674_v38  ;;  %v9582_v8 = vld [vmem:[%s15250_s4 + $0x150] sm:$0xff]  ;;  %v3558_v50 = vsel %vm15394_vm13, %v10673_v37, %v10674_v38  ;;  %v10859_v11 = vunpack.i.h.bf16 %v12665_v40 }
 0x37e   : > { %15589 = vst [vmem:[#allocation72_spill] sm:$0xff] %v13113_v52  ;;  %15590 = vst [vmem:[#allocation73_spill] sm:$0xff] %v13115_v54  ;;  %9945 = vmatprep.subr.bf16.mxu1 %v9944_v2  ;;  %v9950_v57 = vpack.c.bf16 %v3559_v61, %v3558_v50  ;;  %v10858_v2 = vunpack.i.l.bf16 %v12665_v40  ;;  %v9583_v61 = vld [vmem:[%s15250_s4 + $0x158] sm:$0xff]  ;;  %v10679_v40 = vunpack.i.h.bf16 %v12593_v41  ;;  %v11008_v50 = vunpack.i.l.bf16 %v12851_v4 }
 0x37f   : > { %11486 = vrot.lane.b32.xlu1 %v12996_v1, %s15533_s16  ;;  %11496 = vrot.lane.b32.xlu0 %v12924_v20, %s15382_s27  ;;  %vm15393_vm12 = vcmask 662528   ;;  %v15639_v54 = vld [vmem:[#allocation19_spill] sm:$0xff] }
 0x380   : > { %9581 = vmatmul.mubr.msk.f32.gmra.mrb[2].mxu1 %vm993_vm4, %v9579_v28  ;;  %v3560_v28 = vsel %vm15394_vm13, %v11003_v13, %v11004_v46  ;;  %v10678_v13 = vunpack.i.l.bf16 %v12593_v41 }
 0x381   : > { %9947 = vmatpush1.bf16.msra.mxu1 %v9946_v29  ;;  %v11252_v58 = vpop.permute.xlu1 %11251  ;;  %v13131_v3 = vpop.permute.xlu0 %11126  ;;  %3521 = vmatprep.mubr.f32.mxu1 %v12853_v44 }
 0x382   : > { %15591 = vst [vmem:[#allocation74_spill] sm:$0xff] %v13131_v3  ;;  %9949 = vmatprep.subr.bf16.mxu1 %v9948_v56  ;;  %v11254_v62 = vunpack.i.h.bf16 %v11252_v58  ;;  %v11253_v33 = vunpack.i.l.bf16 %v11252_v58 }
 0x383   : > { %11491 = vrot.lane.b32.xlu1 %v12361_v0, %s15382_s27  ;;  %11501 = vrot.lane.b32.xlu0 %v12407_v17, %s15592_s8  ;;  %s15384_s8 = smov 110   ;;  %s15596_s27 = smov 125  }
 0x384   : > { %v3561_v29 = vsel %vm15394_vm13, %v11253_v33, %v11254_v62  ;;  %9584 = vmatmul.mubr.msk.f32.vlgmr.msra.gmra.mrb[0].mxu1 %vm993_vm4, %v9582_v8  ;;  %v9952_v38 = vpack.c.bf16 %v11254_v62, %v11004_v46  ;;  %v3678_v46 = vsel %vm15392_vm14, %v10858_v2, %v10859_v11  ;;  %v11009_v8 = vunpack.i.h.bf16 %v12851_v4 }
 0x385   : > { %9951 = vmatpush1.bf16.msra.mxu1 %v9950_v57  ;;  %v13147_v37 = vpop.permute.xlu1 %11256  ;;  %v13149_v56 = vpop.permute.xlu0 %11141  ;;  %3527 = vmatprep.mubr.f32.mxu1 %v12853_v44  ;;  %v9954_v58 = vpack.c.bf16 %v3561_v29, %v3560_v28  ;;  %v9956_v62 = vpack.c.bf16 %v10859_v11, %v10679_v40  ;;  %v9586_v57 = vld [vmem:[%s15250_s4 + $0x160] sm:$0xff]  ;;  %v3677_v28 = vsel %vm15392_vm14, %v10678_v13, %v10679_v40  ;;  %v10864_v4 = vunpack.i.h.bf16 %v12673_v43 }
 0x386   : > { %15593 = vst [vmem:[#allocation75_spill] sm:$0xff] %v13147_v37  ;;  %15594 = vst [vmem:[#allocation76_spill] sm:$0xff] %v13149_v56  ;;  %9953 = vmatprep.subr.bf16.mxu1 %v9952_v38  ;;  %v9958_v11 = vpack.c.bf16 %v3678_v46, %v3677_v28  ;;  %v10863_v38 = vunpack.i.l.bf16 %v12673_v43  ;;  %v9587_v46 = vld [vmem:[%s15250_s4 + $0x168] sm:$0xff]  ;;  %v10684_v43 = vunpack.i.h.bf16 %v12603_v48  ;;  %v11013_v28 = vunpack.i.l.bf16 %v12863_v21 }
 0x387   : > { %11511 = vrot.lane.b32.xlu1 %v12996_v1, %s15536_s9  ;;  %11506 = vrot.lane.b32.xlu0 %v12350_v60, %s15384_s8  ;;  %vm4152_vm13 = vcmask 654336  }
 0x388   : > { %9585 = vmatmul.mubr.msk.f32.gmra.mrb[2].mxu1 %vm993_vm4, %v9583_v61  ;;  %v3679_v61 = vsel %vm15392_vm14, %v11008_v50, %v11009_v8  ;;  %v10683_v50 = vunpack.i.l.bf16 %v12603_v48 }
 0x389   : > { %9955 = vmatpush1.bf16.msra.mxu1 %v9954_v58  ;;  %v11272_v41 = vpop.permute.xlu1 %11271  ;;  %v13165_v33 = vpop.permute.xlu0 %11146  ;;  %3640 = vmatprep.mubr.f32.mxu1 %v12853_v44 }
 0x38a   : > { %15595 = vst [vmem:[#allocation77_spill] sm:$0xff] %v13165_v33  ;;  %9957 = vmatprep.subr.bf16.mxu1 %v9956_v62  ;;  %v11274_v2 = vunpack.i.h.bf16 %v11272_v41  ;;  %v11273_v29 = vunpack.i.l.bf16 %v11272_v41 }
 0x38b   : > { %11516 = vrot.lane.b32.xlu1 %v12375_v6, %s15384_s8  ;;  %11521 = vrot.lane.b32.xlu0 %v12407_v17, %s15596_s27  ;;  %s15599_s27 = smov 41   ;;  %s15387_s8 = smov 40  }
 0x38c   : > { %v3680_v58 = vsel %vm15392_vm14, %v11273_v29, %v11274_v2  ;;  %9588 = vmatmul.mubr.msk.f32.vlgmr.msra.gmra.mrb[0].mxu1 %vm993_vm4, %v9586_v57  ;;  %v9960_v40 = vpack.c.bf16 %v11274_v2, %v11009_v8  ;;  %v3797_v8 = vsel %vm15391_vm2, %v10863_v38, %v10864_v4  ;;  %v11014_v57 = vunpack.i.h.bf16 %v12863_v21 }
 0x38d   : > { %9959 = vmatpush1.bf16.msra.mxu1 %v9958_v11  ;;  %v13181_v13 = vpop.permute.xlu1 %11276  ;;  %v13183_v62 = vpop.permute.xlu0 %11161  ;;  %3646 = vmatprep.mubr.f32.mxu1 %v12853_v44  ;;  %v9962_v41 = vpack.c.bf16 %v3680_v58, %v3679_v61  ;;  %v9964_v2 = vpack.c.bf16 %v10864_v4, %v10684_v43  ;;  %v9590_v11 = vld [vmem:[%s15250_s4 + $0x170] sm:$0xff]  ;;  %v3796_v61 = vsel %vm15391_vm2, %v10683_v50, %v10684_v43  ;;  %v10869_v21 = vunpack.i.h.bf16 %v12681_v45 }
 0x38e   : > { %15597 = vst [vmem:[#allocation78_spill] sm:$0xff] %v13181_v13  ;;  %15598 = vst [vmem:[#allocation79_spill] sm:$0xff] %v13183_v62  ;;  %9961 = vmatprep.subr.bf16.mxu1 %v9960_v40  ;;  %v9966_v4 = vpack.c.bf16 %v3797_v8, %v3796_v61  ;;  %v10868_v40 = vunpack.i.l.bf16 %v12681_v45  ;;  %v10689_v45 = vunpack.i.h.bf16 %v12611_v51  ;;  %vm5553_vm14 = vcmask 449536  }
 0x38f   : > { %11531 = vrot.lane.b32.xlu1 %v12996_v1, %s15539_s29  ;;  %11526 = vrot.lane.b32.xlu0 %v12399_v14, %s15599_s27 }
 0x390   : > { %9589 = vmatmul.mubr.msk.f32.gmra.mrb[2].mxu1 %vm993_vm4, %v9587_v46  ;;  %v3798_v46 = vsel %vm15391_vm2, %v11013_v28, %v11014_v57  ;;  %v10688_v28 = vunpack.i.l.bf16 %v12611_v51  ;;  %v9972_v61 = vpack.c.bf16 %v10869_v21, %v10689_v45 }
 0x391   : > { %9963 = vmatpush1.bf16.msra.mxu1 %v9962_v41  ;;  %v11287_v29 = vpop.permute.xlu1 %11286  ;;  %v13199_v48 = vpop.permute.xlu0 %11176  ;;  %3759 = vmatprep.mubr.f32.mxu1 %v12853_v44 }
 0x392   : > { %15600 = vst [vmem:[#allocation80_spill] sm:$0xff] %v13199_v48  ;;  %9965 = vmatprep.subr.bf16.mxu1 %v9964_v2  ;;  %v11289_v38 = vunpack.i.h.bf16 %v11287_v29  ;;  %v11288_v58 = vunpack.i.l.bf16 %v11287_v29  ;;  %v11019_v29 = vunpack.i.h.bf16 %v12876_v39 }
 0x393   : > { %11536 = vrot.lane.b32.xlu1 %v12371_v5, %s15387_s8  ;;  %11541 = vrot.lane.b32.xlu0 %v12407_v17, %s15601_s28  ;;  %v9591_v5 = vld [vmem:[%s15250_s4 + $0x178] sm:$0xff]  ;;  %s15604_s28 = smov 54  }
 0x394   : > { %v3799_v41 = vsel %vm15391_vm2, %v11288_v58, %v11289_v38  ;;  %9592 = vmatmul.mubr.msk.f32.vlgmr.msra.gmra.mrb[0].mxu1 %vm993_vm4, %v9590_v11  ;;  %v9968_v43 = vpack.c.bf16 %v11289_v38, %v11014_v57  ;;  %v3916_v57 = vsel %vm15390_vm11, %v10868_v40, %v10869_v21  ;;  %v11018_v11 = vunpack.i.l.bf16 %v12876_v39  ;;  %v9594_v58 = vld [vmem:[%s15250_s4 + $0x180] sm:$0xff] }
 0x395   : > { %9967 = vmatpush1.bf16.msra.mxu1 %v9966_v4  ;;  %v13215_v50 = vpop.permute.xlu1 %11291  ;;  %v13217_v2 = vpop.permute.xlu0 %11201  ;;  %3765 = vmatprep.mubr.f32.mxu1 %v12853_v44  ;;  %v9970_v8 = vpack.c.bf16 %v3799_v41, %v3798_v46  ;;  %v10874_v39 = vunpack.i.h.bf16 %v12689_v49  ;;  %v10873_v46 = vunpack.i.l.bf16 %v12689_v49  ;;  %v10694_v49 = vunpack.i.h.bf16 %v12619_v53 }
 0x396   : > { %15602 = vst [vmem:[#allocation81_spill] sm:$0xff] %v13215_v50  ;;  %15603 = vst [vmem:[#allocation82_spill] sm:$0xff] %v13217_v2  ;;  %9969 = vmatprep.subr.bf16.mxu1 %v9968_v43  ;;  %v3917_v41 = vsel %vm15390_vm11, %v11018_v11, %v11019_v29  ;;  %v10693_v11 = vunpack.i.l.bf16 %v12619_v53  ;;  %vm5422_vm2 = vcmask 457728  }
 0x397   : > { %11551 = vrot.lane.b32.xlu1 %v12996_v1, %s15604_s28  ;;  %11546 = vrot.lane.b32.xlu0 %v12857_v30, %s15387_s8  ;;  %v3915_v30 = vsel %vm15390_vm11, %v10688_v28, %v10689_v45  ;;  %s15606_s8 = smov 110   ;;  %v9595_v28 = vld [vmem:[%s15250_s4 + $0x188] sm:$0xff] }
 0x398   : > { %9593 = vmatmul.mubr.msk.f32.gmra.mrb[2].mxu1 %vm993_vm4, %v9591_v5  ;;  %v9974_v21 = vpack.c.bf16 %v3916_v57, %v3915_v30 }
 0x399   : > { %9971 = vmatpush1.bf16.msra.mxu1 %v9970_v8  ;;  %v11302_v38 = vpop.permute.xlu1 %11301  ;;  %v13233_v51 = vpop.permute.xlu0 %11206  ;;  %3878 = vmatprep.mubr.f32.mxu1 %v12853_v44 }
 0x39a   : > { %15605 = vst [vmem:[#allocation83_spill] sm:$0xff] %v13233_v51  ;;  %9973 = vmatprep.subr.bf16.mxu1 %v9972_v61  ;;  %v11304_v4 = vunpack.i.h.bf16 %v11302_v38  ;;  %v11303_v40 = vunpack.i.l.bf16 %v11302_v38  ;;  %v11024_v61 = vunpack.i.h.bf16 %v12886_v42  ;;  %v11023_v38 = vunpack.i.l.bf16 %v12886_v42 }
 0x39b   : > { %11556 = vrot.lane.b32.xlu1 %v12389_v12, %s15606_s8  ;;  %11561 = vrot.lane.b32.xlu0 %v12407_v17, %s15607_s6  ;;  %s15610_s6 = smov 53   ;;  %v10879_v42 = vunpack.i.h.bf16 %v12697_v18 }
 0x39c   : > { %v3918_v43 = vsel %vm15390_vm11, %v11303_v40, %v11304_v4  ;;  %9596 = vmatmul.mubr.msk.f32.vlgmr.msra.gmra.mrb[0].mxu1 %vm993_vm4, %v9594_v58  ;;  %v9976_v5 = vpack.c.bf16 %v11304_v4, %v11019_v29  ;;  %v4035_v29 = vsel %vm15393_vm12, %v10873_v46, %v10874_v39  ;;  %v9980_v58 = vpack.c.bf16 %v10874_v39, %v10694_v49  ;;  %v9598_v4 = vld [vmem:[%s15250_s4 + $0x190] sm:$0xff] }
 0x39d   : > { %9975 = vmatpush1.bf16.msra.mxu1 %v9974_v21  ;;  %v13249_v8 = vpop.permute.xlu1 %11306  ;;  %v13251_v45 = vpop.permute.xlu0 %11221  ;;  %3884 = vmatprep.mubr.f32.mxu1 %v12853_v44  ;;  %v9978_v57 = vpack.c.bf16 %v3918_v43, %v3917_v41  ;;  %vm5291_vm11 = vcmask 465920   ;;  %v10878_v46 = vunpack.i.l.bf16 %v12697_v18  ;;  %v4036_v41 = vsel %vm15393_vm12, %v11023_v38, %v11024_v61  ;;  %v12035_v38 = vld [vmem:[#allocation2 + $0x20] sm:$0xff] }
 0x39e   : > { %15608 = vst [vmem:[#allocation84_spill] sm:$0xff] %v13249_v8  ;;  %15609 = vst [vmem:[#allocation85_spill] sm:$0xff] %v13251_v45  ;;  %9977 = vmatprep.subr.bf16.mxu1 %v9976_v5  ;;  %v15621_v8 = vld [vmem:[#allocation32_spill] sm:$0xff] }
 0x39f   : > { %11566 = vrot.lane.b32.xlu1 %v12996_v1, %s15610_s6  ;;  %11576 = vrot.lane.b32.xlu0 %v12924_v20, %s15611_s7  ;;  %v4034_v20 = vsel %vm15393_vm12, %v10693_v11, %v10694_v49  ;;  %s15613_s6 = smov 122   ;;  %v9599_v49 = vld [vmem:[%s15250_s4 + $0x198] sm:$0xff]  ;;  %v12034_v11 = vld [vmem:[#allocation2 + $0x8] sm:$0xff]  ;;  %v10884_v50 = vunpack.i.h.bf16 %v15621_v8 }
 0x3a0   : > { %9597 = vmatmul.mubr.msk.f32.gmra.mrb[2].mxu1 %vm993_vm4, %v9595_v28  ;;  %v9982_v39 = vpack.c.bf16 %v4035_v29, %v4034_v20  ;;  %v13292_v29 = vpack.i.bf16 %v12853_v44, %v12034_v11 }
 0x3a1   : > { %9979 = vmatpush1.bf16.msra.mxu1 %v9978_v57  ;;  %v11312_v30 = vpop.permute.xlu1 %11311  ;;  %v13267_v53 = vpop.permute.xlu0 %11236  ;;  %3997 = vmatprep.mubr.f32.mxu1 %v12853_v44 }
 0x3a2   : > { %15612 = vst [vmem:[#allocation86_spill] sm:$0xff] %v13267_v53  ;;  %9981 = vmatprep.subr.bf16.mxu1 %v9980_v58  ;;  %v11314_v40 = vunpack.i.h.bf16 %v11312_v30  ;;  %v11313_v21 = vunpack.i.l.bf16 %v11312_v30  ;;  %v10699_v58 = vunpack.i.h.bf16 %v12627_v55  ;;  %v10698_v30 = vunpack.i.l.bf16 %v12627_v55 }
 0x3a3   : > { %11571 = vrot.lane.b32.xlu1 %v12361_v0, %s15611_s7  ;;  %11581 = vrot.lane.b32.xlu0 %v12407_v17, %s15613_s6 }
 0x3a4   : > { %v4037_v43 = vsel %vm15393_vm12, %v11313_v21, %v11314_v40  ;;  %9600 = vmatmul.mubr.msk.f32.vlgmr.msra.gmra.mrb[0].mxu1 %vm993_vm4, %v9598_v4  ;;  %v9984_v5 = vpack.c.bf16 %v11314_v40, %v11024_v61  ;;  %v13295_v61 = vpack.i.bf16 %v12853_v44, %v12035_v38  ;;  %vm5684_vm12 = vcmask 441344   ;;  %v12036_v4 = vld [vmem:[#allocation2 + $0x38] sm:$0xff]  ;;  %v12037_v21 = vld [vmem:[#allocation2 + $0x50] sm:$0xff] }
 0x3a5   : > { %9983 = vmatpush1.bf16.msra.mxu1 %v9982_v39  ;;  %v13283_v28 = vpop.permute.xlu1 %11316  ;;  %v13285_v57 = vpop.permute.xlu0 %11261  ;;  %4003 = vmatprep.mubr.f32.mxu1 %v12853_v44  ;;  %v9986_v18 = vpack.c.bf16 %v4037_v43, %v4036_v41  ;;  %v13300_v20 = vpack.i.bf16 %v12853_v44, %v12036_v4  ;;  %v10744_v40 = vunpack.i.h.bf16 %v12525_v22  ;;  %v13308_v55 = vpack.i.bf16 %v12853_v44, %v12037_v21  ;;  %v15620_v4 = vld [vmem:[#allocation18_spill] sm:$0xff] }
 0x3a6   : > { %15614 = vst [vmem:[#allocation87_spill] sm:$0xff] %v13283_v28  ;;  %15615 = vst [vmem:[#allocation88_spill] sm:$0xff] %v13285_v57  ;;  %9985 = vmatprep.subr.bf16.mxu1 %v9984_v5  ;;  %v4154_v39 = vsel %vm4152_vm13, %v10878_v46, %v10879_v42  ;;  %v11029_v41 = vunpack.i.h.bf16 %v12903_v32  ;;  %v11028_v43 = vunpack.i.l.bf16 %v12903_v32  ;;  %v9988_v5 = vpack.c.bf16 %v10879_v42, %v10699_v58  ;;  %v15618_v57 = vld [vmem:[#allocation17_spill] sm:$0xff]  ;;  %v9602_v32 = vld [vmem:[%s15250_s4 + $0x1a0] sm:$0xff] }
 0x3a7   : > { %15616 = vst [vmem:[#allocation89_spill] sm:$0xff] %v13300_v20  ;;  %11591 = vrot.lane.b32.xlu1 %v12996_v1, %s15617_s23  ;;  %11586 = vrot.lane.b32.xlu0 %v12350_v60, %s12098_s14  ;;  %v10754_v38 = vunpack.i.h.bf16 %v12533_v24  ;;  %v10764_v28 = vunpack.i.h.bf16 %v15618_v57  ;;  %v4153_v46 = vsel %vm4152_vm13, %v10698_v30, %v10699_v58  ;;  %v10774_v53 = vunpack.i.h.bf16 %v15620_v4  ;;  %s15629_s23 = smov 44  }
 0x3a8   : > { %9601 = vmatmul.mubr.msk.f32.gmra.mrb[2].mxu1 %vm993_vm4, %v9599_v49  ;;  %v10883_v42 = vunpack.i.l.bf16 %v15621_v8  ;;  %v4155_v58 = vsel %vm4152_vm13, %v11028_v43, %v11029_v41  ;;  %v9603_v8 = vld [vmem:[%s15250_s4 + $0x1a8] sm:$0xff] }
 0x3a9   : > { %9987 = vmatpush1.bf16.msra.mxu1 %v9986_v18  ;;  %v11332_v21 = vpop.permute.xlu1 %11331  ;;  %v13318_v45 = vpop.permute.xlu0 %11266  ;;  %4116 = vmatprep.mubr.f32.mxu1 %v12853_v44 }
 0x3aa   : > { %15619 = vst [vmem:[#allocation17_spill] sm:$0xff] %v13318_v45  ;;  %9989 = vmatprep.subr.bf16.mxu1 %v9988_v5  ;;  %v11334_v49 = vunpack.i.h.bf16 %v11332_v21  ;;  %v11333_v11 = vunpack.i.l.bf16 %v11332_v21  ;;  %v9990_v45 = vpack.c.bf16 %v4154_v39, %v4153_v46  ;;  %v15622_v21 = vld [vmem:[#allocation23_spill] sm:$0xff]  ;;  %v15628_v46 = vld [vmem:[#allocation21_spill] sm:$0xff] }
 0x3ab   : > { %11596 = vrot.lane.b32.xlu1 %v12375_v6, %s12098_s14  ;;  %11601 = vrot.lane.b32.xlu0 %v12407_v17, %s15552_s15  ;;  %v10704_v18 = vunpack.i.h.bf16 %v15622_v21  ;;  %v10703_v51 = vunpack.i.l.bf16 %v15622_v21  ;;  %v11034_v21 = vunpack.i.h.bf16 %v12919_v25 }
 0x3ac   : > { %v4156_v30 = vsel %vm4152_vm13, %v11333_v11, %v11334_v49  ;;  %9604 = vmatmul.mubr.msk.f32.vlgmr.msra.gmra.mrb[0].mxu1 %vm993_vm4, %v9602_v32  ;;  %v9992_v5 = vpack.c.bf16 %v11334_v49, %v11029_v41  ;;  %vm15453_vm13 = vcmask 564224   ;;  %v15625_v41 = vunpack.i.l.bf16 %v12525_v22  ;;  %v15627_v32 = vld [vmem:[#allocation20_spill] sm:$0xff] }
 0x3ad   : > { %9991 = vmatpush1.bf16.msra.mxu1 %v9990_v45  ;;  %v13339_v2 = vpop.permute.xlu1 %11336  ;;  %v13341_v62 = vpop.permute.xlu0 %11281  ;;  %4122 = vmatprep.mubr.f32.mxu1 %v12853_v44  ;;  %v9994_v39 = vpack.c.bf16 %v4156_v30, %v4155_v58  ;;  %v15626_v45 = vunpack.i.l.bf16 %v12533_v24  ;;  %v10793_v44 = vunpack.i.l.bf16 %v15627_v32  ;;  %v10798_v49 = vunpack.i.l.bf16 %v15628_v46 }
 0x3ae   : > { %15623 = vst [vmem:[#allocation32_spill] sm:$0xff] %v13339_v2  ;;  %15624 = vst [vmem:[#allocation23_spill] sm:$0xff] %v13341_v62  ;;  %9993 = vmatprep.subr.bf16.mxu1 %v9992_v5  ;;  %v13350_v43 = vsel %vm5291_vm11, %v15625_v41, %v10744_v40  ;;  %v15630_v58 = vunpack.i.l.bf16 %v15618_v57  ;;  %v15631_v30 = vunpack.i.l.bf16 %v15620_v4  ;;  %v4273_v5 = vsel %vm4271_vm10, %v10883_v42, %v10884_v50  ;;  %v15633_v62 = vld [vmem:[#allocation22_spill] sm:$0xff] }
 0x3af   : > { %v13355_v11 = vsel %vm5422_vm2, %v15626_v45, %v10754_v38  ;;  %11611 = vrot.lane.b32.xlu1 %v12996_v1, %s15629_s23  ;;  %11606 = vrot.lane.b32.xlu0 %v12399_v14, %s15611_s7  ;;  %v11033_v41 = vunpack.i.l.bf16 %v12919_v25  ;;  %v9996_v45 = vpack.c.bf16 %v10884_v50, %v10704_v18  ;;  %v10803_v2 = vunpack.i.l.bf16 %v15633_v62  ;;  %v13383_v42 = vld [vmem:[#allocation2 + $0x10] sm:$0xff]  ;;  %v15636_v50 = vld [vmem:[#allocation25_spill] sm:$0xff]  ;;  %s12099_s23 = smov 39  }
 0x3b0   : > { %v13366_v40 = vsel %vm5553_vm14, %v15630_v58, %v10764_v28  ;;  %v13371_v38 = vsel %vm5684_vm12, %v15631_v30, %v10774_v53  ;;  %9605 = vmatmul.mubr.msk.f32.gmra.mrb[2].mxu1 %vm993_vm4, %v9603_v8  ;;  %v4272_v13 = vsel %vm4271_vm10, %v10703_v51, %v10704_v18  ;;  %v15634_v28 = vld [vmem:[#allocation24_spill] sm:$0xff]  ;;  %v9606_v25 = vld [vmem:[%s15250_s4 + $0x1b0] sm:$0xff]  ;;  %v10713_v51 = vunpack.i.l.bf16 %v15636_v50 }
 0x3b1   : > { %15632 = vst [vmem:[#allocation20_spill] sm:$0xff] %v13371_v38  ;;  %v10709_v58 = vunpack.i.h.bf16 %v15634_v28  ;;  %v10708_v48 = vunpack.i.l.bf16 %v15634_v28  ;;  %9995 = vmatpush1.bf16.msra.mxu1 %v9994_v39  ;;  %v11347_v53 = vpop.permute.xlu1 %11346  ;;  %v13381_v30 = vpop.permute.xlu0 %11296  ;;  %4235 = vmatprep.mubr.f32.mxu1 %v13383_v42  ;;  %v15637_v28 = vld [vmem:[#allocation26_spill] sm:$0xff]  ;;  %v9998_v8 = vpack.c.bf16 %v4273_v5, %v4272_v13  ;;  %v10788_v5 = vunpack.i.l.bf16 %v15639_v54 }
 0x3b2   : > { %15635 = vst [vmem:[#allocation21_spill] sm:$0xff] %v13381_v30  ;;  %9997 = vmatprep.subr.bf16.mxu1 %v9996_v45  ;;  %v11349_v18 = vunpack.i.h.bf16 %v11347_v53  ;;  %v11348_v56 = vunpack.i.l.bf16 %v11347_v53  ;;  %v10718_v37 = vunpack.i.l.bf16 %v15637_v28  ;;  %v15638_v30 = vld [vmem:[#allocation34_spill] sm:$0xff]  ;;  %v4274_v53 = vsel %vm4271_vm10, %v11033_v41, %v11034_v21 }
 0x3b3   : > { %v10889_v33 = vunpack.i.h.bf16 %v15638_v30  ;;  %11616 = vrot.lane.b32.xlu1 %v13292_v29, %s12099_s23  ;;  %11621 = vrot.lane.b32.xlu0 %v12407_v17, %s15562_s17  ;;  %v10888_v45 = vunpack.i.l.bf16 %v15638_v30  ;;  %v15644_v30 = vunpack.i.l.bf16 %v12533_v24  ;;  %v15647_v24 = vunpack.i.h.bf16 %v15637_v28 }
 0x3b4   : > { %v4275_v39 = vsel %vm4271_vm10, %v11348_v56, %v11349_v18  ;;  %9608 = vmatmul.mubr.msk.f32.vlgmr.msra.gmra.mrb[0].mxu1 %vm993_vm4, %v9606_v25  ;;  %v10000_v3 = vpack.c.bf16 %v11349_v18, %v11034_v21  ;;  %v9607_v56 = vld [vmem:[%s15250_s4 + $0x1b8] sm:$0xff]  ;;  %v15643_v21 = vunpack.i.l.bf16 %v12525_v22  ;;  %vm1179_vm10 = vcmask 1031168  }
 0x3b5   : > { %9999 = vmatpush1.bf16.msra.mxu1 %v9998_v8  ;;  %v13405_v15 = vpop.permute.xlu1 %11351  ;;  %v13407_v26 = vpop.permute.xlu0 %11321  ;;  %4241 = vmatprep.mubr.f32.mxu1 %v13383_v42  ;;  %v10002_v13 = vpack.c.bf16 %v4275_v39, %v4274_v53  ;;  %v13422_v25 = vsel %vm5422_vm2, %v10798_v49, %v15644_v30  ;;  %v15645_v8 = vunpack.i.l.bf16 %v15618_v57  ;;  %v4391_v22 = vsel %vm4390_vm9, %v10708_v48, %v10709_v58 }
 0x3b6   : > { %15641 = vst [vmem:[#allocation22_spill] sm:$0xff] %v13405_v15  ;;  %15642 = vst [vmem:[#allocation24_spill] sm:$0xff] %v13407_v26  ;;  %v13417_v41 = vsel %vm5291_vm11, %v10793_v44, %v15643_v21  ;;  %10001 = vmatprep.subr.bf16.mxu1 %v10000_v3  ;;  %v15646_v44 = vunpack.i.h.bf16 %v15636_v50  ;;  %v13439_v49 = vsel %vm15453_vm13, %v10718_v37, %v15647_v24  ;;  %v11039_v48 = vunpack.i.h.bf16 %v12941_v16 }
 0x3b7   : > { %v13427_v18 = vsel %vm5553_vm14, %v10803_v2, %v15645_v8  ;;  %11631 = vrot.lane.b32.xlu1 %v12996_v1, %s15571_s0  ;;  %11626 = vrot.lane.b32.xlu0 %v13295_v61, %s12099_s23  ;;  %v4392_v3 = vsel %vm4390_vm9, %v10888_v45, %v10889_v33  ;;  %v11038_v2 = vunpack.i.l.bf16 %v12941_v16  ;;  %v10004_v57 = vpack.c.bf16 %v10889_v33, %v10709_v58  ;;  %v15649_v8 = vld [vmem:[#allocation29_spill] sm:$0xff]  ;;  %v9610_v16 = vld [vmem:[%s15250_s4 + $0x1c0] sm:$0xff]  ;;  %s12101_s0 = smov 38  }
 0x3b8   : > { %v13434_v53 = vsel %vm15464_vm8, %v10713_v51, %v15646_v44  ;;  %9609 = vmatmul.mubr.msk.f32.gmra.mrb[2].mxu1 %vm993_vm4, %v9607_v56  ;;  %v13452_v37 = vsel %vm15451_vm7, %v10723_v27, %v15430_v47  ;;  %v15648_v51 = vld [vmem:[#allocation28_spill] sm:$0xff]  ;;  %v10734_v44 = vunpack.i.h.bf16 %v15649_v8  ;;  %v15651_v27 = vld [vmem:[#allocation30_spill] sm:$0xff]  ;;  %v10006_v26 = vpack.c.bf16 %v4392_v3, %v4391_v22 }
 0x3b9   : > { %v10729_v21 = vunpack.i.h.bf16 %v15648_v51  ;;  %10003 = vmatpush1.bf16.msra.mxu1 %v10002_v13  ;;  %v11362_v45 = vpop.permute.xlu1 %11361  ;;  %v13457_v24 = vpop.permute.xlu0 %11326  ;;  %4354 = vmatprep.mubr.f32.mxu1 %v13383_v42  ;;  %v10738_v58 = vunpack.i.l.bf16 %v15651_v27  ;;  %v10739_v39 = vunpack.i.h.bf16 %v15651_v27  ;;  %v15652_v47 = vld [vmem:[#allocation36_spill] sm:$0xff]  ;;  %v4393_v15 = vsel %vm4390_vm9, %v11038_v2, %v11039_v48 }
 0x3ba   : > { %15650 = vst [vmem:[#allocation25_spill] sm:$0xff] %v13457_v24  ;;  %10005 = vmatprep.subr.bf16.mxu1 %v10004_v57  ;;  %v11364_v56 = vunpack.i.h.bf16 %v11362_v45  ;;  %v11363_v52 = vunpack.i.l.bf16 %v11362_v45  ;;  %v10894_v13 = vunpack.i.h.bf16 %v15652_v47  ;;  %v10893_v30 = vunpack.i.l.bf16 %v15652_v47  ;;  %v15653_v24 = vld [vmem:[#allocation31_spill] sm:$0xff] }
 0x3bb   : > { %11636 = vrot.lane.b32.xlu1 %v12389_v12, %s12098_s14  ;;  %11641 = vrot.lane.b32.xlu0 %v12407_v17, %s15577_s1  ;;  %v10748_v27 = vunpack.i.l.bf16 %v15653_v24  ;;  %v13488_v3 = vsel %vm5160_vm3, %v10788_v5, %v10738_v58  ;;  %v15670_v7 = vunpack.i.l.bf16 %v15648_v51 }
 0x3bc   : > { %v4394_v57 = vsel %vm4390_vm9, %v11363_v52, %v11364_v56  ;;  %9612 = vmatmul.mubr.msk.f32.vlgmr.msra.gmra.mrb[0].mxu1 %vm993_vm4, %v9610_v16  ;;  %v10008_v45 = vpack.c.bf16 %v11364_v56, %v11039_v48  ;;  %v9611_v52 = vld [vmem:[%s15250_s4 + $0x1c8] sm:$0xff]  ;;  %v15657_v48 = vld [vmem:[#allocation35_spill] sm:$0xff]  ;;  %v15658_v16 = vunpack.i.l.bf16 %v15648_v51  ;;  %v15659_v56 = vunpack.i.l.bf16 %v15649_v8 }
 0x3bd   : > { %10007 = vmatpush1.bf16.msra.mxu1 %v10006_v26  ;;  %v13479_v9 = vpop.permute.xlu1 %11366  ;;  %v13481_v19 = vpop.permute.xlu0 %11341  ;;  %4360 = vmatprep.mubr.f32.mxu1 %v13383_v42  ;;  %v10010_v22 = vpack.c.bf16 %v4394_v57, %v4393_v15  ;;  %v10768_v33 = vunpack.i.l.bf16 %v15657_v48  ;;  %v4511_v15 = vsel %vm15464_vm8, %v10893_v30, %v10894_v13  ;;  %v15660_v57 = vld [vmem:[#allocation37_spill] sm:$0xff]  ;;  %v15663_v30 = vunpack.i.h.bf16 %v15653_v24 }
 0x3be   : > { %15655 = vst [vmem:[#allocation26_spill] sm:$0xff] %v13479_v9  ;;  %15656 = vst [vmem:[#allocation34_spill] sm:$0xff] %v13481_v19  ;;  %10009 = vmatprep.subr.bf16.mxu1 %v10008_v45  ;;  %v13494_v26 = vsel %vm15463_vm0, %v15658_v16, %v10729_v21  ;;  %v13499_v47 = vsel %vm5029_vm15, %v15659_v56, %v10734_v44  ;;  %v10778_v5 = vunpack.i.l.bf16 %v15660_v57  ;;  %v15661_v21 = vunpack.i.h.bf16 %v15636_v50  ;;  %v15662_v16 = vld [vmem:[#allocation38_spill] sm:$0xff] }
 0x3bf   : > { %11646 = vrot.lane.b32.xlu1 %v12996_v1, %s15578_s3  ;;  %11656 = vrot.lane.b32.xlu0 %v13300_v20, %s12099_s23  ;;  %v10899_v2 = vunpack.i.h.bf16 %v15662_v16  ;;  %v10898_v44 = vunpack.i.l.bf16 %v15662_v16  ;;  %v11044_v56 = vunpack.i.h.bf16 %v12957_v59  ;;  %v11043_v19 = vunpack.i.l.bf16 %v12957_v59  ;;  %v9614_v59 = vld [vmem:[%s15250_s4 + $0x1d0] sm:$0xff]  ;;  %s12100_s3 = smov 108  }
 0x3c0   : > { %v10012_v45 = vpack.c.bf16 %v10894_v13, %v15661_v21  ;;  %9613 = vmatmul.mubr.msk.f32.gmra.mrb[2].mxu1 %vm993_vm4, %v9611_v52  ;;  %v13518_v9 = vsel %vm1179_vm10, %v10748_v27, %v15663_v30  ;;  %v13523_v50 = vsel %vm1298_vm6, %v10758_v31, %v15664_v34  ;;  %v15665_v13 = vld [vmem:[#allocation39_spill] sm:$0xff]  ;;  %v13533_v27 = vsel %vm5160_vm3, %v10738_v58, %v10739_v39  ;;  %v15667_v52 = vld [vmem:[#allocation40_spill] sm:$0xff] }
 0x3c1   : > { %v10783_v21 = vunpack.i.l.bf16 %v15665_v13  ;;  %10011 = vmatpush1.bf16.msra.mxu1 %v10010_v22  ;;  %v11372_v16 = vpop.permute.xlu1 %11371  ;;  %v13526_v4 = vpop.permute.xlu0 %11356  ;;  %4473 = vmatprep.mubr.f32.mxu1 %v13383_v42  ;;  %v10904_v30 = vunpack.i.h.bf16 %v15667_v52  ;;  %v10903_v34 = vunpack.i.l.bf16 %v15667_v52  ;;  %v15668_v22 = vunpack.i.h.bf16 %v15657_v48  ;;  %v15673_v52 = vld [vmem:[#allocation42_spill] sm:$0xff] }
 0x3c2   : > { %15666 = vst [vmem:[#allocation19_spill] sm:$0xff] %v13526_v4  ;;  %10013 = vmatprep.subr.bf16.mxu1 %v10012_v45  ;;  %v11374_v31 = vunpack.i.h.bf16 %v11372_v16  ;;  %v11373_v63 = vunpack.i.l.bf16 %v11372_v16  ;;  %v10779_v20 = vunpack.i.h.bf16 %v15660_v57  ;;  %v13546_v38 = vsel %vm15463_vm0, %v10778_v5, %v15670_v7  ;;  %v15672_v5 = vld [vmem:[#allocation41_spill] sm:$0xff] }
 0x3c3   : > { %v13540_v4 = vsel %vm1417_vm5, %v10768_v33, %v15668_v22  ;;  %11651 = vrot.lane.b32.xlu1 %v12361_v0, %s12099_s23  ;;  %11661 = vrot.lane.b32.xlu0 %v12407_v17, %s15588_s25  ;;  %v10014_v39 = vpack.c.bf16 %v4511_v15, %v13434_v53  ;;  %v4630_v58 = vsel %vm15453_vm13, %v10898_v44, %v10899_v2  ;;  %v15671_v7 = vunpack.i.l.bf16 %v15649_v8 }
 0x3c4   : > { %15669 = vst [vmem:[#allocation27_spill] sm:$0xff] %v13540_v4  ;;  %v4512_v33 = vsel %vm15464_vm8, %v11043_v19, %v11044_v56  ;;  %v4513_v45 = vsel %vm15464_vm8, %v11373_v63, %v11374_v31  ;;  %9616 = vmatmul.mubr.msk.f32.vlgmr.msra.gmra.mrb[0].mxu1 %vm993_vm4, %v9614_v59  ;;  %v10016_v51 = vpack.c.bf16 %v11374_v31, %v11044_v56  ;;  %v10908_v16 = vunpack.i.l.bf16 %v15672_v5  ;;  %v9615_v63 = vld [vmem:[%s15250_s4 + $0x1d8] sm:$0xff] }
 0x3c5   : > { %v13560_v57 = vsel %vm5029_vm15, %v10783_v21, %v15671_v7  ;;  %v10923_v22 = vunpack.i.l.bf16 %v15673_v52  ;;  %10015 = vmatpush1.bf16.msra.mxu1 %v10014_v39  ;;  %v13564_v53 = vpop.permute.xlu1 %11376  ;;  %v13566_v15 = vpop.permute.xlu0 %11381  ;;  %4479 = vmatprep.mubr.f32.mxu1 %v13383_v42  ;;  %v10018_v19 = vpack.c.bf16 %v4513_v45, %v4512_v33  ;;  %v13573_v8 = vsel %vm15451_vm7, %v10903_v34, %v10904_v30  ;;  %v15677_v31 = vld [vmem:[#allocation43_spill] sm:$0xff] }
 0x3c6   : > { %15674 = vst [vmem:[#allocation28_spill] sm:$0xff] %v13564_v53  ;;  %15675 = vst [vmem:[#allocation29_spill] sm:$0xff] %v13566_v15  ;;  %v10909_v44 = vunpack.i.h.bf16 %v15672_v5  ;;  %v10924_v56 = vunpack.i.h.bf16 %v15673_v52  ;;  %10017 = vmatprep.subr.bf16.mxu1 %v10016_v51  ;;  %v15676_v21 = vunpack.i.h.bf16 %v15637_v28  ;;  %v10914_v39 = vunpack.i.h.bf16 %v15677_v31  ;;  %v15678_v15 = vld [vmem:[#allocation44_spill] sm:$0xff] }
 0x3c7   : > { %v10913_v7 = vunpack.i.l.bf16 %v15677_v31  ;;  %v10934_v53 = vunpack.i.h.bf16 %v15678_v15  ;;  %v10933_v0 = vunpack.i.l.bf16 %v15678_v15  ;;  %11671 = vrot.lane.b32.xlu1 %v12996_v1, %s15599_s27  ;;  %11666 = vrot.lane.b32.xlu0 %v12350_v60, %s12100_s3  ;;  %v11049_v34 = vunpack.i.h.bf16 %v12975_v10  ;;  %s15882_s27 = smov 99  }
 0x3c8   : > { %v10020_v59 = vpack.c.bf16 %v10899_v2, %v15676_v21  ;;  %v11048_v28 = vunpack.i.l.bf16 %v12975_v10  ;;  %9617 = vmatmul.mubr.msk.f32.gmra.mrb[2].mxu1 %vm993_vm4, %v9615_v63  ;;  %v10022_v2 = vpack.c.bf16 %v4630_v58, %v13439_v49  ;;  %v15679_v33 = vunpack.i.h.bf16 %v15640_v36  ;;  %v9618_v36 = vld [vmem:[%s15250_s4 + $0x1e0] sm:$0xff]  ;;  %v15691_v49 = vld [vmem:[#allocation50_spill] sm:$0xff] }
 0x3c9   : > { %v10784_v51 = vunpack.i.h.bf16 %v15665_v13  ;;  %v13595_v5 = vsel %vm15463_vm0, %v10779_v20, %v10908_v16  ;;  %v15680_v52 = vunpack.i.h.bf16 %v15627_v32  ;;  %10019 = vmatpush1.bf16.msra.mxu1 %v10018_v19  ;;  %v11392_v15 = vpop.permute.xlu1 %11391  ;;  %v13602_v10 = vpop.permute.xlu0 %11386  ;;  %4592 = vmatprep.mubr.f32.mxu1 %v13383_v42  ;;  %v13611_v32 = vsel %vm15463_vm0, %v10908_v16, %v10909_v44  ;;  %v15682_v44 = vld [vmem:[#allocation45_spill] sm:$0xff] }
 0x3ca   : > { %v10028_v45 = vpack.c.bf16 %v10904_v30, %v15679_v33  ;;  %15681 = vst [vmem:[#allocation30_spill] sm:$0xff] %v13602_v10  ;;  %10021 = vmatprep.subr.bf16.mxu1 %v10020_v59  ;;  %v11394_v20 = vunpack.i.h.bf16 %v11392_v15  ;;  %v11393_v13 = vunpack.i.l.bf16 %v11392_v15  ;;  %v13614_v30 = vsel %vm5291_vm11, %v10923_v22, %v10924_v56  ;;  %v15683_v59 = vld [vmem:[#allocation46_spill] sm:$0xff] }
 0x3cb   : > { %v13600_v60 = vsel %vm5291_vm11, %v15680_v52, %v10923_v22  ;;  %v10799_v58 = vunpack.i.h.bf16 %v15628_v46  ;;  %v13618_v63 = vsel %vm5029_vm15, %v10784_v51, %v10913_v7  ;;  %11676 = vrot.lane.b32.xlu1 %v12375_v6, %s12100_s3  ;;  %11681 = vrot.lane.b32.xlu0 %v12407_v17, %s15606_s8  ;;  %v13625_v19 = vsel %vm5029_vm15, %v10913_v7, %v10914_v39  ;;  %v9619_v7 = vld [vmem:[%s15250_s4 + $0x1e8] sm:$0xff] }
 0x3cc   : > { %v13628_v16 = vsel %vm5422_vm2, %v10933_v0, %v10934_v53  ;;  %v10918_v22 = vunpack.i.l.bf16 %v15682_v44  ;;  %v4631_v56 = vsel %vm15453_vm13, %v11048_v28, %v11049_v34  ;;  %v4632_v46 = vsel %vm15453_vm13, %v11393_v13, %v11394_v20  ;;  %9620 = vmatmul.mubr.msk.f32.vlgmr.msra.gmra.mrb[0].mxu1 %vm993_vm4, %v9618_v36 }
 0x3cd   : > { %v10024_v21 = vpack.c.bf16 %v11394_v20, %v11049_v34  ;;  %v10919_v6 = vunpack.i.h.bf16 %v15682_v44  ;;  %v10944_v31 = vunpack.i.h.bf16 %v15683_v59  ;;  %v10943_v33 = vunpack.i.l.bf16 %v15683_v59  ;;  %10023 = vmatpush1.bf16.msra.mxu1 %v10022_v2  ;;  %v13637_v39 = vpop.permute.xlu1 %11396  ;;  %v13639_v53 = vpop.permute.xlu0 %11401  ;;  %4598 = vmatprep.mubr.f32.mxu1 %v13383_v42  ;;  %v15690_v20 = vld [vmem:[#allocation49_spill] sm:$0xff] }
 0x3ce   : > { %15684 = vst [vmem:[#allocation36_spill] sm:$0xff] %v13637_v39  ;;  %15685 = vst [vmem:[#allocation31_spill] sm:$0xff] %v13639_v53  ;;  %v10026_v28 = vpack.c.bf16 %v4632_v46, %v4631_v56  ;;  %v10804_v15 = vunpack.i.h.bf16 %v15633_v62  ;;  %v13655_v36 = vsel %vm5422_vm2, %v10799_v58, %v10933_v0  ;;  %v15686_v44 = vunpack.i.h.bf16 %v15639_v54  ;;  %v15687_v46 = vld [vmem:[#allocation47_spill] sm:$0xff]  ;;  %v15719_v39 = vld [vmem:[#allocation61_spill] sm:$0xff] }
 0x3cf   : > { %10025 = vmatprep.subr.bf16.mxu1 %v10024_v21  ;;  %11691 = vrot.lane.b32.xlu1 %v12996_v1, %s15611_s7  ;;  %v11054_v0 = vunpack.i.h.bf16 %v12991_v35  ;;  %v11053_v62 = vunpack.i.l.bf16 %v12991_v35  ;;  %v10929_v21 = vunpack.i.h.bf16 %v15687_v46  ;;  %v9622_v35 = vld [vmem:[%s15250_s4 + $0x1f0] sm:$0xff]  ;;  %v15689_v1 = vld [vmem:[#allocation48_spill] sm:$0xff]  ;;  %v10939_v51 = vunpack.i.h.bf16 %v15690_v20 }
 0x3d0   : > { %11686 = vrot.lane.b32.xlu0 %v12399_v14, %s12099_s23  ;;  %v13668_v56 = vsel %vm5160_vm3, %v15686_v44, %v10918_v22  ;;  %9621 = vmatmul.mubr.msk.f32.gmra.mrb[2].mxu1 %vm993_vm4, %v9619_v7  ;;  %v13676_v58 = vsel %vm5553_vm14, %v10804_v15, %v10943_v33  ;;  %v13686_v7 = vsel %vm5160_vm3, %v10918_v22, %v10919_v6  ;;  %v10928_v15 = vunpack.i.l.bf16 %v15687_v46 }
 0x3d1   : > { %10027 = vmatpush1.bf16.msra.mxu1 %v10026_v28  ;;  %v11407_v59 = vpop.permute.xlu1 %11406  ;;  %v13679_v54 = vpop.permute.xlu0 %11416  ;;  %4711 = vmatprep.mubr.f32.mxu1 %v13383_v42  ;;  %v13689_v44 = vsel %vm5553_vm14, %v10943_v33, %v10944_v31  ;;  %v10954_v52 = vunpack.i.h.bf16 %v15689_v1  ;;  %v10938_v34 = vunpack.i.l.bf16 %v15690_v20  ;;  %v10948_v22 = vunpack.i.l.bf16 %v15691_v49  ;;  %v15692_v33 = vld [vmem:[#allocation52_spill] sm:$0xff] }
 0x3d2   : > { %15688 = vst [vmem:[#allocation33_spill] sm:$0xff] %v13679_v54  ;;  %10029 = vmatprep.subr.bf16.mxu1 %v10028_v45  ;;  %v11409_v28 = vunpack.i.h.bf16 %v11407_v59  ;;  %v11408_v2 = vunpack.i.l.bf16 %v11407_v59  ;;  %v10949_v54 = vunpack.i.h.bf16 %v15691_v49  ;;  %v4750_v45 = vsel %vm15451_vm7, %v11053_v62, %v11054_v0  ;;  %v9623_v49 = vld [vmem:[%s15250_s4 + $0x1f8] sm:$0xff] }
 0x3d3   : > { %11696 = vrot.lane.b32.xlu1 %v12389_v12, %s12100_s3  ;;  %v11059_v46 = vunpack.i.h.bf16 %v15692_v33  ;;  %v11058_v20 = vunpack.i.l.bf16 %v15692_v33  ;;  %v15693_v59 = vpack.c.bf16 %v13573_v8, %v13452_v37  ;;  %v15696_v33 = vunpack.i.l.bf16 %v15689_v1 }
 0x3d4   : > { %11701 = vrot.lane.b32.xlu0 %v12407_v17, %s12098_s14  ;;  %v4751_v6 = vsel %vm15451_vm7, %v11408_v2, %v11409_v28  ;;  %9624 = vmatmul.mubr.msk.f32.vlgmr.msra.gmra.mrb[0].mxu1 %vm993_vm4, %v9622_v35  ;;  %v10032_v31 = vpack.c.bf16 %v11409_v28, %v11054_v0  ;;  %v13723_v28 = vsel %vm1179_vm10, %v10928_v15, %v10929_v21  ;;  %vm1536_vm7 = vcmask 1006592  }
 0x3d5   : > { %10031 = vmatpush1.bf16.msra.mxu1 %v15693_v59  ;;  %v13710_v12 = vpop.permute.xlu1 %11411  ;;  %v11432_v13 = vpop.permute.xlu0 %11431  ;;  %4717 = vmatprep.mubr.f32.mxu1 %v13383_v42  ;;  %v10034_v2 = vpack.c.bf16 %v4751_v6, %v4750_v45  ;;  %v13734_v6 = vsel %vm1298_vm6, %v10938_v34, %v10939_v51  ;;  %v15698_v59 = vld [vmem:[#allocation53_spill] sm:$0xff]  ;;  %v15703_v37 = vunpack.i.h.bf16 %v15653_v24  ;;  %vm5815_vm13 = vcmask 433152  }
 0x3d6   : > { %15694 = vst [vmem:[#allocation35_spill] sm:$0xff] %v13710_v12  ;;  %v11434_v62 = vunpack.i.h.bf16 %v11432_v13  ;;  %v11433_v35 = vunpack.i.l.bf16 %v11432_v13  ;;  %10033 = vmatprep.subr.bf16.mxu1 %v10032_v31  ;;  %v13737_v31 = vsel %vm1417_vm5, %v10948_v22, %v10949_v54  ;;  %v11064_v13 = vunpack.i.h.bf16 %v15698_v59  ;;  %v15699_v45 = vld [vmem:[#allocation57_spill] sm:$0xff] }
 0x3d7   : > { %11706 = vrot.lane.b32.xlu1 %v13308_v55, %s12099_s23  ;;  %15695 = vst [vmem:[#allocation37_spill] sm:$0xff] %v13737_v31  ;;  %v11103_v8 = vunpack.i.l.bf16 %v15699_v45  ;;  %v13764_v0 = vpack.c.bf16 %v10929_v21, %v15703_v37  ;;  %v15706_v21 = vld [vmem:[#allocation51_spill] sm:$0xff]  ;;  %v15715_v37 = vld [vmem:[#allocation89_spill] sm:$0xff]  ;;  %v15725_v10 = vunpack.i.l.bf16 %v15689_v1  ;;  %vm5946_vm8 = vcmask 424960  }
 0x3d8   : > { %11716 = vrot.lane.b32.xlu0 %v13295_v61, %s12101_s0  ;;  %9625 = vmatmul.mubr.msk.f32.gmra.mrb[2].mxu1 %vm993_vm4, %v9623_v49  ;;  %v4906_v15 = vsel %vm15463_vm0, %v11433_v35, %v11434_v62  ;;  %v13744_v61 = vsel %vm5684_vm12, %v15696_v33, %v10954_v52  ;;  %v9626_v49 = vld [vmem:[%s15250_s4 + $0x200] sm:$0xff]  ;;  %v4904_v52 = vsel %vm15463_vm0, %v11058_v20, %v11059_v46  ;;  %v11104_v62 = vunpack.i.h.bf16 %v15699_v45 }
 0x3d9   : > { %15697 = vst [vmem:[#allocation38_spill] sm:$0xff] %v13744_v61  ;;  %10035 = vmatpush1.bf16.msra.mxu1 %v10034_v2  ;;  %v13749_v34 = vpop.permute.xlu1 %11421  ;;  %v13751_v22 = vpop.permute.xlu0 %11436  ;;  %4830 = vmatprep.mubr.f32.mxu1 %v13383_v42  ;;  %v15702_v33 = vpack.c.bf16 %v13611_v32, %v13494_v26  ;;  %v10040_v2 = vpack.c.bf16 %v4906_v15, %v4904_v52  ;;  %v15704_v46 = vunpack.i.h.bf16 %v15654_v23  ;;  %v10958_v23 = vunpack.i.l.bf16 %v15706_v21  ;;  %v15718_v26 = vld [vmem:[#allocation60_spill] sm:$0xff] }
 0x3da   : > { %15700 = vst [vmem:[#allocation39_spill] sm:$0xff] %v13749_v34  ;;  %15701 = vst [vmem:[#allocation40_spill] sm:$0xff] %v13751_v22  ;;  %v4905_v15 = vsel %vm15463_vm0, %v11104_v62, %v11433_v35  ;;  %v15709_v32 = vpack.c.bf16 %v13595_v5, %v13546_v38  ;;  %v11158_v53 = vunpack.i.l.bf16 %v15718_v26  ;;  %v15728_v24 = vunpack.i.h.bf16 %v15706_v21 }
 0x3db   : > { %10037 = vmatprep.subr.bf16.mxu1 %v15702_v33  ;;  %11711 = vrot.lane.b32.xlu1 %v13292_v29, %s12101_s0  ;;  %v13774_v45 = vpack.c.bf16 %v10939_v51, %v15704_v46  ;;  %v15707_v29 = vunpack.i.h.bf16 %v15657_v48  ;;  %v15708_v51 = vld [vmem:[#allocation54_spill] sm:$0xff]  ;;  %v4903_v46 = vsel %vm15463_vm0, %v11103_v8, %v11058_v20  ;;  %v9627_v48 = vld [vmem:[%s15250_s4 + $0x208] sm:$0xff]  ;;  %v15714_v33 = vld [vmem:[#allocation11_spill] sm:$0xff]  ;;  %vm1655_vm0 = vcmask 998400  }
 0x3dc   : > { %11726 = vrot.lane.b32.xlu0 %v12407_v17, %s12100_s3  ;;  %9628 = vmatmul.mubr.msk.f32.vlgmr.msra.gmra.mrb[0].mxu1 %vm993_vm4, %v9626_v49  ;;  %v11078_v8 = vunpack.i.l.bf16 %v15708_v51  ;;  %v983_v61 = vsel %vm332_vm1, %v10958_v23, %v15728_v24  ;;  %v15755_v31 = vpack.c.bf16 %v13668_v56, %v13488_v3  ;;  %v15759_v3 = vunpack.i.l.bf16 %v15719_v39  ;;  %s15875_s3 = smov 45  }
 0x3dd   : > { %v13785_v52 = vpack.c.bf16 %v10949_v54, %v15707_v29  ;;  %10039 = vmatpush1.bf16.msra.mxu1 %v15709_v32  ;;  %v13795_v35 = vpop.permute.xlu1 %11426  ;;  %v11442_v49 = vpop.permute.xlu0 %11441  ;;  %4836 = vmatprep.mubr.f32.mxu1 %v13383_v42  ;;  %v15711_v54 = vunpack.i.l.bf16 %v15698_v59  ;;  %v15712_v29 = vld [vmem:[#allocation59_spill] sm:$0xff] }
 0x3de   : > { %15710 = vst [vmem:[#allocation41_spill] sm:$0xff] %v13795_v35  ;;  %v11139_v17 = vunpack.i.h.bf16 %v15712_v29  ;;  %v11138_v20 = vunpack.i.l.bf16 %v15712_v29  ;;  %10041 = vmatprep.subr.bf16.mxu1 %v10040_v2  ;;  %v11444_v38 = vunpack.i.h.bf16 %v11442_v49  ;;  %v11443_v5 = vunpack.i.l.bf16 %v11442_v49  ;;  %v15713_v32 = vld [vmem:[#allocation55_spill] sm:$0xff]  ;;  %v15717_v2 = vld [vmem:[#allocation58_spill] sm:$0xff] }
 0x3df   : > { %v5035_v62 = vsel %vm5029_vm15, %v15711_v54, %v11064_v13  ;;  %v11088_v22 = vunpack.i.l.bf16 %v15713_v32  ;;  %11721 = vrot.lane.b32.xlu1 %v15714_v33, %s12101_s0  ;;  %v10042_v13 = vpack.c.bf16 %v4905_v15, %v4903_v46  ;;  %v15716_v54 = vld [vmem:[#allocation56_spill] sm:$0xff]  ;;  %v11108_v34 = vunpack.i.l.bf16 %v15717_v2  ;;  %v9630_v46 = vld [vmem:[%s15250_s4 + $0x210] sm:$0xff] }
 0x3e0   : > { %11731 = vrot.lane.b32.xlu0 %v15715_v37, %s12101_s0  ;;  %v11098_v29 = vunpack.i.l.bf16 %v15716_v54  ;;  %9629 = vmatmul.mubr.msk.f32.gmra.mrb[2].mxu1 %vm993_vm4, %v9627_v48  ;;  %v5037_v49 = vsel %vm5029_vm15, %v11443_v5, %v11444_v38  ;;  %v11174_v33 = vunpack.i.h.bf16 %v15719_v39  ;;  %v11109_v48 = vunpack.i.h.bf16 %v15717_v2  ;;  %v15722_v38 = vld [vmem:[#allocation18_spill] sm:$0xff] }
 0x3e1   : > { %10043 = vmatpush1.bf16.msra.mxu1 %v10042_v13  ;;  %v13822_v37 = vpop.permute.xlu1 %11451  ;;  %v13824_v15 = vpop.permute.xlu0 %11446  ;;  %4985 = vmatprep.mubr.f32.mxu1 %v13383_v42  ;;  %v15723_v12 = vunpack.i.l.bf16 %v15722_v38  ;;  %v13839_v13 = vsel %vm5684_vm12, %v11139_v17, %v15725_v10  ;;  %v15729_v2 = vunpack.i.h.bf16 %v15708_v51  ;;  %v15734_v17 = vunpack.i.l.bf16 %v15698_v59 }
 0x3e2   : > { %15720 = vst [vmem:[#allocation42_spill] sm:$0xff] %v13822_v37  ;;  %15721 = vst [vmem:[#allocation43_spill] sm:$0xff] %v13824_v15  ;;  %v15727_v15 = vpack.c.bf16 %v13625_v19, %v13499_v47  ;;  %v10048_v37 = vpack.c.bf16 %v5037_v49, %v5035_v62  ;;  %v15731_v47 = vunpack.i.h.bf16 %v15713_v32  ;;  %v15732_v19 = vunpack.i.h.bf16 %v15716_v54 }
 0x3e3   : > { %v13834_v35 = vsel %vm5684_vm12, %v11138_v20, %v15723_v12  ;;  %15726 = vst [vmem:[#allocation45_spill] sm:$0xff] %v13839_v13  ;;  %v13850_v38 = vsel %vm1179_vm10, %v11078_v8, %v15729_v2  ;;  %v15730_v12 = vld [vmem:[#allocation64_spill] sm:$0xff]  ;;  %11736 = vrot.lane.b32.xlu1 %v13308_v55, %s12101_s0  ;;  %v5034_v23 = vsel %vm5029_vm15, %v11108_v34, %v15734_v17  ;;  %v6968_v55 = vld [vmem:[%s15251_s5 + $0x8] sm:$0xff] }
 0x3e4   : > { %15724 = vst [vmem:[#allocation44_spill] sm:$0xff] %v13834_v35  ;;  %10045 = vmatprep.subr.bf16.mxu1 %v15727_v15  ;;  %v11069_v20 = vunpack.i.h.bf16 %v15730_v12  ;;  %v11068_v1 = vunpack.i.l.bf16 %v15730_v12  ;;  %11741 = vrot.lane.b32.xlu0 %v12399_v14, %s12101_s0  ;;  %v13861_v10 = vsel %vm1298_vm6, %v11088_v22, %v15731_v47  ;;  %v13866_v24 = vsel %vm1417_vm5, %v11098_v29, %v15732_v19  ;;  %v6967_v14 = vld [vmem:[%s15251_s5] sm:$0xff]  ;;  %v9631_v29 = vld [vmem:[%s15250_s4 + $0x218] sm:$0xff]  ;;  %v15741_v19 = vld [vmem:[#allocation65_spill] sm:$0xff] }
 0x3e5   : > { %15733 = vst [vmem:[#allocation46_spill] sm:$0xff] %v13866_v24  ;;  %v5036_v62 = vsel %vm5029_vm15, %v11109_v48, %v11443_v5  ;;  %9632 = vmatmul.mubr.msk.f32.vlgmr.msra.gmra.mrb[0].mxu1 %vm993_vm4, %v9630_v46  ;;  %v15735_v22 = vunpack.i.h.bf16 %v15718_v26  ;;  %v15736_v59 = vpack.c.bf16 %v13618_v63, %v13560_v57  ;;  %v13887_v34 = vpop.permute.xlu1 %11466  ;;  %v11457_v5 = vpop.permute.xlu0 %11456  ;;  %v15739_v46 = vld [vmem:[#allocation62_spill] sm:$0xff]  ;;  %v15740_v12 = vld [vmem:[#allocation63_spill] sm:$0xff]  ;;  %v11074_v17 = vunpack.i.h.bf16 %v15741_v19  ;;  %v15754_v24 = vld [vmem:[#allocation72_spill] sm:$0xff] }
 0x3e6   : > { %15737 = vst [vmem:[#allocation47_spill] sm:$0xff] %v13887_v34  ;;  %4991 = vmatprep.mubr.f32.mxu1 %v13383_v42  ;;  %v11188_v63 = vunpack.i.l.bf16 %v15739_v46  ;;  %v11459_v48 = vunpack.i.h.bf16 %v11457_v5  ;;  %v11458_v2 = vunpack.i.l.bf16 %v11457_v5  ;;  %v11198_v47 = vunpack.i.l.bf16 %v15740_v12  ;;  %v15744_v34 = vld [vmem:[#allocation66_spill] sm:$0xff] }
 0x3e7   : > { %v13882_v8 = vsel %vm1536_vm7, %v11158_v53, %v15735_v22  ;;  %10047 = vmatpush1.bf16.msra.mxu1 %v15736_v59  ;;  %v15738_v53 = vunpack.i.l.bf16 %v15719_v39  ;;  %6971 = vperm.xlu1 %10624, %v6967_v14   ;;  %v10050_v22 = vpack.c.bf16 %v5036_v62, %v5034_v23  ;;  %v5166_v59 = vsel %vm5160_vm3, %v11068_v1, %v11069_v20  ;;  %v15745_v14 = vld [vmem:[#allocation67_spill] sm:$0xff] }
 0x3e8   : > { %10049 = vmatprep.subr.bf16.mxu1 %v10048_v37  ;;  %6976 = vperm.xlu0 %10623, %v6968_v55   ;;  %v11073_v49 = vunpack.i.l.bf16 %v15741_v19  ;;  %v984_v57 = vsel %vm332_vm1, %v11458_v2, %v11459_v48  ;;  %v15743_v37 = vunpack.i.h.bf16 %v15706_v21  ;;  %v11218_v13 = vunpack.i.l.bf16 %v15744_v34 }
 0x3e9   : > { %v13898_v15 = vsel %vm5815_vm13, %v15738_v53, %v11174_v33  ;;  %v15742_v33 = vld [vmem:[#allocation70_spill] sm:$0xff]  ;;  %9633 = vmatmul.mubr.msk.f32.gmra.mrb[2].mxu1 %vm993_vm4, %v9631_v29  ;;  %v11084_v55 = vunpack.i.h.bf16 %v15745_v14  ;;  %v11477_v23 = vpop.permute.xlu1 %11476  ;;  %v13914_v20 = vpop.permute.xlu0 %11461  ;;  %v9778_v62 = vpack.c.bf16 %v984_v57, %v983_v61  ;;  %v9634_v29 = vld [vmem:[%s15250_s4 + $0x220] sm:$0xff]  ;;  %v11083_v21 = vunpack.i.l.bf16 %v15745_v14  ;;  %v15749_v61 = vld [vmem:[#allocation69_spill] sm:$0xff] }
 0x3ea   : > { %v11113_v53 = vunpack.i.l.bf16 %v15742_v33  ;;  %v9776_v5 = vpack.c.bf16 %v11459_v48, %v15743_v37  ;;  %15746 = vst [vmem:[#allocation48_spill] sm:$0xff] %v13914_v20  ;;  %5116 = vmatprep.mubr.f32.mxu1 %v13383_v42  ;;  %v11114_v48 = vunpack.i.h.bf16 %v15742_v33  ;;  %v15747_v2 = vpack.c.bf16 %v13686_v7, %v13533_v27  ;;  %v15748_v37 = vld [vmem:[#allocation68_spill] sm:$0xff]  ;;  %v9500_v33 = vld [vmem:[%s15250_s4 + $0x10] sm:$0xff]  ;;  %v15750_v27 = vld [vmem:[#allocation71_spill] sm:$0xff] }
 0x3eb   : > { %10051 = vmatpush1.bf16.msra.mxu1 %v10050_v22  ;;  %v11479_v19 = vunpack.i.h.bf16 %v11477_v23  ;;  %v11478_v22 = vunpack.i.l.bf16 %v11477_v23  ;;  %v11094_v35 = vunpack.i.h.bf16 %v15748_v37  ;;  %v11093_v20 = vunpack.i.l.bf16 %v15748_v37 }
 0x3ec   : > { %10053 = vmatprep.subr.bf16.mxu1 %v15747_v2  ;;  %9777 = vmatprep.subr.bf16.mxu0 %v9776_v5  ;;  %v11234_v57 = vunpack.i.h.bf16 %v15749_v61  ;;  %v5165_v14 = vsel %vm5160_vm3, %v11113_v53, %v11068_v1  ;;  %v11118_v7 = vunpack.i.l.bf16 %v15750_v27  ;;  %v15751_v5 = vld [vmem:[#allocation12_spill] sm:$0xff]  ;;  %v15752_v2 = vld [vmem:[#allocation9_spill] sm:$0xff]  ;;  %v11248_v4 = vunpack.i.l.bf16 %v15754_v24 }
 0x3ed   : > { %9779 = vmatpush1.bf16.msra.mxu0 %v9778_v62  ;;  %v5167_v23 = vsel %vm5160_vm3, %v11114_v48, %v11478_v22  ;;  %v15753_v37 = vpack.c.bf16 %v15751_v5, %v15752_v2  ;;  %v5168_v54 = vsel %vm5160_vm3, %v11478_v22, %v11479_v19  ;;  %v13945_v1 = vpop.permute.xlu1 %11481  ;;  %v13947_v53 = vpop.permute.xlu0 %11471  ;;  %v15758_v22 = vunpack.i.h.bf16 %v15739_v46  ;;  %v15764_v62 = vld [vmem:[#allocation10_spill] sm:$0xff] }
 0x3ee   : > { %9636 = vmatmul.mubr.msk.f32.vlgmr.msra.gmra.mrb[0].mxu1 %vm993_vm4, %v9634_v29  ;;  %15756 = vst [vmem:[#allocation49_spill] sm:$0xff] %v13945_v1  ;;  %15757 = vst [vmem:[#allocation50_spill] sm:$0xff] %v13947_v53  ;;  %v9635_v29 = vld [vmem:[%s15250_s4 + $0x228] sm:$0xff]  ;;  %v10056_v48 = vpack.c.bf16 %v5168_v54, %v5166_v59  ;;  %v10058_v19 = vpack.c.bf16 %v5167_v23, %v5165_v14  ;;  %v13961_v56 = vsel %vm5815_vm13, %v11198_v47, %v15759_v3  ;;  %v15762_v23 = vld [vmem:[#allocation74_spill] sm:$0xff]  ;;  %vm15791_vm1 = vcmask 932864  }
 0x3ef   : > { %9781 = vmatprep.subr.bf16.mxu0 %v15753_v37  ;;  %10055 = vmatpush1.bf16.msra.mxu1 %v15755_v31  ;;  %v13956_v5 = vsel %vm1536_vm7, %v11188_v63, %v15758_v22  ;;  %v15760_v31 = vunpack.i.h.bf16 %v15744_v34  ;;  %v5297_v54 = vsel %vm5291_vm11, %v11073_v49, %v11074_v17  ;;  %v15761_v59 = vld [vmem:[#allocation73_spill] sm:$0xff]  ;;  %v11128_v37 = vunpack.i.l.bf16 %v15762_v23  ;;  %v15765_v47 = vld [vmem:[#allocation8_spill] sm:$0xff]  ;;  %vm15806_vm3 = vmmov %vm15791_vm1 }
 0x3f0   : > { %5122 = vmatprep.mubr.f32.mxu1 %v13383_v42  ;;  %9502 = vmatmul.mubr.msk.f32.vlgmr.msra.gmra.mrb[8].mxu0 %vm993_vm4, %v9500_v33  ;;  %v11123_v14 = vunpack.i.l.bf16 %v15761_v59  ;;  %v15763_v63 = vld [vmem:[#allocation77_spill] sm:$0xff]  ;;  %v15766_v3 = vpack.c.bf16 %v15764_v62, %v15765_v47  ;;  %v15767_v17 = vld [vmem:[#allocation16_spill] sm:$0xff]  ;;  %v15768_v33 = vld [vmem:[#allocation14_spill] sm:$0xff]  ;;  %v13985_v1 = vsel %vm5422_vm2, %v11083_v21, %v11084_v55  ;;  %v15770_v62 = vunpack.i.l.bf16 %v15749_v61 }
 0x3f1   : > { %v13966_v2 = vsel %vm1655_vm0, %v11218_v13, %v15760_v31  ;;  %v11149_v22 = vunpack.i.h.bf16 %v15763_v63  ;;  %v11148_v39 = vunpack.i.l.bf16 %v15763_v63  ;;  %10057 = vmatprep.subr.bf16.mxu1 %v10056_v48  ;;  %v9501_v13 = vld [vmem:[%s15250_s4 + $0x18] sm:$0xff]  ;;  %v15769_v31 = vpack.c.bf16 %v15767_v17, %v15768_v33  ;;  %1070 = vmatprep.mubr.f32.mxu0 %v13383_v42 }
 0x3f2   : > { %9783 = vmatpush1.bf16.msra.mxu0 %v15766_v3  ;;  %9637 = vmatmul.mubr.msk.f32.gmra.mrb[2].mxu1 %vm993_vm4, %v9635_v29  ;;  %v13988_v63 = vsel %vm5553_vm14, %v11093_v20, %v11094_v35  ;;  %v13993_v48 = vsel %vm5946_vm8, %v15770_v62, %v11234_v57  ;;  %v11119_v47 = vunpack.i.h.bf16 %v15750_v27  ;;  %v5296_v3 = vsel %vm5291_vm11, %v11118_v7, %v11073_v49  ;;  %v15773_v33 = vld [vmem:[#allocation75_spill] sm:$0xff]  ;;  %v14003_v35 = vpop.permute.xlu0 %11496  ;;  %v9638_v57 = vld [vmem:[%s15250_s4 + $0x230] sm:$0xff]  ;;  %v15775_v27 = vld [vmem:[#allocation76_spill] sm:$0xff] }
 0x3f3   : > { %9785 = vmatprep.subr.bf16.mxu0 %v15769_v31  ;;  %v15771_v29 = vunpack.i.h.bf16 %v15754_v24  ;;  %v11258_v55 = vunpack.i.l.bf16 %v15773_v33  ;;  %10059 = vmatpush1.bf16.msra.mxu1 %v10058_v19  ;;  %v11487_v31 = vpop.permute.xlu1 %11486  ;;  %15774 = vst [vmem:[#allocation53_spill] sm:$0xff] %v14003_v35  ;;  %v11144_v62 = vunpack.i.h.bf16 %v15775_v27  ;;  %v11143_v49 = vunpack.i.l.bf16 %v15775_v27  ;;  %v15777_v27 = vld [vmem:[#allocation15_spill] sm:$0xff] }
 0x3f4   : > { %v11489_v7 = vunpack.i.h.bf16 %v11487_v31  ;;  %v11488_v53 = vunpack.i.l.bf16 %v11487_v31  ;;  %9503 = vmatmul.mubr.msk.f32.gmra.mrb[10].mxu0 %vm993_vm4, %v9501_v13  ;;  %v14016_v19 = vsel %vm5422_vm2, %v11123_v14, %v11083_v21  ;;  %v14022_v35 = vsel %vm1536_vm7, %v11148_v39, %v11149_v22  ;;  %5247 = vmatprep.mubr.f32.mxu1 %v13383_v42 }
 0x3f5   : > { %v14000_v17 = vsel %vm1655_vm0, %v11248_v4, %v15771_v29  ;;  %v15776_v4 = vpack.c.bf16 %v13614_v30, %v13350_v43  ;;  %v14019_v29 = vsel %vm5553_vm14, %v11128_v37, %v11093_v20  ;;  %v944_v43 = vld [vmem:[%s15250_s4] sm:$0xff]  ;;  %v11199_v37 = vunpack.i.h.bf16 %v15740_v12  ;;  %1147 = vmatprep.mubr.f32.mxu0 %v13383_v42 }
 0x3f6   : > { %15772 = vst [vmem:[#allocation52_spill] sm:$0xff] %v14000_v17  ;;  %v15778_v17 = vld [vmem:[#allocation13_spill] sm:$0xff]  ;;  %v15780_v30 = vld [vmem:[#allocation80_spill] sm:$0xff]  ;;  %v5298_v20 = vsel %vm5291_vm11, %v11119_v47, %v11488_v53  ;;  %9640 = vmatmul.mubr.msk.f32.vlgmr.msra.gmra.mrb[0].mxu1 %vm993_vm4, %v9638_v57  ;;  %v5299_v14 = vsel %vm5291_vm11, %v11488_v53, %v11489_v7  ;;  %v15781_v39 = vunpack.i.l.bf16 %v15749_v61  ;;  %v11502_v47 = vpop.permute.xlu0 %11501  ;;  %v15784_v7 = vld [vmem:[#allocation78_spill] sm:$0xff]  ;;  %vm6077_vm15 = vcmask 359424  }
 0x3f7   : > { %10061 = vmatprep.subr.bf16.mxu1 %v15776_v4  ;;  %v15779_v31 = vpack.c.bf16 %v15777_v27, %v15778_v17  ;;  %v11179_v13 = vunpack.i.h.bf16 %v15780_v30  ;;  %v11178_v21 = vunpack.i.l.bf16 %v15780_v30  ;;  %v15782_v4 = vpack.c.bf16 %v13600_v60, %v13417_v41  ;;  %v14046_v27 = vpop.permute.xlu1 %11491  ;;  %5253 = vmatprep.mubr.f32.mxu1 %v13383_v42 }
 0x3f8   : > { %v14041_v17 = vsel %vm5946_vm8, %v11258_v55, %v15781_v39  ;;  %v10064_v53 = vpack.c.bf16 %v5299_v14, %v5297_v54  ;;  %v10066_v12 = vpack.c.bf16 %v5298_v20, %v5296_v3  ;;  %v11504_v57 = vunpack.i.h.bf16 %v11502_v47  ;;  %v15785_v39 = vld [vmem:[#allocation79_spill] sm:$0xff] }
 0x3f9   : > { %9787 = vmatpush1.bf16.msra.mxu0 %v15779_v31  ;;  %10063 = vmatpush1.bf16.msra.mxu1 %v15782_v4  ;;  %v11503_v61 = vunpack.i.l.bf16 %v11502_v47  ;;  %v15783_v41 = vunpack.i.h.bf16 %v15718_v26  ;;  %v14059_v55 = vsel %vm5684_vm12, %v11143_v49, %v11144_v62  ;;  %v11279_v31 = vunpack.i.h.bf16 %v15784_v7  ;;  %v945_v26 = vld [vmem:[%s15250_s4 + $0x8] sm:$0xff] }
 0x3fa   : > { %9789 = vmatprep.subr.bf16.mxu0 %v13764_v0  ;;  %v9639_v0 = vld [vmem:[%s15250_s4 + $0x238] sm:$0xff]  ;;  %v11278_v30 = vunpack.i.l.bf16 %v15784_v7  ;;  %v11163_v54 = vunpack.i.l.bf16 %v15785_v39  ;;  %v15786_v3 = vpack.c.bf16 %v13723_v28, %v13518_v9  ;;  %10065 = vmatprep.subr.bf16.mxu1 %v10064_v53  ;;  %v11124_v62 = vunpack.i.h.bf16 %v15761_v59  ;;  %v15787_v28 = vld [vmem:[#allocation82_spill] sm:$0xff]  ;;  %v14084_v53 = vpop.permute.xlu0 %11506 }
 0x3fb   : > { %v14056_v60 = vpack.c.bf16 %v15783_v41, %v11149_v22  ;;  %v1183_v20 = vsel %vm1179_vm10, %v11503_v61, %v11504_v57  ;;  %9641 = vmatmul.mubr.msk.f32.gmra.mrb[2].mxu1 %vm993_vm4, %v9639_v0  ;;  %v14080_v9 = vsel %vm5815_vm13, %v11178_v21, %v11179_v13  ;;  %v11204_v14 = vunpack.i.h.bf16 %v15787_v28  ;;  %v11512_v47 = vpop.permute.xlu1 %11511  ;;  %v9642_v13 = vld [vmem:[%s15250_s4 + $0x240] sm:$0xff]  ;;  %v15819_v7 = vld [vmem:[#allocation22_spill] sm:$0xff] }
 0x3fc   : > { %9504 = vmatmul.mubr.msk.f32.vlgmr.msra.gmra.mrb[8].mxu0 %vm993_vm4, %v944_v43  ;;  %v14074_v43 = vsel %vm5815_vm13, %v11199_v37, %v11178_v21  ;;  %v11203_v4 = vunpack.i.l.bf16 %v15787_v28  ;;  %v15788_v59 = vunpack.i.h.bf16 %v15708_v51  ;;  %5378 = vmatprep.mubr.f32.mxu1 %v13383_v42  ;;  %v9794_v0 = vpack.c.bf16 %v1183_v20, %v13850_v38  ;;  %v15789_v21 = vld [vmem:[#allocation83_spill] sm:$0xff]  ;;  %v15792_v20 = vld [vmem:[#allocation81_spill] sm:$0xff] }
 0x3fd   : > { %9791 = vmatpush1.bf16.msra.mxu0 %v15786_v3  ;;  %1153 = vmatprep.mubr.f32.mxu0 %v13383_v42  ;;  %v11209_v61 = vunpack.i.h.bf16 %v15789_v21  ;;  %v11208_v41 = vunpack.i.l.bf16 %v15789_v21  ;;  %v11514_v3 = vunpack.i.h.bf16 %v11512_v47  ;;  %v15790_v22 = vpack.c.bf16 %v13628_v16, %v13355_v11  ;;  %v15794_v21 = vld [vmem:[#allocation84_spill] sm:$0xff] }
 0x3fe   : > { %10067 = vmatpush1.bf16.msra.mxu1 %v10066_v12  ;;  %v9792_v37 = vpack.c.bf16 %v11504_v57, %v15788_v59  ;;  %v11513_v12 = vunpack.i.l.bf16 %v11512_v47  ;;  %v14102_v51 = vsel %vm15791_vm1, %v11278_v30, %v11279_v31  ;;  %v14105_v38 = vsel %vm5684_vm12, %v11163_v54, %v11143_v49  ;;  %v9506_v49 = vld [vmem:[%s15250_s4 + $0x20] sm:$0xff]  ;;  %v9643_v59 = vld [vmem:[%s15250_s4 + $0x248] sm:$0xff] }
 0x3ff   : > { %10069 = vmatprep.subr.bf16.mxu1 %v15790_v22  ;;  %v11294_v11 = vunpack.i.h.bf16 %v15792_v20  ;;  %v11293_v16 = vunpack.i.l.bf16 %v15792_v20  ;;  %v11129_v54 = vunpack.i.h.bf16 %v15762_v23  ;;  %v15793_v22 = vpack.c.bf16 %v13655_v36, %v13422_v25  ;;  %v14123_v47 = vpop.permute.xlu1 %11516 }
 0x400   : > { %9505 = vmatmul.mubr.msk.f32.gmra.mrb[10].mxu0 %vm993_vm4, %v945_v26  ;;  %9793 = vmatprep.subr.bf16.mxu0 %v9792_v37  ;;  %v5429_v26 = vsel %vm5422_vm2, %v11124_v62, %v11513_v12  ;;  %v5430_v30 = vsel %vm5422_vm2, %v11513_v12, %v11514_v3  ;;  %v11522_v62 = vpop.permute.xlu0 %11521  ;;  %v14139_v36 = vsel %vm5815_vm13, %v11203_v4, %v11204_v14  ;;  %v15475_v3 = vunpack.i.h.bf16 %v15794_v21  ;;  %v9507_v14 = vld [vmem:[%s15250_s4 + $0x28] sm:$0xff] }
 0x401   : > { %1262 = vmatprep.mubr.f32.mxu0 %v13383_v42  ;;  %9795 = vmatpush1.bf16.msra.mxu0 %v9794_v0  ;;  %v10072_v37 = vpack.c.bf16 %v5430_v30, %v13985_v1  ;;  %v10074_v0 = vpack.c.bf16 %v5429_v26, %v14016_v19  ;;  %v11523_v25 = vunpack.i.l.bf16 %v11522_v62  ;;  %v11308_v1 = vunpack.i.l.bf16 %v15794_v21  ;;  %v15795_v19 = vld [vmem:[#allocation86_spill] sm:$0xff] }
 0x402   : > { %9644 = vmatmul.mubr.msk.f32.vlgmr.msra.gmra.mrb[0].mxu1 %vm993_vm4, %v9642_v13  ;;  %9797 = vmatprep.subr.bf16.mxu0 %v13774_v45  ;;  %v14133_v45 = vsel %vm1655_vm0, %v11208_v41, %v11209_v61  ;;  %v11524_v13 = vunpack.i.h.bf16 %v11522_v62  ;;  %v11239_v12 = vunpack.i.h.bf16 %v15795_v19  ;;  %v11238_v26 = vunpack.i.l.bf16 %v15795_v19  ;;  %v15800_v19 = vld [vmem:[#allocation17_spill] sm:$0xff] }
 0x403   : > { %10071 = vmatpush1.bf16.msra.mxu1 %v15793_v22  ;;  %5384 = vmatprep.mubr.f32.mxu1 %v13383_v42  ;;  %v11259_v41 = vunpack.i.h.bf16 %v15773_v33  ;;  %v15796_v30 = vpack.c.bf16 %v13734_v6, %v13523_v50  ;;  %v15797_v22 = vunpack.i.h.bf16 %v15713_v32  ;;  %v15798_v33 = vld [vmem:[#allocation85_spill] sm:$0xff]  ;;  %v14165_v6 = vld [vmem:[#allocation2 + $0x10] sm:$0xff]  ;;  %vm6208_vm10 = vcmask 351232  }
 0x404   : > { %9508 = vmatmul.mubr.msk.f32.vlgmr.msra.gmra.mrb[8].mxu0 %vm993_vm4, %v9506_v49  ;;  %10073 = vmatprep.subr.bf16.mxu1 %v10072_v37  ;;  %v1302_v42 = vsel %vm1298_vm6, %v11523_v25, %v11524_v13  ;;  %v14160_v49 = vsel %vm6077_vm15, %v11293_v16, %v11294_v11  ;;  %v11223_v37 = vunpack.i.l.bf16 %v15798_v33  ;;  %v11532_v25 = vpop.permute.xlu1 %11531  ;;  %v14163_v50 = vpop.permute.xlu0 %11526  ;;  %v9646_v32 = vld [vmem:[%s15250_s4 + $0x250] sm:$0xff]  ;;  %vm15802_vm6 = vmmov %vm15791_vm1 }
 0x405   : > { %9799 = vmatpush1.bf16.msra.mxu0 %v15796_v30  ;;  %v9800_v62 = vpack.c.bf16 %v11524_v13, %v15797_v22  ;;  %1268 = vmatprep.mubr.f32.mxu0 %v14165_v6  ;;  %v15799_v13 = vunpack.i.h.bf16 %v15744_v34  ;;  %v11269_v30 = vunpack.i.h.bf16 %v15800_v19  ;;  %v11268_v22 = vunpack.i.l.bf16 %v15800_v19 }
 0x406   : > { %9645 = vmatmul.mubr.msk.f32.gmra.mrb[2].mxu1 %vm993_vm4, %v9643_v59  ;;  %v9802_v59 = vpack.c.bf16 %v1302_v42, %v13861_v10  ;;  %v11534_v23 = vunpack.i.h.bf16 %v11532_v25  ;;  %v11533_v57 = vunpack.i.l.bf16 %v11532_v25  ;;  %v15801_v10 = vpack.c.bf16 %v13689_v44, %v13366_v40  ;;  %v15803_v42 = vld [vmem:[#allocation87_spill] sm:$0xff]  ;;  %v15804_v40 = vld [vmem:[#allocation88_spill] sm:$0xff] }
 0x407   : > { %10075 = vmatpush1.bf16.msra.mxu1 %v10074_v0  ;;  %v14174_v11 = vpack.c.bf16 %v15799_v13, %v11209_v61  ;;  %9801 = vmatprep.subr.bf16.mxu0 %v9800_v62  ;;  %v14186_v34 = vsel %vm15802_vm6, %v11308_v1, %v15475_v3  ;;  %v14189_v61 = vsel %vm5946_vm8, %v11259_v41, %v11238_v26  ;;  %v11318_v13 = vunpack.i.l.bf16 %v15803_v42  ;;  %v9510_v1 = vld [vmem:[%s15250_s4 + $0x30] sm:$0xff] }
 0x408   : > { %10077 = vmatprep.subr.bf16.mxu1 %v15801_v10  ;;  %9509 = vmatmul.mubr.msk.f32.gmra.mrb[10].mxu0 %vm993_vm4, %v9507_v14  ;;  %v14195_v25 = vsel %vm5946_vm8, %v11238_v26, %v11239_v12  ;;  %v11264_v44 = vunpack.i.h.bf16 %v15804_v40  ;;  %v15476_v62 = vunpack.i.l.bf16 %v15804_v40  ;;  %v5560_v19 = vsel %vm5553_vm14, %v11129_v54, %v11533_v57  ;;  %v14215_v26 = vpop.permute.xlu1 %11536 }
 0x409   : > { %5509 = vmatprep.mubr.f32.mxu1 %v14165_v6  ;;  %9803 = vmatpush1.bf16.msra.mxu0 %v9802_v59  ;;  %v5561_v41 = vsel %vm5553_vm14, %v11533_v57, %v11534_v23  ;;  %v11164_v14 = vunpack.i.h.bf16 %v15785_v39  ;;  %v14209_v12 = vsel %vm5815_vm13, %v11223_v37, %v11203_v4  ;;  %v15805_v54 = vpack.c.bf16 %v13676_v58, %v13427_v18  ;;  %v11542_v59 = vpop.permute.xlu0 %11541  ;;  %v9647_v57 = vld [vmem:[%s15250_s4 + $0x258] sm:$0xff]  ;;  %v15817_v18 = vld [vmem:[#allocation20_spill] sm:$0xff] }
 0x40a   : > { %9648 = vmatmul.mubr.msk.f32.vlgmr.msra.gmra.mrb[0].mxu1 %vm993_vm4, %v9646_v32  ;;  %9805 = vmatprep.subr.bf16.mxu0 %v13785_v52  ;;  %v10080_v39 = vpack.c.bf16 %v5561_v41, %v13988_v63  ;;  %v10082_v28 = vpack.c.bf16 %v5560_v19, %v14019_v29  ;;  %v14223_v4 = vsel %vm15806_vm3, %v11268_v22, %v11269_v30  ;;  %v11544_v52 = vunpack.i.h.bf16 %v11542_v59  ;;  %v15807_v63 = vld [vmem:[#allocation21_spill] sm:$0xff]  ;;  %v15809_v41 = vld [vmem:[#allocation27_spill] sm:$0xff]  ;;  %v15816_v32 = vld [vmem:[#allocation38_spill] sm:$0xff] }
 0x40b   : > { %10079 = vmatpush1.bf16.msra.mxu1 %v15805_v54  ;;  %v11543_v23 = vunpack.i.l.bf16 %v11542_v59  ;;  %1381 = vmatprep.mubr.f32.mxu0 %v14165_v6  ;;  %v14232_v58 = vsel %vm6077_vm15, %v11318_v13, %v11293_v16  ;;  %v11299_v29 = vunpack.i.h.bf16 %v15807_v63  ;;  %v11298_v37 = vunpack.i.l.bf16 %v15807_v63  ;;  %v15808_v19 = vld [vmem:[#allocation37_spill] sm:$0xff]  ;;  %v9511_v16 = vld [vmem:[%s15250_s4 + $0x38] sm:$0xff]  ;;  %v15811_v13 = vld [vmem:[#allocation56_spill] sm:$0xff] }
 0x40c   : > { %5515 = vmatprep.mubr.f32.mxu1 %v14165_v6  ;;  %9512 = vmatmul.mubr.msk.f32.vlgmr.msra.gmra.mrb[8].mxu0 %vm993_vm4, %v9510_v1  ;;  %v11319_v22 = vunpack.i.h.bf16 %v15803_v42  ;;  %v15810_v20 = vpack.c.bf16 %v15808_v19, %v15809_v41  ;;  %v15812_v1 = vunpack.i.h.bf16 %v15811_v13  ;;  %v14253_v59 = vsel %vm5946_vm8, %v15476_v62, %v11264_v44  ;;  %v15813_v42 = vld [vmem:[#allocation32_spill] sm:$0xff] }
 0x40d   : > { %10081 = vmatprep.subr.bf16.mxu1 %v10080_v39  ;;  %v1421_v10 = vsel %vm1417_vm5, %v11543_v23, %v11544_v52  ;;  %v15477_v39 = vunpack.i.h.bf16 %v15813_v42  ;;  %v11552_v23 = vpop.permute.xlu1 %11551  ;;  %v14256_v63 = vpop.permute.xlu0 %11546  ;;  %1387 = vmatprep.mubr.f32.mxu0 %v14165_v6  ;;  %v9650_v41 = vld [vmem:[%s15250_s4 + $0x260] sm:$0xff]  ;;  %v14282_v44 = vsel %vm6077_vm15, %v11298_v37, %v11299_v29  ;;  %vm15825_vm5 = vcmask 924672  }
 0x40e   : > { %9807 = vmatpush1.bf16.msra.mxu0 %v15810_v20  ;;  %9649 = vmatmul.mubr.msk.f32.gmra.mrb[2].mxu1 %vm993_vm4, %v9647_v57  ;;  %v9808_v54 = vpack.c.bf16 %v11544_v52, %v15812_v1  ;;  %v15814_v57 = vld [vmem:[#allocation46_spill] sm:$0xff]  ;;  %v14265_v52 = vpack.c.bf16 %v11279_v31, %v11269_v30  ;;  %v15815_v20 = vld [vmem:[#allocation23_spill] sm:$0xff]  ;;  %v11554_v1 = vunpack.i.h.bf16 %v11552_v23  ;;  %v11553_v3 = vunpack.i.l.bf16 %v11552_v23  ;;  %v15820_v23 = vld [vmem:[#allocation25_spill] sm:$0xff] }
 0x40f   : > { %10083 = vmatpush1.bf16.msra.mxu1 %v10082_v28  ;;  %v9810_v19 = vpack.c.bf16 %v1421_v10, %v15814_v57  ;;  %v11338_v28 = vunpack.i.l.bf16 %v15813_v42  ;;  %v11283_v13 = vunpack.i.l.bf16 %v15815_v20  ;;  %v15818_v10 = vpack.c.bf16 %v15816_v32, %v15817_v18  ;;  %5640 = vmatprep.mubr.f32.mxu1 %v14165_v6  ;;  %v15823_v30 = vld [vmem:[#allocation44_spill] sm:$0xff]  ;;  %vm15828_vm1 = vmmov %vm15825_vm5 }
 0x410   : > { %9809 = vmatprep.subr.bf16.mxu0 %v9808_v54  ;;  %v14275_v57 = vsel %vm6077_vm15, %v11319_v22, %v11298_v37  ;;  %v11354_v31 = vunpack.i.h.bf16 %v15819_v7  ;;  %9513 = vmatmul.mubr.msk.f32.gmra.mrb[10].mxu0 %vm993_vm4, %v9511_v16  ;;  %v11329_v0 = vunpack.i.h.bf16 %v15820_v23  ;;  %v11328_v18 = vunpack.i.l.bf16 %v15820_v23  ;;  %v9514_v22 = vld [vmem:[%s15250_s4 + $0x40] sm:$0xff]  ;;  %v15822_v37 = vld [vmem:[#allocation45_spill] sm:$0xff] }
 0x411   : > { %10085 = vmatprep.subr.bf16.mxu1 %v15818_v10  ;;  %v5691_v32 = vsel %vm5684_vm12, %v11164_v14, %v11553_v3  ;;  %v5692_v16 = vsel %vm5684_vm12, %v11553_v3, %v11554_v1  ;;  %v15821_v54 = vld [vmem:[#allocation24_spill] sm:$0xff]  ;;  %v15824_v23 = vpack.c.bf16 %v15822_v37, %v15823_v30  ;;  %v14298_v14 = vpop.permute.xlu1 %11556  ;;  %v14308_v1 = vsel %vm15825_vm5, %v11338_v28, %v15477_v39 }
 0x412   : > { %9811 = vmatpush1.bf16.msra.mxu0 %v9810_v19  ;;  %9652 = vmatmul.mubr.msk.f32.vlgmr.msra.gmra.mrb[0].mxu1 %vm993_vm4, %v9650_v41  ;;  %v11324_v10 = vunpack.i.h.bf16 %v15821_v54  ;;  %v11323_v29 = vunpack.i.l.bf16 %v15821_v54  ;;  %v11562_v19 = vpop.permute.xlu0 %11561  ;;  %v9651_v41 = vld [vmem:[%s15250_s4 + $0x268] sm:$0xff]  ;;  %v10088_v62 = vpack.c.bf16 %v5692_v16, %v14059_v55  ;;  %v10090_v3 = vpack.c.bf16 %v5691_v32, %v14105_v38 }
 0x413   : > { %9813 = vmatprep.subr.bf16.mxu0 %v14056_v60  ;;  %10087 = vmatpush1.bf16.msra.mxu1 %v15824_v23  ;;  %v15826_v60 = vunpack.i.l.bf16 %v15804_v40  ;;  %v11564_v54 = vunpack.i.h.bf16 %v11562_v19  ;;  %v11563_v37 = vunpack.i.l.bf16 %v11562_v19  ;;  %v15827_v23 = vld [vmem:[#allocation26_spill] sm:$0xff]  ;;  %v14326_v32 = vsel %vm15828_vm1, %v11328_v18, %v11329_v0 }
 0x414   : > { %1500 = vmatprep.mubr.f32.mxu0 %v14165_v6  ;;  %5646 = vmatprep.mubr.f32.mxu1 %v14165_v6  ;;  %v15478_v55 = vunpack.i.h.bf16 %v15827_v23  ;;  %v11368_v38 = vunpack.i.l.bf16 %v15827_v23  ;;  %vm2010_vm6 = vcmask 916480   ;;  %v15829_v19 = vpack.c.bf16 %v13882_v8, %v14022_v35  ;;  %v9654_v35 = vld [vmem:[%s15250_s4 + $0x270] sm:$0xff] }
 0x415   : > { %v14313_v30 = vsel %vm5946_vm8, %v11283_v13, %v15826_v60  ;;  %9516 = vmatmul.mubr.msk.f32.vlgmr.msra.gmra.mrb[8].mxu0 %vm993_vm4, %v9514_v22  ;;  %10089 = vmatprep.subr.bf16.mxu1 %v10088_v62  ;;  %v11224_v13 = vunpack.i.h.bf16 %v15798_v33  ;;  %v1540_v16 = vsel %vm1536_vm7, %v11563_v37, %v11564_v54  ;;  %v9515_v62 = vld [vmem:[%s15250_s4 + $0x48] sm:$0xff]  ;;  %v15830_v22 = vunpack.i.h.bf16 %v15739_v46  ;;  %v15831_v33 = vld [vmem:[#allocation34_spill] sm:$0xff]  ;;  %v11567_v18 = vpop.permute.xlu1 %11566  ;;  %vm15835_vm7 = vmmov %vm15828_vm1 }
 0x416   : > { %9815 = vmatpush1.bf16.msra.mxu0 %v15829_v19  ;;  %9653 = vmatmul.mubr.msk.f32.gmra.mrb[2].mxu1 %vm993_vm4, %v9651_v41  ;;  %v11343_v40 = vunpack.i.l.bf16 %v15831_v33  ;;  %v14339_v28 = vpop.permute.xlu0 %11576  ;;  %v9818_v8 = vpack.c.bf16 %v1540_v16, %v13956_v5  ;;  %v14347_v41 = vsel %vm6077_vm15, %v11323_v29, %v11324_v10  ;;  %v15832_v46 = vunpack.i.l.bf16 %v15819_v7 }
 0x417   : > { %v9816_v60 = vpack.c.bf16 %v11564_v54, %v15830_v22  ;;  %10091 = vmatpush1.bf16.msra.mxu1 %v10090_v3  ;;  %1506 = vmatprep.mubr.f32.mxu0 %v14165_v6  ;;  %v15833_v3 = vld [vmem:[#allocation19_spill] sm:$0xff]  ;;  %v11569_v22 = vunpack.i.h.bf16 %v11567_v18  ;;  %v11568_v39 = vunpack.i.l.bf16 %v11567_v18  ;;  %v15834_v5 = vpack.c.bf16 %v14080_v9, %v13898_v15  ;;  %v15837_v9 = vld [vmem:[#allocation28_spill] sm:$0xff] }
 0x418   : > { %v14352_v54 = vsel %vm6208_vm10, %v15832_v46, %v11354_v31  ;;  %v11359_v37 = vunpack.i.h.bf16 %v15833_v3  ;;  %v11358_v19 = vunpack.i.l.bf16 %v15833_v3  ;;  %v11284_v16 = vunpack.i.h.bf16 %v15815_v20  ;;  %5771 = vmatprep.mubr.f32.mxu1 %v14165_v6 }
 0x419   : > { %10093 = vmatprep.subr.bf16.mxu1 %v15834_v5  ;;  %9817 = vmatprep.subr.bf16.mxu0 %v9816_v60  ;;  %v14363_v10 = vsel %vm15835_vm7, %v11368_v38, %v15478_v55  ;;  %v15836_v31 = vunpack.i.h.bf16 %v15813_v42  ;;  %v11379_v60 = vunpack.i.h.bf16 %v15837_v9  ;;  %v11378_v18 = vunpack.i.l.bf16 %v15837_v9  ;;  %v9518_v38 = vld [vmem:[%s15250_s4 + $0x50] sm:$0xff] }
 0x41a   : > { %9517 = vmatmul.mubr.msk.f32.gmra.mrb[10].mxu0 %vm993_vm4, %v9515_v62  ;;  %v5822_v3 = vsel %vm5815_vm13, %v11224_v13, %v11568_v39  ;;  %9656 = vmatmul.mubr.msk.f32.vlgmr.msra.gmra.mrb[0].mxu1 %vm993_vm4, %v9654_v35  ;;  %v5823_v42 = vsel %vm5815_vm13, %v11568_v39, %v11569_v22  ;;  %v15838_v62 = vld [vmem:[#allocation29_spill] sm:$0xff]  ;;  %vm6339_vm3 = vcmask 343040   ;;  %v15839_v13 = vpack.c.bf16 %v14074_v43, %v13961_v56  ;;  %v11582_v35 = vpop.permute.xlu0 %11581  ;;  %v15840_v43 = vld [vmem:[#allocation30_spill] sm:$0xff] }
 0x41b   : > { %v14369_v46 = vpack.c.bf16 %v15836_v31, %v11329_v0  ;;  %9819 = vmatpush1.bf16.msra.mxu0 %v9818_v8  ;;  %v14382_v0 = vsel %vm6077_vm15, %v11343_v40, %v11323_v29  ;;  %v11384_v5 = vunpack.i.h.bf16 %v15838_v62  ;;  %v11383_v31 = vunpack.i.l.bf16 %v15838_v62  ;;  %v14390_v8 = vpop.permute.xlu1 %11571  ;;  %1619 = vmatprep.mubr.f32.mxu0 %v14165_v6  ;;  %v9655_v29 = vld [vmem:[%s15250_s4 + $0x278] sm:$0xff] }
 0x41c   : > { %9821 = vmatprep.subr.bf16.mxu0 %v14174_v11  ;;  %10095 = vmatpush1.bf16.msra.mxu1 %v15839_v13  ;;  %v10096_v9 = vpack.c.bf16 %v5823_v42, %v14139_v36  ;;  %v11584_v39 = vunpack.i.h.bf16 %v11582_v35  ;;  %v11583_v22 = vunpack.i.l.bf16 %v11582_v35  ;;  %v10098_v11 = vpack.c.bf16 %v5822_v3, %v14209_v12  ;;  %v15841_v36 = vld [vmem:[#allocation36_spill] sm:$0xff] }
 0x41d   : > { %5777 = vmatprep.mubr.f32.mxu1 %v14165_v6  ;;  %v14400_v56 = vsel %vm6208_vm10, %v11358_v19, %v11359_v37  ;;  %v11389_v40 = vunpack.i.h.bf16 %v15840_v43  ;;  %v11388_v62 = vunpack.i.l.bf16 %v15840_v43  ;;  %v11399_v42 = vunpack.i.h.bf16 %v15841_v36 }
 0x41e   : > { %v11398_v13 = vunpack.i.l.bf16 %v15841_v36  ;;  %9520 = vmatmul.mubr.msk.f32.vlgmr.msra.gmra.mrb[8].mxu0 %vm993_vm4, %v9518_v38  ;;  %10097 = vmatprep.subr.bf16.mxu1 %v10096_v9  ;;  %v15842_v35 = vunpack.i.l.bf16 %v15819_v7  ;;  %v14413_v12 = vsel %vm6208_vm10, %v11379_v60, %v11358_v19  ;;  %v15843_v37 = vunpack.i.h.bf16 %v15754_v24  ;;  %v9519_v38 = vld [vmem:[%s15250_s4 + $0x58] sm:$0xff]  ;;  %v14427_v60 = vpop.permute.xlu0 %11586 }
 0x41f   : > { %v1659_v43 = vsel %vm1655_vm0, %v11583_v22, %v11584_v39  ;;  %v15844_v55 = vpack.c.bf16 %v13966_v2, %v14133_v45  ;;  %v15845_v7 = vld [vmem:[#allocation31_spill] sm:$0xff]  ;;  %9657 = vmatmul.mubr.msk.f32.gmra.mrb[2].mxu1 %vm993_vm4, %v9655_v29  ;;  %v11592_v19 = vpop.permute.xlu1 %11591  ;;  %1625 = vmatprep.mubr.f32.mxu0 %v14165_v6  ;;  %v10116_v24 = vpack.c.bf16 %v14400_v56, %v14352_v54  ;;  %v9658_v29 = vld [vmem:[%s15250_s4 + $0x280] sm:$0xff]  ;;  %vm2129_vm0 = vcmask 908288  }
 0x420   : > { %v14410_v15 = vsel %vm6208_vm10, %v11378_v18, %v15842_v35  ;;  %v9824_v3 = vpack.c.bf16 %v11584_v39, %v15843_v37  ;;  %v11403_v9 = vunpack.i.l.bf16 %v15845_v7  ;;  %v15846_v18 = vld [vmem:[#allocation52_spill] sm:$0xff]  ;;  %v14433_v2 = vsel %vm6208_vm10, %v11383_v31, %v11384_v5  ;;  %v15847_v45 = vld [vmem:[#allocation35_spill] sm:$0xff]  ;;  %10099 = vmatpush1.bf16.msra.mxu1 %v10098_v11  ;;  %5902 = vmatprep.mubr.f32.mxu1 %v14165_v6 }
 0x421   : > { %9823 = vmatpush1.bf16.msra.mxu0 %v15844_v55  ;;  %v9826_v36 = vpack.c.bf16 %v1659_v43, %v15846_v18  ;;  %v11414_v55 = vunpack.i.h.bf16 %v15847_v45  ;;  %v11413_v39 = vunpack.i.l.bf16 %v15847_v45  ;;  %v11594_v22 = vunpack.i.h.bf16 %v11592_v19 }
 0x422   : > { %v11593_v35 = vunpack.i.l.bf16 %v11592_v19  ;;  %9825 = vmatprep.subr.bf16.mxu0 %v9824_v3  ;;  %v14441_v37 = vsel %vm2010_vm6, %v11388_v62, %v11389_v40  ;;  %v14444_v43 = vsel %vm2010_vm6, %v11398_v13, %v11399_v42  ;;  %v15848_v5 = vpack.c.bf16 %v14195_v25, %v13993_v48  ;;  %9521 = vmatmul.mubr.msk.f32.gmra.mrb[10].mxu0 %vm993_vm4, %v9519_v38  ;;  %v15849_v3 = vld [vmem:[#allocation33_spill] sm:$0xff]  ;;  %v9522_v48 = vld [vmem:[%s15250_s4 + $0x60] sm:$0xff] }
 0x423   : > { %v11419_v18 = vunpack.i.h.bf16 %v15849_v3  ;;  %v11418_v19 = vunpack.i.l.bf16 %v15849_v3  ;;  %v11344_v13 = vunpack.i.h.bf16 %v15831_v33  ;;  %v14464_v38 = vsel %vm6208_vm10, %v11403_v9, %v11383_v31  ;;  %9660 = vmatmul.mubr.msk.f32.vlgmr.msra.gmra.mrb[0].mxu1 %vm993_vm4, %v9658_v29  ;;  %v14468_v20 = vpop.permute.xlu1 %11596  ;;  %1738 = vmatprep.mubr.f32.mxu0 %v14165_v6  ;;  %v15852_v9 = vld [vmem:[#allocation41_spill] sm:$0xff] }
 0x424   : > { %10101 = vmatprep.subr.bf16.mxu1 %v15848_v5  ;;  %v5953_v62 = vsel %vm5946_vm8, %v11284_v16, %v11593_v35  ;;  %v5954_v25 = vsel %vm5946_vm8, %v11593_v35, %v11594_v22  ;;  %v11602_v16 = vpop.permute.xlu0 %11601  ;;  %v14471_v5 = vpack.c.bf16 %v11399_v42, %v11389_v40  ;;  %v15850_v22 = vpack.c.bf16 %v14189_v61, %v14041_v17  ;;  %v15851_v40 = vld [vmem:[#allocation39_spill] sm:$0xff] }
 0x425   : > { %9827 = vmatpush1.bf16.msra.mxu0 %v9826_v36  ;;  %v10104_v36 = vpack.c.bf16 %v5954_v25, %v14253_v59  ;;  %v10106_v3 = vpack.c.bf16 %v5953_v62, %v14313_v30  ;;  %v11604_v33 = vunpack.i.h.bf16 %v11602_v16  ;;  %v11603_v31 = vunpack.i.l.bf16 %v11602_v16  ;;  %5908 = vmatprep.mubr.f32.mxu1 %v14165_v6 }
 0x426   : > { %9829 = vmatprep.subr.bf16.mxu0 %v14265_v52  ;;  %10103 = vmatpush1.bf16.msra.mxu1 %v15850_v22  ;;  %v9659_v52 = vld [vmem:[%s15250_s4 + $0x288] sm:$0xff]  ;;  %v14484_v59 = vsel %vm6339_vm3, %v11413_v39, %v11414_v55  ;;  %v11424_v42 = vunpack.i.h.bf16 %v15851_v40  ;;  %v11423_v30 = vunpack.i.l.bf16 %v15851_v40  ;;  %v11428_v17 = vunpack.i.l.bf16 %v15852_v9  ;;  %v15856_v22 = vld [vmem:[#allocation42_spill] sm:$0xff] }
 0x427   : > { %v11429_v35 = vunpack.i.h.bf16 %v15852_v9  ;;  %v15853_v29 = vunpack.i.h.bf16 %v15794_v21  ;;  %vm15854_vm8 = vcmask 932864   ;;  %v15855_v25 = vpack.c.bf16 %v14102_v51, %v14223_v4  ;;  %9661 = vmatmul.mubr.msk.f32.gmra.mrb[2].mxu1 %vm993_vm4, %v9659_v52  ;;  %10105 = vmatprep.subr.bf16.mxu1 %v10104_v36  ;;  %v15857_v4 = vld [vmem:[#allocation43_spill] sm:$0xff]  ;;  %v15858_v52 = vld [vmem:[#allocation40_spill] sm:$0xff] }
 0x428   : > { %9524 = vmatmul.mubr.msk.f32.vlgmr.msra.gmra.mrb[8].mxu0 %vm993_vm4, %v9522_v48  ;;  %v1777_v55 = vsel %vm15854_vm8, %v11603_v31, %v11604_v33  ;;  %v9523_v48 = vld [vmem:[%s15250_s4 + $0x68] sm:$0xff]  ;;  %v14504_v16 = vsel %vm6339_vm3, %v11418_v19, %v11419_v18  ;;  %v11454_v61 = vunpack.i.h.bf16 %v15856_v22  ;;  %v11453_v9 = vunpack.i.l.bf16 %v15856_v22  ;;  %v14510_v31 = vpop.permute.xlu0 %11606  ;;  %6033 = vmatprep.mubr.f32.mxu1 %v14165_v6 }
 0x429   : > { %v9832_v62 = vpack.c.bf16 %v11604_v33, %v15853_v29  ;;  %9831 = vmatpush1.bf16.msra.mxu0 %v15855_v25  ;;  %v9834_v21 = vpack.c.bf16 %v1777_v55, %v14186_v34  ;;  %v11612_v33 = vpop.permute.xlu1 %11611  ;;  %v11449_v29 = vunpack.i.h.bf16 %v15857_v4  ;;  %v11448_v18 = vunpack.i.l.bf16 %v15857_v4  ;;  %1744 = vmatprep.mubr.f32.mxu0 %v14165_v6  ;;  %v9662_v34 = vld [vmem:[%s15250_s4 + $0x290] sm:$0xff] }
 0x42a   : > { %10107 = vmatpush1.bf16.msra.mxu1 %v10106_v3  ;;  %v11614_v25 = vunpack.i.h.bf16 %v11612_v33  ;;  %v11613_v11 = vunpack.i.l.bf16 %v11612_v33  ;;  %v14523_v36 = vsel %vm2010_vm6, %v11423_v30, %v11424_v42  ;;  %v11439_v55 = vunpack.i.h.bf16 %v15858_v52 }
 0x42b   : > { %v11438_v22 = vunpack.i.l.bf16 %v15858_v52  ;;  %v14530_v3 = vsel %vm6339_vm3, %v11428_v17, %v11413_v39  ;;  %v15859_v33 = vpack.c.bf16 %v14282_v44, %v14160_v49  ;;  %v14537_v4 = vsel %vm6339_vm3, %v11429_v35, %v11418_v19  ;;  %9833 = vmatprep.subr.bf16.mxu0 %v9832_v62  ;;  %v15860_v17 = vld [vmem:[#allocation47_spill] sm:$0xff] }
 0x42c   : > { %9525 = vmatmul.mubr.msk.f32.gmra.mrb[10].mxu0 %vm993_vm4, %v9523_v48  ;;  %vm6470_vm5 = vcmask 334848   ;;  %v6084_v30 = vsel %vm6077_vm15, %v11344_v13, %v11613_v11  ;;  %v6085_v45 = vsel %vm6077_vm15, %v11613_v11, %v11614_v25  ;;  %v14543_v39 = vsel %vm2129_vm0, %v11453_v9, %v11454_v61  ;;  %v11622_v19 = vpop.permute.xlu0 %11621  ;;  %v9526_v13 = vld [vmem:[%s15250_s4 + $0x70] sm:$0xff]  ;;  %v9663_v25 = vld [vmem:[%s15250_s4 + $0x298] sm:$0xff]  ;;  %vm15864_vm15 = vmmov %vm15828_vm1 }
 0x42d   : > { %10109 = vmatprep.subr.bf16.mxu1 %v15859_v33  ;;  %v11469_v51 = vunpack.i.h.bf16 %v15860_v17  ;;  %v11468_v49 = vunpack.i.l.bf16 %v15860_v17  ;;  %9835 = vmatpush1.bf16.msra.mxu0 %v9834_v21  ;;  %v14548_v44 = vpop.permute.xlu1 %11616  ;;  %v10112_v35 = vpack.c.bf16 %v6085_v45, %v14347_v41  ;;  %v14555_v11 = vsel %vm2129_vm0, %v11448_v18, %v11449_v29 }
 0x42e   : > { %9664 = vmatmul.mubr.msk.f32.vlgmr.msra.gmra.mrb[0].mxu1 %vm993_vm4, %v9662_v34  ;;  %v10114_v62 = vpack.c.bf16 %v6084_v30, %v14382_v0  ;;  %9837 = vmatprep.subr.bf16.mxu0 %v14369_v46  ;;  %v15861_v48 = vpack.c.bf16 %v14275_v57, %v14232_v58  ;;  %v11624_v9 = vunpack.i.h.bf16 %v11622_v19  ;;  %v11623_v21 = vunpack.i.l.bf16 %v11622_v19  ;;  %v15862_v34 = vld [vmem:[#allocation50_spill] sm:$0xff] }
 0x42f   : > { %v11474_v33 = vunpack.i.h.bf16 %v15862_v34  ;;  %v11473_v41 = vunpack.i.l.bf16 %v15862_v34  ;;  %1856 = vmatprep.mubr.f32.mxu0 %v14165_v6  ;;  %6039 = vmatprep.mubr.f32.mxu1 %v14165_v6  ;;  %v10126_v46 = vpack.c.bf16 %v14537_v4, %v14530_v3  ;;  %v14574_v58 = vsel %vm6339_vm3, %v11438_v22, %v11439_v55 }
 0x430   : > { %10111 = vmatpush1.bf16.msra.mxu1 %v15861_v48  ;;  %v15863_v57 = vunpack.i.h.bf16 %v15827_v23  ;;  %v1895_v18 = vsel %vm15864_vm15, %v11623_v21, %v11624_v9  ;;  %9528 = vmatmul.mubr.msk.f32.vlgmr.msra.gmra.mrb[8].mxu0 %vm993_vm4, %v9526_v13  ;;  %v14580_v30 = vpack.c.bf16 %v11454_v61, %v11449_v29  ;;  %v11404_v45 = vunpack.i.h.bf16 %v15845_v7  ;;  %v14588_v23 = vpop.permute.xlu0 %11626  ;;  %v9527_v13 = vld [vmem:[%s15250_s4 + $0x78] sm:$0xff]  ;;  %v15866_v7 = vld [vmem:[#allocation48_spill] sm:$0xff] }
 0x431   : > { %10113 = vmatprep.subr.bf16.mxu1 %v10112_v35  ;;  %v9842_v19 = vpack.c.bf16 %v1895_v18, %v14363_v10  ;;  %v15865_v48 = vpack.c.bf16 %v14308_v1, %v14326_v32  ;;  %v11632_v55 = vpop.permute.xlu1 %11631  ;;  %v14598_v10 = vsel %vm6470_vm5, %v11468_v49, %v11469_v51  ;;  %v11463_v1 = vunpack.i.l.bf16 %v15866_v7  ;;  %v15867_v32 = vld [vmem:[#allocation49_spill] sm:$0xff]  ;;  %1862 = vmatprep.mubr.f32.mxu0 %v14165_v6  ;;  %v9666_v21 = vld [vmem:[%s15250_s4 + $0x2a0] sm:$0xff] }
 0x432   : > { %v9840_v0 = vpack.c.bf16 %v11624_v9, %v15863_v57  ;;  %9665 = vmatmul.mubr.msk.f32.gmra.mrb[2].mxu1 %vm993_vm4, %v9663_v25  ;;  %v11484_v29 = vunpack.i.h.bf16 %v15867_v32  ;;  %v11634_v35 = vunpack.i.h.bf16 %v11632_v55  ;;  %v11633_v9 = vunpack.i.l.bf16 %v11632_v55  ;;  %v15868_v55 = vld [vmem:[#allocation53_spill] sm:$0xff] }
 0x433   : > { %9839 = vmatpush1.bf16.msra.mxu0 %v15865_v48  ;;  %v11483_v25 = vunpack.i.l.bf16 %v15867_v32  ;;  %v11494_v34 = vunpack.i.h.bf16 %v14046_v27  ;;  %v11493_v51 = vunpack.i.l.bf16 %v14046_v27  ;;  %v11519_v57 = vunpack.i.h.bf16 %v14123_v47  ;;  %6164 = vmatprep.mubr.f32.mxu1 %v14165_v6 }
 0x434   : > { %10115 = vmatpush1.bf16.msra.mxu1 %v10114_v62  ;;  %9841 = vmatprep.subr.bf16.mxu0 %v9840_v0  ;;  %v14613_v62 = vsel %vm6470_vm5, %v11473_v41, %v11474_v33  ;;  %v11518_v18 = vunpack.i.l.bf16 %v14123_v47  ;;  %v6215_v48 = vsel %vm6208_vm10, %v11404_v45, %v11633_v9  ;;  %v6216_v27 = vsel %vm6208_vm10, %v11633_v9, %v11634_v35  ;;  %v11642_v47 = vpop.permute.xlu0 %11641  ;;  %v9530_v33 = vld [vmem:[%s15250_s4 + $0x80] sm:$0xff] }
 0x435   : > { %10117 = vmatprep.subr.bf16.mxu1 %v10116_v24  ;;  %9529 = vmatmul.mubr.msk.f32.gmra.mrb[10].mxu0 %vm993_vm4, %v9527_v13  ;;  %v11499_v61 = vunpack.i.h.bf16 %v15868_v55  ;;  %v11498_v54 = vunpack.i.l.bf16 %v15868_v55  ;;  %v11509_v56 = vunpack.i.h.bf16 %v14084_v53  ;;  %v14625_v24 = vpop.permute.xlu1 %11636  ;;  %v10120_v0 = vpack.c.bf16 %v6216_v27, %v14433_v2  ;;  %v9674_v55 = vld [vmem:[%s15250_s4 + $0x2c0] sm:$0xff] }
 0x436   : > { %v11508_v45 = vunpack.i.l.bf16 %v14084_v53  ;;  %v10122_v13 = vpack.c.bf16 %v6215_v48, %v14464_v38  ;;  %v11644_v35 = vunpack.i.h.bf16 %v11642_v47  ;;  %v11643_v9 = vunpack.i.l.bf16 %v11642_v47  ;;  %1974 = vmatprep.mubr.f32.mxu0 %v14165_v6 }
 0x437   : > { %9843 = vmatpush1.bf16.msra.mxu0 %v9842_v19  ;;  %9668 = vmatmul.mubr.msk.f32.vlgmr.msra.gmra.mrb[0].mxu1 %vm993_vm4, %v9666_v21  ;;  %v15869_v19 = vpack.c.bf16 %v14413_v12, %v14410_v15  ;;  %v9667_v21 = vld [vmem:[%s15250_s4 + $0x2a8] sm:$0xff]  ;;  %v14643_v2 = vsel %vm6339_vm3, %v11463_v1, %v11438_v22  ;;  %v14648_v53 = vsel %vm6470_vm5, %v11493_v51, %v11468_v49  ;;  %vm2248_vm10 = vcmask 900096  }
 0x438   : > { %9845 = vmatprep.subr.bf16.mxu0 %v14471_v5  ;;  %v14651_v38 = vsel %vm6470_vm5, %v11494_v34, %v11473_v41  ;;  %6170 = vmatprep.mubr.f32.mxu1 %v14165_v6  ;;  %v14656_v15 = vsel %vm2248_vm10, %v11518_v18, %v11519_v57  ;;  %v9848_v12 = vpack.c.bf16 %v11644_v35, %v11424_v42  ;;  %v11464_v52 = vunpack.i.h.bf16 %v15866_v7  ;;  %v14673_v42 = vpop.permute.xlu0 %11656  ;;  %v9531_v41 = vld [vmem:[%s15250_s4 + $0x88] sm:$0xff] }
 0x439   : > { %10119 = vmatpush1.bf16.msra.mxu1 %v15869_v19  ;;  %v2014_v5 = vsel %vm2010_vm6, %v11643_v9, %v11644_v35  ;;  %v14666_v22 = vsel %vm2129_vm0, %v11483_v25, %v11484_v29  ;;  %v15870_v49 = vpack.c.bf16 %v14444_v43, %v14441_v37  ;;  %v11647_v40 = vpop.permute.xlu1 %11646  ;;  %v10132_v7 = vpack.c.bf16 %v14613_v62, %v14598_v10  ;;  %v9670_v37 = vld [vmem:[%s15250_s4 + $0x2b0] sm:$0xff]  ;;  %v9671_v35 = vld [vmem:[%s15250_s4 + $0x2b8] sm:$0xff] }
 0x43a   : > { %9532 = vmatmul.mubr.msk.f32.vlgmr.msra.gmra.mrb[8].mxu0 %vm993_vm4, %v9530_v33  ;;  %10121 = vmatprep.subr.bf16.mxu1 %v10120_v0  ;;  %v9850_v17 = vpack.c.bf16 %v2014_v5, %v14523_v36  ;;  %v14681_v1 = vsel %vm2248_vm10, %v11508_v45, %v11509_v56  ;;  %v11649_v36 = vunpack.i.h.bf16 %v11647_v40  ;;  %v11648_v25 = vunpack.i.l.bf16 %v11647_v40 }
 0x43b   : > { %9847 = vmatpush1.bf16.msra.mxu0 %v15870_v49  ;;  %9669 = vmatmul.mubr.msk.f32.gmra.mrb[2].mxu1 %vm993_vm4, %v9667_v21  ;;  %v14690_v43 = vsel %vm6470_vm5, %v11498_v54, %v11499_v61  ;;  %vm6601_vm1 = vcmask 326656   ;;  %v15871_v34 = vpack.c.bf16 %v14504_v16, %v14484_v59  ;;  %v14695_v51 = vpack.c.bf16 %v11519_v57, %v11509_v56 }
 0x43c   : > { %1980 = vmatprep.mubr.f32.mxu0 %v14165_v6  ;;  %9849 = vmatprep.subr.bf16.mxu0 %v9848_v12  ;;  %v10134_v18 = vpack.c.bf16 %v14651_v38, %v14648_v53  ;;  %v9862_v48 = vpack.c.bf16 %v14656_v15, %v14681_v1  ;;  %v11549_v27 = vunpack.i.h.bf16 %v14256_v63  ;;  %v11548_v47 = vunpack.i.l.bf16 %v14256_v63  ;;  %v11662_v45 = vpop.permute.xlu0 %11661  ;;  %v9678_v1 = vld [vmem:[%s15250_s4 + $0x2d0] sm:$0xff] }
 0x43d   : > { %10123 = vmatpush1.bf16.msra.mxu1 %v10122_v13  ;;  %vm2367_vm7 = vcmask 891904   ;;  %v6346_v61 = vsel %vm6339_vm3, %v11464_v52, %v11648_v25  ;;  %6295 = vmatprep.mubr.f32.mxu1 %v14165_v6  ;;  %v6347_v59 = vsel %vm6339_vm3, %v11648_v25, %v11649_v36  ;;  %v11529_v16 = vunpack.i.h.bf16 %v14163_v50  ;;  %v14712_v0 = vpop.permute.xlu1 %11651  ;;  %v9534_v13 = vld [vmem:[%s15250_s4 + $0x90] sm:$0xff] }
 0x43e   : > { %10125 = vmatprep.subr.bf16.mxu1 %v15871_v34  ;;  %9533 = vmatmul.mubr.msk.f32.gmra.mrb[10].mxu0 %vm993_vm4, %v9531_v41  ;;  %v11528_v57 = vunpack.i.l.bf16 %v14163_v50  ;;  %v11539_v56 = vunpack.i.h.bf16 %v14215_v26  ;;  %v11538_v33 = vunpack.i.l.bf16 %v14215_v26  ;;  %v11559_v19 = vunpack.i.h.bf16 %v14298_v14  ;;  %v9535_v41 = vld [vmem:[%s15250_s4 + $0x98] sm:$0xff] }
 0x43f   : > { %9851 = vmatpush1.bf16.msra.mxu0 %v9850_v17  ;;  %v11664_v50 = vunpack.i.h.bf16 %v11662_v45  ;;  %v11663_v26 = vunpack.i.l.bf16 %v11662_v45  ;;  %v10128_v9 = vpack.c.bf16 %v6347_v59, %v14574_v58  ;;  %v11558_v21 = vunpack.i.l.bf16 %v14298_v14  ;;  %2093 = vmatprep.mubr.f32.mxu0 %v14165_v6 }
 0x440   : > { %9672 = vmatmul.mubr.msk.f32.vlgmr.msra.gmra.mrb[0].mxu1 %vm993_vm4, %v9670_v37  ;;  %9853 = vmatprep.subr.bf16.mxu0 %v14580_v30  ;;  %v11579_v12 = vunpack.i.h.bf16 %v14339_v28  ;;  %v11578_v5 = vunpack.i.l.bf16 %v14339_v28  ;;  %v10130_v30 = vpack.c.bf16 %v6346_v61, %v14643_v2  ;;  %v11574_v3 = vunpack.i.h.bf16 %v14390_v8  ;;  %v14750_v40 = vpop.permute.xlu0 %11666 }
 0x441   : > { %10127 = vmatpush1.bf16.msra.mxu1 %v10126_v46  ;;  %6301 = vmatprep.mubr.f32.mxu1 %v14165_v6  ;;  %v9856_v4 = vpack.c.bf16 %v11664_v50, %v11484_v29  ;;  %v2133_v46 = vsel %vm2129_vm0, %v11663_v26, %v11664_v50  ;;  %v14740_v58 = vsel %vm6601_vm1, %v11548_v47, %v11549_v27  ;;  %v11573_v2 = vunpack.i.l.bf16 %v14390_v8  ;;  %v11672_v29 = vpop.permute.xlu1 %11671 }
 0x442   : > { %9536 = vmatmul.mubr.msk.f32.vlgmr.msra.gmra.mrb[8].mxu0 %vm993_vm4, %v9534_v13  ;;  %v11599_v52 = vunpack.i.h.bf16 %v14468_v20  ;;  %v11598_v17 = vunpack.i.l.bf16 %v14468_v20  ;;  %v9858_v49 = vpack.c.bf16 %v2133_v46, %v14666_v22  ;;  %v15872_v32 = vpack.c.bf16 %v14543_v39, %v14555_v11  ;;  %10129 = vmatprep.subr.bf16.mxu1 %v10128_v9 }
 0x443   : > { %v14758_v8 = vsel %vm6470_vm5, %v11528_v57, %v11498_v54  ;;  %v11674_v20 = vunpack.i.h.bf16 %v11672_v29  ;;  %v11673_v22 = vunpack.i.l.bf16 %v11672_v29  ;;  %2099 = vmatprep.mubr.f32.mxu0 %v14165_v6  ;;  %v14762_v39 = vsel %vm6601_vm1, %v11538_v33, %v11539_v56 }
 0x444   : > { %9855 = vmatpush1.bf16.msra.mxu0 %v15872_v32  ;;  %9673 = vmatmul.mubr.msk.f32.gmra.mrb[2].mxu1 %vm993_vm4, %v9671_v35  ;;  %v14767_v11 = vsel %vm2248_vm10, %v11558_v21, %v11559_v19  ;;  %vm6732_vm3 = vcmask 318464   ;;  %v10140_v54 = vpack.c.bf16 %v14740_v58, %v14762_v39  ;;  %v14777_v36 = vsel %vm6601_vm1, %v11578_v5, %v11579_v12  ;;  %v11682_v62 = vpop.permute.xlu0 %11681  ;;  %v9539_v12 = vld [vmem:[%s15250_s4 + $0xa8] sm:$0xff] }
 0x445   : > { %10131 = vmatpush1.bf16.msra.mxu1 %v10130_v30  ;;  %9857 = vmatprep.subr.bf16.mxu0 %v9856_v4  ;;  %v11589_v25 = vunpack.i.h.bf16 %v14427_v60  ;;  %v11588_v37 = vunpack.i.l.bf16 %v14427_v60  ;;  %v6477_v34 = vsel %vm6470_vm5, %v11529_v16, %v11673_v22  ;;  %v6478_v27 = vsel %vm6470_vm5, %v11673_v22, %v11674_v20  ;;  %v14800_v10 = vpop.permute.xlu1 %11676 }
 0x446   : > { %10133 = vmatprep.subr.bf16.mxu1 %v10132_v7  ;;  %9537 = vmatmul.mubr.msk.f32.gmra.mrb[10].mxu0 %vm993_vm4, %v9535_v41  ;;  %v14788_v61 = vsel %vm6601_vm1, %v11573_v2, %v11538_v33  ;;  %v14793_v59 = vsel %vm6601_vm1, %v11574_v3, %v11548_v47  ;;  %v14796_v60 = vsel %vm2367_vm7, %v11598_v17, %v11599_v52  ;;  %v11608_v16 = vunpack.i.l.bf16 %v14510_v31  ;;  %v9538_v7 = vld [vmem:[%s15250_s4 + $0xa0] sm:$0xff]  ;;  %v9542_v41 = vld [vmem:[%s15250_s4 + $0xb0] sm:$0xff] }
 0x447   : > { %6426 = vmatprep.mubr.f32.mxu1 %v14165_v6  ;;  %v11619_v63 = vunpack.i.h.bf16 %v14548_v44  ;;  %v11684_v47 = vunpack.i.h.bf16 %v11682_v62  ;;  %v11683_v57 = vunpack.i.l.bf16 %v11682_v62  ;;  %v10136_v56 = vpack.c.bf16 %v6478_v27, %v14690_v43  ;;  %2212 = vmatprep.mubr.f32.mxu0 %v14165_v6  ;;  %v9543_v62 = vld [vmem:[%s15250_s4 + $0xb8] sm:$0xff] }
 0x448   : > { %9859 = vmatpush1.bf16.msra.mxu0 %v9858_v49  ;;  %9676 = vmatmul.mubr.msk.f32.vlgmr.msra.gmra.mrb[0].mxu1 %vm993_vm4, %v9674_v55  ;;  %v11618_v33 = vunpack.i.l.bf16 %v14548_v44  ;;  %v11629_v45 = vunpack.i.h.bf16 %v14588_v23  ;;  %v11628_v13 = vunpack.i.l.bf16 %v14588_v23  ;;  %v10138_v50 = vpack.c.bf16 %v6477_v34, %v14758_v8  ;;  %v14837_v21 = vpop.permute.xlu0 %11686 }
 0x449   : > { %9861 = vmatprep.subr.bf16.mxu0 %v14695_v51  ;;  %10135 = vmatpush1.bf16.msra.mxu1 %v10134_v18  ;;  %v9675_v51 = vld [vmem:[%s15250_s4 + $0x2c8] sm:$0xff]  ;;  %v10142_v43 = vpack.c.bf16 %v14793_v59, %v14788_v61  ;;  %v14823_v44 = vsel %vm2367_vm7, %v11588_v37, %v11589_v25  ;;  %v9868_v26 = vpack.c.bf16 %v11599_v52, %v11589_v25  ;;  %v11609_v38 = vunpack.i.h.bf16 %v14510_v31  ;;  %v11692_v9 = vpop.permute.xlu1 %11691 }
 0x44a   : > { %v2252_v23 = vsel %vm2248_vm10, %v11683_v57, %v11684_v47  ;;  %v9870_v53 = vpack.c.bf16 %v14796_v60, %v14823_v44  ;;  %v11653_v18 = vunpack.i.l.bf16 %v14712_v0  ;;  %v9864_v35 = vpack.c.bf16 %v11684_v47, %v11559_v19  ;;  %6432 = vmatprep.mubr.f32.mxu1 %v14165_v6  ;;  %10137 = vmatprep.subr.bf16.mxu1 %v10136_v56  ;;  %v14905_v56 = vld [vmem:[#allocation2 + $0x10] sm:$0xff]  ;;  %v9682_v60 = vld [vmem:[%s15250_s4 + $0x2e0] sm:$0xff] }
 0x44b   : > { %9540 = vmatmul.mubr.msk.f32.vlgmr.msra.gmra.mrb[8].mxu0 %vm993_vm4, %v9538_v7  ;;  %v11654_v31 = vunpack.i.h.bf16 %v14712_v0  ;;  %v9866_v30 = vpack.c.bf16 %v2252_v23, %v14767_v11  ;;  %v11694_v14 = vunpack.i.h.bf16 %v11692_v9  ;;  %v11693_v19 = vunpack.i.l.bf16 %v11692_v9  ;;  %v9679_v11 = vld [vmem:[%s15250_s4 + $0x2d8] sm:$0xff]  ;;  %v9546_v9 = vld [vmem:[%s15250_s4 + $0xc0] sm:$0xff] }
 0x44c   : > { %9863 = vmatpush1.bf16.msra.mxu0 %v9862_v48  ;;  %9677 = vmatmul.mubr.msk.f32.gmra.mrb[2].mxu1 %vm993_vm4, %v9675_v51  ;;  %v6606_v15 = vsel %vm6601_vm1, %v11608_v16, %v11578_v5  ;;  %v6734_v48 = vsel %vm6732_vm3, %v11618_v33, %v11619_v63  ;;  %v6736_v0 = vsel %vm6732_vm3, %v11628_v13, %v11629_v45  ;;  %v11639_v3 = vunpack.i.h.bf16 %v14625_v24 }
 0x44d   : > { %10139 = vmatpush1.bf16.msra.mxu1 %v10138_v50  ;;  %2218 = vmatprep.mubr.f32.mxu0 %v14165_v6  ;;  %v11638_v4 = vunpack.i.l.bf16 %v14625_v24  ;;  %v6608_v46 = vsel %vm6601_vm1, %v11609_v38, %v11693_v19  ;;  %v6609_v28 = vsel %vm6601_vm1, %v11693_v19, %v11694_v14  ;;  %v11659_v5 = vunpack.i.h.bf16 %v14673_v42  ;;  %v14865_v52 = vpop.permute.xlu1 %11696  ;;  %v11702_v24 = vpop.permute.xlu0 %11701 }
 0x44e   : > { %10141 = vmatprep.subr.bf16.mxu1 %v10140_v54  ;;  %v11658_v58 = vunpack.i.l.bf16 %v14673_v42  ;;  %v14862_v2 = vsel %vm6732_vm3, %v11653_v18, %v11618_v33  ;;  %9865 = vmatprep.subr.bf16.mxu0 %v9864_v35  ;;  %v10144_v17 = vpack.c.bf16 %v6609_v28, %v14777_v36  ;;  %v14869_v49 = vsel %vm6732_vm3, %v11654_v31, %v11628_v13  ;;  %v9683_v31 = vld [vmem:[%s15250_s4 + $0x2e8] sm:$0xff] }
 0x44f   : > { %9541 = vmatmul.mubr.msk.f32.gmra.mrb[10].mxu0 %vm993_vm4, %v9539_v12  ;;  %6557 = vmatprep.mubr.f32.mxu1 %v14165_v6  ;;  %v11669_v32 = vunpack.i.h.bf16 %v14750_v40  ;;  %v11704_v42 = vunpack.i.h.bf16 %v11702_v24  ;;  %v11703_v29 = vunpack.i.l.bf16 %v11702_v24  ;;  %v11668_v8 = vunpack.i.l.bf16 %v14750_v40 }
 0x450   : > { %9867 = vmatpush1.bf16.msra.mxu0 %v9866_v30  ;;  %9680 = vmatmul.mubr.msk.f32.vlgmr.msra.gmra.mrb[0].mxu1 %vm993_vm4, %v9678_v1  ;;  %v11679_v20 = vunpack.i.h.bf16 %v14800_v10  ;;  %v11678_v22 = vunpack.i.l.bf16 %v14800_v10  ;;  %v10146_v39 = vpack.c.bf16 %v6608_v46, %v6606_v15  ;;  %vm2486_vm8 = vcmask 883712  }
 0x451   : > { %9869 = vmatprep.subr.bf16.mxu0 %v9868_v26  ;;  %10143 = vmatpush1.bf16.msra.mxu1 %v10142_v43  ;;  %v9872_v55 = vpack.c.bf16 %v11704_v42, %v11639_v3  ;;  %v2371_v54 = vsel %vm2367_vm7, %v11703_v29, %v11704_v42  ;;  %v10148_v40 = vpack.c.bf16 %v6736_v0, %v6734_v48  ;;  %v11688_v37 = vunpack.i.l.bf16 %v14837_v21  ;;  %v11707_v34 = vpop.permute.xlu1 %11706  ;;  %v14890_v27 = vpop.permute.xlu0 %11716 }
 0x452   : > { %2331 = vmatprep.mubr.f32.mxu0 %v14165_v6  ;;  %6563 = vmatprep.mubr.f32.mxu1 %v14165_v6  ;;  %v2370_v36 = vsel %vm2367_vm7, %v11638_v4, %v11639_v3  ;;  %v10150_v25 = vpack.c.bf16 %v14869_v49, %v14862_v2  ;;  %v6738_v61 = vsel %vm6732_vm3, %v11658_v58, %v11659_v5  ;;  %v11689_v59 = vunpack.i.h.bf16 %v14837_v21  ;;  %v9547_v5 = vld [vmem:[%s15250_s4 + $0xc8] sm:$0xff] }
 0x453   : > { %9544 = vmatmul.mubr.msk.f32.vlgmr.msra.gmra.mrb[8].mxu0 %vm993_vm4, %v9542_v41  ;;  %10145 = vmatprep.subr.bf16.mxu1 %v10144_v17  ;;  %v9874_v16 = vpack.c.bf16 %v2371_v54, %v2370_v36  ;;  %v11709_v6 = vunpack.i.h.bf16 %v11707_v34  ;;  %v11708_v10 = vunpack.i.l.bf16 %v11707_v34  ;;  %v2487_v7 = vsel %vm2486_vm8, %v11668_v8, %v11669_v32  ;;  %v9690_v34 = vld [vmem:[%s15250_s4 + $0x300] sm:$0xff] }
 0x454   : > { %9871 = vmatpush1.bf16.msra.mxu0 %v9870_v53  ;;  %9681 = vmatmul.mubr.msk.f32.gmra.mrb[2].mxu1 %vm993_vm4, %v9679_v11  ;;  %v2488_v63 = vsel %vm2486_vm8, %v11678_v22, %v11679_v20  ;;  %v11719_v47 = vunpack.i.h.bf16 %v14890_v27  ;;  %v11718_v57 = vunpack.i.l.bf16 %v14890_v27  ;;  %v9876_v33 = vpack.c.bf16 %v11679_v20, %v11669_v32  ;;  %v9550_v22 = vld [vmem:[%s15250_s4 + $0xd0] sm:$0xff]  ;;  %v9691_v27 = vld [vmem:[%s15250_s4 + $0x308] sm:$0xff] }
 0x455   : > { %10147 = vmatpush1.bf16.msra.mxu1 %v10146_v39  ;;  %2337 = vmatprep.mubr.f32.mxu0 %v14905_v56  ;;  %v6739_v45 = vsel %vm6732_vm3, %v11689_v59, %v11708_v10  ;;  %v6740_v13 = vsel %vm6732_vm3, %v11708_v10, %v11709_v6  ;;  %vm6863_vm5 = vcmask 310272   ;;  %v6737_v50 = vsel %vm6732_vm3, %v11688_v37, %v11658_v58  ;;  %v11712_v44 = vpop.permute.xlu1 %11711  ;;  %v11727_v26 = vpop.permute.xlu0 %11726  ;;  %v9687_v39 = vld [vmem:[%s15250_s4 + $0x2f8] sm:$0xff] }
 0x456   : > { %10149 = vmatprep.subr.bf16.mxu1 %v10148_v40  ;;  %9873 = vmatprep.subr.bf16.mxu0 %v9872_v55  ;;  %v11699_v51 = vunpack.i.h.bf16 %v14865_v52  ;;  %v11698_v43 = vunpack.i.l.bf16 %v14865_v52  ;;  %v10152_v23 = vpack.c.bf16 %v6740_v13, %v6738_v61  ;;  %v11714_v53 = vunpack.i.h.bf16 %v11712_v44  ;;  %v9686_v52 = vld [vmem:[%s15250_s4 + $0x2f0] sm:$0xff]  ;;  %v9551_v37 = vld [vmem:[%s15250_s4 + $0xd8] sm:$0xff] }
 0x457   : > { %9545 = vmatmul.mubr.msk.f32.gmra.mrb[10].mxu0 %vm993_vm4, %v9543_v62  ;;  %6688 = vmatprep.mubr.f32.mxu1 %v14905_v56  ;;  %v11713_v38 = vunpack.i.l.bf16 %v11712_v44  ;;  %v11729_v18 = vunpack.i.h.bf16 %v11727_v26  ;;  %v11728_v35 = vunpack.i.l.bf16 %v11727_v26  ;;  %v9878_v21 = vpack.c.bf16 %v2488_v63, %v2487_v7 }
 0x458   : > { %9875 = vmatpush1.bf16.msra.mxu0 %v9874_v16  ;;  %9684 = vmatmul.mubr.msk.f32.vlgmr.msra.gmra.mrb[0].mxu1 %vm993_vm4, %v9682_v60  ;;  %v10154_v12 = vpack.c.bf16 %v6739_v45, %v6737_v50  ;;  %v6867_v30 = vsel %vm6863_vm5, %v11718_v57, %v11719_v47  ;;  %v2489_v1 = vsel %vm2486_vm8, %v11698_v43, %v11699_v51 }
 0x459   : > { %9877 = vmatprep.subr.bf16.mxu0 %v9876_v33  ;;  %10151 = vmatpush1.bf16.msra.mxu1 %v10150_v25  ;;  %v9880_v14 = vpack.c.bf16 %v11729_v18, %v11699_v51  ;;  %v2490_v19 = vsel %vm2486_vm8, %v11728_v35, %v11729_v18  ;;  %v6865_v15 = vsel %vm6863_vm5, %v11713_v38, %v11714_v53  ;;  %v11722_v48 = vpop.permute.xlu1 %11721  ;;  %v11732_v0 = vpop.permute.xlu0 %11731  ;;  %vm15876_vm8 = vcmask 1047912  }
 0x45a   : > { %2450 = vmatprep.mubr.f32.mxu0 %v14905_v56  ;;  %6694 = vmatprep.mubr.f32.mxu1 %v14905_v56  ;;  %v10156_v3 = vpack.c.bf16 %v6867_v30, %v6865_v15  ;;  %v9882_v4 = vpack.c.bf16 %v2490_v19, %v2489_v1  ;;  %v11724_v46 = vunpack.i.h.bf16 %v11722_v48  ;;  %v11723_v28 = vunpack.i.l.bf16 %v11722_v48  ;;  %v15873_v30 = vld [vmem:[#allocation6_spill] sm:$0xff]  ;;  %v15874_v15 = vld [vmem:[#allocation7_spill] sm:$0xff] }
 0x45b   : > { %9548 = vmatmul.mubr.msk.f32.vlgmr.msra.gmra.mrb[8].mxu0 %vm993_vm4, %v9546_v9  ;;  %10153 = vmatprep.subr.bf16.mxu1 %v10152_v23  ;;  %v11734_v58 = vunpack.i.h.bf16 %v11732_v0  ;;  %v11733_v2 = vunpack.i.l.bf16 %v11732_v0 }
 0x45c   : > { %9879 = vmatpush1.bf16.msra.mxu0 %v9878_v21  ;;  %9685 = vmatmul.mubr.msk.f32.gmra.mrb[2].mxu1 %vm993_vm4, %v9683_v31  ;;  %v6864_v24 = vsel %vm6863_vm5, %v11723_v28, %v11713_v38  ;;  %v6866_v17 = vsel %vm6863_vm5, %v11724_v46, %v11718_v57 }
 0x45d   : > { %10155 = vmatpush1.bf16.msra.mxu1 %v10154_v12  ;;  %2456 = vmatprep.mubr.f32.mxu0 %v14905_v56  ;;  %v10158_v49 = vpack.c.bf16 %v6866_v17, %v6864_v24  ;;  %v11737_v32 = vpop.permute.xlu1 %11736  ;;  %v11742_v42 = vpop.permute.xlu0 %11741  ;;  %v6869_v11 = vsel %vm6863_vm5, %v11733_v2, %v11734_v58 }
 0x45e   : > { %9881 = vmatprep.subr.bf16.mxu0 %v9880_v14  ;;  %6819 = vmatprep.mubr.f32.mxu1 %v14905_v56  ;;  %v11739_v29 = vunpack.i.h.bf16 %v11737_v32  ;;  %v11738_v41 = vunpack.i.l.bf16 %v11737_v32  ;;  %v11744_v8 = vunpack.i.h.bf16 %v11742_v42  ;;  %v11743_v20 = vunpack.i.l.bf16 %v11742_v42 }
 0x45f   : > { %9549 = vmatmul.mubr.msk.f32.gmra.mrb[10].mxu0 %vm993_vm4, %v9547_v5  ;;  %10264 = vmatprep.subr.bf16.mxu1 %v10156_v3 }
 0x460   : > { %9883 = vmatpush1.bf16.msra.mxu0 %v9882_v4  ;;  %9688 = vmatmul.mubr.msk.f32.vlgmr.msra.gmra.mrb[0].mxu1 %vm993_vm4, %v9686_v52  ;;  %v6870_v55 = vsel %vm6863_vm5, %v11744_v8, %v11738_v41  ;;  %v6868_v54 = vsel %vm6863_vm5, %v11743_v20, %v11733_v2  ;;  %v6871_v40 = vsel %vm6863_vm5, %v11738_v41, %v11739_v29  ;;  %vm15877_vm5 = vcmask 367616  }
 0x461   : > { %10157 = vmatprep.subr.bf16.mxu0 %v10156_v3  ;;  %2569 = vmatprep.mubr.f32.mxu0 %v14905_v56  ;;  %v10162_v36 = vpack.c.bf16 %v6870_v55, %v6868_v54  ;;  %v10160_v25 = vpack.c.bf16 %v6871_v40, %v6869_v11 }
 0x462   : > { %6825 = vmatprep.mubr.f32.mxu1 %v14905_v56  ;;  %10266 = vmatpush1.bf16.msra.mxu1 %v10158_v49 }
 0x463   : > { %9552 = vmatmul.mubr.msk.f32.vlgmr.msra.gmra.mrb[8].mxu0 %vm993_vm4, %v9550_v22  ;;  %10265 = vmatprep.subr.bf16.mxu1 %v10160_v25 }
 0x464   : > { %9689 = vmatmul.mubr.msk.f32.gmra.mrb[2].mxu1 %vm993_vm4, %v9687_v39  ;;  %10159 = vmatpush1.bf16.msra.mxu0 %v10158_v49 }
 0x465   : > { %2575 = vmatprep.mubr.f32.mxu0 %v14905_v56  ;;  %10161 = vmatprep.subr.bf16.mxu0 %v10160_v25 }
 0x466   : > { %6956 = vmatprep.mubr.f32.mxu1 %v14905_v56  ;;  %10267 = vmatpush1.bf16.msra.mxu1 %v10162_v36  ;;  %v6972_v45 = vpop.permute.xlu1 %6971 }
 0x467   : > { %9553 = vmatmul.mubr.msk.f32.gmra.mrb[10].mxu0 %vm993_vm4, %v9551_v37  ;;  %v6977_v43 = vpop.permute.xlu0 %6976 }
 0x468   : > { %10163 = vmatpush1.bf16.msra.mxu0 %v10162_v36  ;;  %6950 = vmatprep.mubr.f32.mxu0 %v14905_v56 }
 0x46b   : > { %9692 = vmatmul.mubr.msk.f32.vlgmr.msra.gmra.mrb[12].mxu0 %vm993_vm4, %v9690_v34 }
 0x46c   : > { %9693 = vmatmul.mubr.msk.f32.vlgmr.msra.gmra.mrb[2].mxu1 %vm993_vm4, %v9691_v27  ;;  %7120 = vmatprep.mubr.f32.mxu0 %v14905_v56 }
 0x533   : > { %v6821_v61 = vpop.f32.mrb[0].mxu1 }
 0x534   : > { %v6823_v59 = vpop.f32.mrb[1].mxu1 }
 0x536   : > { %v2571_v16 = vpop.f32.mrb[8].mxu0 }
 0x537   : > { %v10268_v6 = vadd.f32 %v6821_v61, %v2571_v16  ;;  %v2573_v10 = vpop.f32.mrb[9].mxu0 }
 0x538   : > { %v10270_v62 = vadd.f32 %v6823_v59, %v2573_v10 }
 0x53a   : > { %v2577_v7 = vpop.f32.mrb[10].mxu0 }
 0x53b   : > { %v2579_v63 = vpop.f32.mrb[11].mxu0 }
 0x53e   : > { %v6952_v47 = vpop.f32.mrb[12].mxu0 }
 0x53f   : > { %v10269_v57 = vadd.f32 %v10268_v6, %v6952_v47  ;;  %v6958_v60 = vpop.f32.mrb[2].mxu1  ;;  %v6954_v33 = vpop.f32.mrb[13].mxu0 }
 0x540   : > { %v10272_v13 = vadd.f32 %v6958_v60, %v2577_v7  ;;  %v10271_v50 = vadd.f32 %v10270_v62, %v6954_v33  ;;  %v6960_v51 = vpop.f32.mrb[3].mxu1 }
 0x541   : > { %v6979_v44 = vadd.f32 %v10269_v57, %v6972_v45  ;;  %v10273_v26 = vadd.f32 %v6960_v51, %v2579_v63 }
 0x542   : > { %v6981_v23 = vadd.f32 %v10272_v13, %v6977_v43  ;;  %v6980_v53 = vadd.f32 %v10271_v50, %v6972_v45 }
 0x543   : > { %vm6983_vm4 = vcmp.gt.f32.partialorder %v6979_v44, 0.0  ;;  %v6987_v38 = vmul.f32 0.01, %v6979_v44  ;;  %v6982_v18 = vadd.f32 %v10273_v26, %v6977_v43 }
 0x544   : > { %vm6985_vm15 = vcmp.gt.f32.partialorder %v6981_v23, 0.0  ;;  %v6989_v35 = vmul.f32 0.01, %v6981_v23  ;;  %vm6984_vm1 = vcmp.gt.f32.partialorder %v6980_v53, 0.0  ;;  %v6988_v9 = vmul.f32 0.01, %v6980_v53 }
 0x545   : > { %v6991_v21 = vsel %vm6983_vm4, %v6979_v44, %v6987_v38  ;;  %vm6986_vm3 = vcmp.gt.f32.partialorder %v6982_v18, 0.0  ;;  %v6990_v12 = vmul.f32 0.01, %v6982_v18  ;;  %vm15878_vm4 = vcmask 924672  }
 0x546   : > { %v6992_v31 = vsel %vm6984_vm1, %v6980_v53, %v6988_v9  ;;  %v7001_v14 = vmul.f32 %v6991_v21, %v15873_v30  ;;  %v6993_v19 = vsel %vm6985_vm15, %v6981_v23, %v6989_v35  ;;  %vm15879_vm15 = vmmov %vm15876_vm8 }
 0x547   : > { %v7002_v1 = vmul.f32 %v6992_v31, %v15874_v15  ;;  %v6994_v48 = vsel %vm6986_vm3, %v6982_v18, %v6990_v12  ;;  %v7003_v0 = vmul.f32 %v6993_v19, %v15873_v30  ;;  %vm15880_vm1 = vmmov %vm15877_vm5 }
 0x548   : > { %7009 = vrot.lane.b32.xlu1 %v7001_v14, %s15875_s3  ;;  %v7004_v3 = vmul.f32 %v6994_v48, %v15874_v15  ;;  %vm15881_vm3 = vmmov %vm15878_vm4 }
 0x549   : > { %7011 = vrot.lane.b32.xlu0 %v7002_v1, %s15875_s3 }
 0x54c   : > { %7013 = vrot.lane.b32.xlu1 %v7003_v0, %s15875_s3 }
 0x54d   : > { %7015 = vrot.lane.b32.xlu0 %v7004_v3, %s15875_s3 }
 0x5ba   : > { %v7010_v4 = vpop.permute.xlu1 %7009 }
 0x5bb   : > { %7023 = vst.msk [vmem:[#allocation3] sm:$0xff] %vm15876_vm8, %v7010_v4  ;;  %v7012_v46 = vpop.permute.xlu0 %7011  ;;  %vm7052_vm8 = vcmask 130048  }
 0x5bc   : > { %v7017_v28 = vsel %vm15877_vm5, %v7010_v4, %v7012_v46  ;;  %vm15887_vm5 = vmmov %vm15881_vm3 }
 0x5bd   : > { %7024 = vst.msk [vmem:[#allocation3 + $0x8] sm:$0xff] %vm15878_vm4, %v7017_v28  ;;  %vm15888_vm4 = vmmov %vm15881_vm3 }
 0x5be   : > { %v7014_v5 = vpop.permute.xlu1 %7013 }
 0x5bf   : > { %7025 = vst.msk [vmem:[#allocation3 + $0x18] sm:$0xff] %vm15879_vm15, %v7014_v5  ;;  %v7016_v58 = vpop.permute.xlu0 %7015  ;;  %vm15893_vm15 = vcmask 793600  }
 0x5c0   : > { %v7018_v2 = vsel %vm15880_vm1, %v7014_v5, %v7016_v58  ;;  %vm15894_vm1 = vmmov %vm15893_vm15 }
 0x5c1   : > { %7026 = vst.msk [vmem:[#allocation3 + $0x20] sm:$0xff] %vm15881_vm3, %v7018_v2  ;;  %vm15895_vm3 = vcmask 785408  }
 0x5c2   : > { %v7028_v52 = vld [vmem:[#allocation3] sm:$0xff] }
 0x5c4   : > { %v7029_v24 = vld [vmem:[#allocation3 + $0x8] sm:$0xff] }
 0x5c5   : > { %v11745_v17 = vpack.i.bf16 %v7029_v24, %v7028_v52  ;;  %v11935_v41 = vpack.i.bf16 %v14905_v56, %v7029_v24 }
 0x5c6   : > { %v7030_v49 = vld [vmem:[#allocation3 + $0x18] sm:$0xff] }
 0x5c7   : > { %11746 = vrot.lane.b32.xlu1 %v11745_v17, %s15577_s1  ;;  %v11945_v32 = vpack.i.bf16 %v7030_v49, %v7028_v52 }
 0x5c8   : > { %v7031_v42 = vld [vmem:[#allocation3 + $0x20] sm:$0xff] }
 0x5c9   : > { %v11750_v29 = vpack.i.bf16 %v7031_v42, %v7030_v49  ;;  %v11940_v8 = vpack.i.bf16 %v14905_v56, %v7031_v42 }
 0x5cb   : > { %11756 = vrot.lane.b32.xlu1 %v11745_v17, %s15562_s17  ;;  %11751 = vrot.lane.b32.xlu0 %v11750_v29, %s15577_s1  ;;  %s15883_s1 = smov 84  }
 0x5cf   : > { %11766 = vrot.lane.b32.xlu1 %v11745_v17, %s15588_s25  ;;  %11761 = vrot.lane.b32.xlu0 %v11750_v29, %s15562_s17 }
 0x5d3   : > { %11776 = vrot.lane.b32.xlu1 %v11745_v17, %s15606_s8  ;;  %11771 = vrot.lane.b32.xlu0 %v11750_v29, %s15588_s25 }
 0x5d7   : > { %11786 = vrot.lane.b32.xlu1 %v11745_v17, %s12098_s14  ;;  %11781 = vrot.lane.b32.xlu0 %v11750_v29, %s15606_s8 }
 0x5db   : > { %11796 = vrot.lane.b32.xlu1 %v11745_v17, %s15882_s27  ;;  %11791 = vrot.lane.b32.xlu0 %v11750_v29, %s12098_s14 }
 0x5df   : > { %11806 = vrot.lane.b32.xlu1 %v11745_v17, %s15508_s30  ;;  %11801 = vrot.lane.b32.xlu0 %v11750_v29, %s15882_s27  ;;  %s15919_s27 = sld [smem:[#allocation5_spill]] }
 0x5e3   : > { %11816 = vrot.lane.b32.xlu1 %v11745_v17, %s15510_s26  ;;  %11811 = vrot.lane.b32.xlu0 %v11750_v29, %s15508_s30 }
 0x5e7   : > { %11826 = vrot.lane.b32.xlu1 %v11745_v17, %s15512_s11  ;;  %11821 = vrot.lane.b32.xlu0 %v11750_v29, %s15510_s26  ;;  %s15886_s26 = sld [smem:[#allocation94_spill]] }
 0x5eb   : > { %11836 = vrot.lane.b32.xlu1 %v11745_v17, %s15514_s24  ;;  %11831 = vrot.lane.b32.xlu0 %v11750_v29, %s15512_s11 }
 0x5ed   : > { %v9694_v7 = vld [vmem:[%s15886_s26 + $0x8] sm:$0xff]  ;;  %v7027_v18 = vld [vmem:[%s15886_s26] sm:$0xff]  ;;  %v9697_v1 = vld [vmem:[%s15886_s26 + $0x10] sm:$0xff] }
 0x5ee   : > { %v9699_v24 = vld [vmem:[%s15886_s26 + $0x18] sm:$0xff] }
 0x5ef   : > { %11846 = vrot.lane.b32.xlu1 %v11745_v17, %s15517_s22  ;;  %11841 = vrot.lane.b32.xlu0 %v11750_v29, %s15514_s24 }
 0x5f3   : > { %11856 = vrot.lane.b32.xlu1 %v11745_v17, %s15883_s1  ;;  %11851 = vrot.lane.b32.xlu0 %v11750_v29, %s15517_s22 }
 0x5f7   : > { %11866 = vrot.lane.b32.xlu1 %v11745_v17, %s15518_s13  ;;  %11861 = vrot.lane.b32.xlu0 %v11750_v29, %s15883_s1  ;;  %s9747_s1 = sshll.u32 %s15919_s27, 4 }
 0x5fb   : > { %11876 = vrot.lane.b32.xlu1 %v11745_v17, %s15520_s18  ;;  %11871 = vrot.lane.b32.xlu0 %v11750_v29, %s15518_s13  ;;  %s15885_s13 = sld [smem:[#allocation95_spill]] }
 0x5ff   : > { %11886 = vrot.lane.b32.xlu1 %v11745_v17, %s15522_s19  ;;  %11881 = vrot.lane.b32.xlu0 %v11750_v29, %s15520_s18 }
 0x601   : > { %v9379_v20 = vld [vmem:[%s15885_s13] sm:$0xff] }
 0x603   : > { %11896 = vrot.lane.b32.xlu1 %v11745_v17, %s15566_s20  ;;  %11891 = vrot.lane.b32.xlu0 %v11750_v29, %s15522_s19 }
 0x607   : > { %11906 = vrot.lane.b32.xlu1 %v11745_v17, %s15568_s21  ;;  %11901 = vrot.lane.b32.xlu0 %v11750_v29, %s15566_s20 }
 0x60b   : > { %11916 = vrot.lane.b32.xlu1 %v11745_v17, %s15570_s10  ;;  %11911 = vrot.lane.b32.xlu0 %v11750_v29, %s15568_s21 }
 0x60f   : > { %11926 = vrot.lane.b32.xlu1 %v11745_v17, %s15573_s12  ;;  %11921 = vrot.lane.b32.xlu0 %v11750_v29, %s15570_s10 }
 0x613   : > { %11936 = vrot.lane.b32.xlu1 %v11935_v41, %s15574_s2  ;;  %11931 = vrot.lane.b32.xlu0 %v11750_v29, %s15573_s12  ;;  %s15920_s12 = sld [smem:[#allocation96_spill]] }
 0x617   : > { %11946 = vrot.lane.b32.xlu1 %v11945_v32, %s15574_s2  ;;  %11941 = vrot.lane.b32.xlu0 %v11940_v8, %s15574_s2  ;;  %s15884_s2 = smov 53  }
 0x619   : > { %s305_s13 = scalar_lea.vmem %s15920_s12, %s9747_s1 }
 0x61b   : > { %11956 = vrot.lane.b32.xlu1 %v11940_v8, %s15533_s16  ;;  %11951 = vrot.lane.b32.xlu0 %v11935_v41, %s15533_s16 }
 0x61f   : > { %11966 = vrot.lane.b32.xlu1 %v11935_v41, %s15536_s9  ;;  %11961 = vrot.lane.b32.xlu0 %v11945_v32, %s15533_s16 }
 0x623   : > { %11976 = vrot.lane.b32.xlu1 %v11945_v32, %s15536_s9  ;;  %11971 = vrot.lane.b32.xlu0 %v11940_v8, %s15536_s9 }
 0x627   : > { %11986 = vrot.lane.b32.xlu1 %v11940_v8, %s15539_s29  ;;  %11981 = vrot.lane.b32.xlu0 %v11935_v41, %s15539_s29 }
 0x62b   : > { %11996 = vrot.lane.b32.xlu1 %v11935_v41, %s15604_s28  ;;  %11991 = vrot.lane.b32.xlu0 %v11945_v32, %s15539_s29 }
 0x62f   : > { %12006 = vrot.lane.b32.xlu1 %v11945_v32, %s15604_s28  ;;  %12001 = vrot.lane.b32.xlu0 %v11940_v8, %s15604_s28 }
 0x633   : > { %12016 = vrot.lane.b32.xlu1 %v11940_v8, %s15884_s2  ;;  %12011 = vrot.lane.b32.xlu0 %v11935_v41, %s15884_s2 }
 0x637   : > { %9382 = vperm.xlu1 %10624, %v9379_v20   ;;  %12021 = vrot.lane.b32.xlu0 %v11945_v32, %s15884_s2 }
 0x639   : > { %v11747_v22 = vpop.permute.xlu1 %11746 }
 0x63a   : > { %v11749_v39 = vunpack.i.h.bf16 %v11747_v22  ;;  %v11748_v11 = vunpack.i.l.bf16 %v11747_v22 }
 0x63c   : > { %v7046_v25 = vsel %vm2010_vm6, %v11748_v11, %v11749_v39  ;;  %v9701_v11 = vld [vmem:[%s15886_s26 + $0x20] sm:$0xff] }
 0x63d   : > { %v11757_v55 = vpop.permute.xlu1 %11756  ;;  %v11752_v54 = vpop.permute.xlu0 %11751 }
 0x63e   : > { %v11754_v40 = vunpack.i.h.bf16 %v11752_v54  ;;  %v11753_v36 = vunpack.i.l.bf16 %v11752_v54  ;;  %v11759_v37 = vunpack.i.h.bf16 %v11757_v55  ;;  %v11758_v34 = vunpack.i.l.bf16 %v11757_v55 }
 0x640   : > { %v10164_v27 = vpack.c.bf16 %v11754_v40, %v11749_v39  ;;  %v7047_v61 = vsel %vm2010_vm6, %v11753_v36, %v11754_v40  ;;  %v7135_v63 = vsel %vm15887_vm5, %v11758_v34, %v11759_v37  ;;  %vm15889_vm6 = vcmask 809984   ;;  %vm15896_vm5 = vmmov %vm15895_vm3 }
 0x641   : > { %v10166_v59 = vpack.c.bf16 %v7047_v61, %v7046_v25  ;;  %v11767_v16 = vpop.permute.xlu1 %11766  ;;  %v11762_v6 = vpop.permute.xlu0 %11761 }
 0x642   : > { %v11764_v10 = vunpack.i.h.bf16 %v11762_v6  ;;  %v11763_v62 = vunpack.i.l.bf16 %v11762_v6  ;;  %10165 = vmatprep.subr.bf16.mxu0 %v10164_v27  ;;  %v11769_v45 = vunpack.i.h.bf16 %v11767_v16  ;;  %v11768_v43 = vunpack.i.l.bf16 %v11767_v16  ;;  %v9703_v16 = vld [vmem:[%s15886_s26 + $0x28] sm:$0xff] }
 0x643   : > { %10167 = vmatpush1.bf16.msra.mxu0 %v10166_v59 }
 0x644   : > { %v10168_v47 = vpack.c.bf16 %v11764_v10, %v11759_v37  ;;  %v7136_v57 = vsel %vm15888_vm4, %v11763_v62, %v11764_v10  ;;  %v7225_v35 = vsel %vm2129_vm0, %v11768_v43, %v11769_v45  ;;  %vm15897_vm4 = vcmask 777216  }
 0x645   : > { %v10170_v60 = vpack.c.bf16 %v7136_v57, %v7135_v63  ;;  %v11772_v33 = vpop.permute.xlu0 %11771  ;;  %v11777_v51 = vpop.permute.xlu1 %11776 }
 0x646   : > { %v11774_v13 = vunpack.i.h.bf16 %v11772_v33  ;;  %v11773_v50 = vunpack.i.l.bf16 %v11772_v33  ;;  %9695 = vmatmul.mubr.msk.f32.vlgmr.msra.gmra.mrb[14].mxu0 %vm7052_vm8, %v9694_v7  ;;  %10169 = vmatprep.subr.bf16.mxu0 %v10168_v47  ;;  %v11779_v23 = vunpack.i.h.bf16 %v11777_v51  ;;  %v11778_v30 = vunpack.i.l.bf16 %v11777_v51 }
 0x647   : > { %10171 = vmatpush1.bf16.msra.mxu0 %v10170_v60  ;;  %7208 = vmatprep.mubr.f32.mxu0 %v14905_v56 }
 0x648   : > { %v10172_v44 = vpack.c.bf16 %v11774_v13, %v11769_v45  ;;  %v7226_v53 = vsel %vm2129_vm0, %v11773_v50, %v11774_v13  ;;  %v7317_v48 = vsel %vm2248_vm10, %v11778_v30, %v11779_v23  ;;  %vm15890_vm0 = vmmov %vm15889_vm6  ;;  %v9705_v13 = vld [vmem:[%s15886_s26 + $0x30] sm:$0xff] }
 0x649   : > { %v11782_v26 = vpop.permute.xlu0 %11781  ;;  %v10174_v21 = vpack.c.bf16 %v7226_v53, %v7225_v35  ;;  %v11787_v14 = vpop.permute.xlu1 %11786 }
 0x64a   : > { %v11784_v38 = vunpack.i.h.bf16 %v11782_v26  ;;  %10173 = vmatprep.subr.bf16.mxu0 %v10172_v44  ;;  %v11783_v12 = vunpack.i.l.bf16 %v11782_v26  ;;  %v11789_v0 = vunpack.i.h.bf16 %v11787_v14  ;;  %v11788_v5 = vunpack.i.l.bf16 %v11787_v14 }
 0x64c   : > { %v10176_v9 = vpack.c.bf16 %v11784_v38, %v11779_v23  ;;  %v7318_v19 = vsel %vm2248_vm10, %v11783_v12, %v11784_v38  ;;  %v7409_v17 = vsel %vm2367_vm7, %v11788_v5, %v11789_v0  ;;  %vm15891_vm10 = vcmask 801792  }
 0x64d   : > { %v11792_v31 = vpop.permute.xlu0 %11791  ;;  %v10178_v3 = vpack.c.bf16 %v7318_v19, %v7317_v48  ;;  %v11797_v58 = vpop.permute.xlu1 %11796 }
 0x64e   : > { %9696 = vmatmul.mubr.msk.f32.vlgmr.msra.gmra.mrb[14].mxu0 %vm7052_vm8, %v7027_v18  ;;  %v11794_v15 = vunpack.i.h.bf16 %v11792_v31  ;;  %v11793_v46 = vunpack.i.l.bf16 %v11792_v31  ;;  %v11799_v49 = vunpack.i.h.bf16 %v11797_v58  ;;  %v11798_v8 = vunpack.i.l.bf16 %v11797_v58 }
 0x64f   : > { %10175 = vmatpush1.bf16.msra.mxu0 %v10174_v21  ;;  %7298 = vmatprep.mubr.f32.mxu0 %v14905_v56 }
 0x650   : > { %10177 = vmatprep.subr.bf16.mxu0 %v10176_v9  ;;  %v10180_v4 = vpack.c.bf16 %v11794_v15, %v11789_v0  ;;  %v7410_v2 = vsel %vm2367_vm7, %v11793_v46, %v11794_v15  ;;  %v7501_v55 = vsel %vm15890_vm0, %v11798_v8, %v11799_v49  ;;  %vm15892_vm7 = vmmov %vm15891_vm10  ;;  %v9707_v9 = vld [vmem:[%s15886_s26 + $0x38] sm:$0xff]  ;;  %vm15899_vm0 = vcmask 695296  }
 0x651   : > { %v11802_v28 = vpop.permute.xlu0 %11801  ;;  %v10182_v32 = vpack.c.bf16 %v7410_v2, %v7409_v17  ;;  %v11807_v20 = vpop.permute.xlu1 %11806 }
 0x652   : > { %v11804_v52 = vunpack.i.h.bf16 %v11802_v28  ;;  %v11803_v29 = vunpack.i.l.bf16 %v11802_v28  ;;  %v11809_v54 = vunpack.i.h.bf16 %v11807_v20  ;;  %v11808_v34 = vunpack.i.l.bf16 %v11807_v20 }
 0x654   : > { %v10184_v42 = vpack.c.bf16 %v11804_v52, %v11799_v49  ;;  %v7502_v22 = vsel %vm15889_vm6, %v11803_v29, %v11804_v52  ;;  %v7593_v6 = vsel %vm15892_vm7, %v11808_v34, %v11809_v54  ;;  %vm15898_vm6 = vmmov %vm15897_vm4  ;;  %vm15901_vm7 = vcmask 687104  }
 0x655   : > { %v11812_v41 = vpop.permute.xlu0 %11811  ;;  %v10186_v40 = vpack.c.bf16 %v7502_v22, %v7501_v55  ;;  %v11817_v27 = vpop.permute.xlu1 %11816 }
 0x656   : > { %9698 = vmatmul.mubr.msk.f32.vlgmr.msra.gmra.mrb[14].mxu0 %vm7052_vm8, %v9697_v1  ;;  %v11814_v39 = vunpack.i.h.bf16 %v11812_v41  ;;  %v11813_v25 = vunpack.i.l.bf16 %v11812_v41  ;;  %v11819_v10 = vunpack.i.h.bf16 %v11817_v27  ;;  %v11818_v57 = vunpack.i.l.bf16 %v11817_v27 }
 0x657   : > { %10179 = vmatpush1.bf16.msra.mxu0 %v10178_v3  ;;  %7390 = vmatprep.mubr.f32.mxu0 %v14905_v56  ;;  %v9709_v3 = vld [vmem:[%s15886_s26 + $0x40] sm:$0xff] }
 0x658   : > { %10181 = vmatprep.subr.bf16.mxu0 %v10180_v4  ;;  %v10188_v36 = vpack.c.bf16 %v11814_v39, %v11809_v54  ;;  %v7594_v61 = vsel %vm15891_vm10, %v11813_v25, %v11814_v39  ;;  %v7685_v50 = vsel %vm15894_vm1, %v11818_v57, %v11819_v10  ;;  %vm15900_vm10 = vmmov %vm15899_vm0  ;;  %vm15903_vm1 = vcmask 678912  }
 0x659   : > { %v11822_v37 = vpop.permute.xlu0 %11821  ;;  %v10190_v62 = vpack.c.bf16 %v7594_v61, %v7593_v6  ;;  %v11827_v60 = vpop.permute.xlu1 %11826 }
 0x65a   : > { %v11824_v59 = vunpack.i.h.bf16 %v11822_v37  ;;  %v11823_v63 = vunpack.i.l.bf16 %v11822_v37  ;;  %v11829_v51 = vunpack.i.h.bf16 %v11827_v60  ;;  %v11828_v53 = vunpack.i.l.bf16 %v11827_v60 }
 0x65c   : > { %v10192_v7 = vpack.c.bf16 %v11824_v59, %v11819_v10  ;;  %v7686_v33 = vsel %vm15893_vm15, %v11823_v63, %v11824_v59  ;;  %v7777_v21 = vsel %vm15896_vm5, %v11828_v53, %v11829_v51  ;;  %vm15902_vm15 = vmmov %vm15901_vm7  ;;  %vm15905_vm5 = vcmask 670720  }
 0x65d   : > { %v11832_v47 = vpop.permute.xlu0 %11831  ;;  %v10194_v43 = vpack.c.bf16 %v7686_v33, %v7685_v50  ;;  %v11837_v38 = vpop.permute.xlu1 %11836 }
 0x65e   : > { %9700 = vmatmul.mubr.msk.f32.vlgmr.msra.gmra.mrb[14].mxu0 %vm7052_vm8, %v9699_v24  ;;  %v11834_v45 = vunpack.i.h.bf16 %v11832_v47  ;;  %v11833_v26 = vunpack.i.l.bf16 %v11832_v47  ;;  %v11839_v12 = vunpack.i.h.bf16 %v11837_v38  ;;  %v11838_v15 = vunpack.i.l.bf16 %v11837_v38 }
 0x65f   : > { %10183 = vmatpush1.bf16.msra.mxu0 %v10182_v32  ;;  %7482 = vmatprep.mubr.f32.mxu0 %v14905_v56  ;;  %v9711_v32 = vld [vmem:[%s15886_s26 + $0x48] sm:$0xff] }
 0x660   : > { %10185 = vmatprep.subr.bf16.mxu0 %v10184_v42  ;;  %v10196_v44 = vpack.c.bf16 %v11834_v45, %v11829_v51  ;;  %v7778_v18 = vsel %vm15895_vm3, %v11833_v26, %v11834_v45  ;;  %v7869_v4 = vsel %vm15898_vm6, %v11838_v15, %v11839_v12  ;;  %vm15904_vm3 = vmmov %vm15903_vm1  ;;  %vm15907_vm6 = vcmask 662528  }
 0x661   : > { %v11842_v23 = vpop.permute.xlu0 %11841  ;;  %v10198_v31 = vpack.c.bf16 %v7778_v18, %v7777_v21  ;;  %v11847_v1 = vpop.permute.xlu1 %11846 }
 0x662   : > { %v11844_v35 = vunpack.i.h.bf16 %v11842_v23  ;;  %v11843_v14 = vunpack.i.l.bf16 %v11842_v23  ;;  %v11849_v46 = vunpack.i.h.bf16 %v11847_v1  ;;  %v11848_v52 = vunpack.i.l.bf16 %v11847_v1 }
 0x664   : > { %v10200_v30 = vpack.c.bf16 %v11844_v35, %v11839_v12  ;;  %v7870_v48 = vsel %vm15897_vm4, %v11843_v14, %v11844_v35  ;;  %v7961_v42 = vsel %vm15900_vm10, %v11848_v52, %v11849_v46  ;;  %vm15906_vm4 = vmmov %vm15905_vm5  ;;  %vm15909_vm10 = vcmask 572416  }
 0x665   : > { %v11852_v19 = vpop.permute.xlu0 %11851  ;;  %v10202_v28 = vpack.c.bf16 %v7870_v48, %v7869_v4  ;;  %v11857_v24 = vpop.permute.xlu1 %11856 }
 0x666   : > { %9702 = vmatmul.mubr.msk.f32.vlgmr.msra.gmra.mrb[14].mxu0 %vm7052_vm8, %v9701_v11  ;;  %v11854_v0 = vunpack.i.h.bf16 %v11852_v19  ;;  %v11853_v58 = vunpack.i.l.bf16 %v11852_v19  ;;  %v11859_v29 = vunpack.i.h.bf16 %v11857_v24  ;;  %v11858_v39 = vunpack.i.l.bf16 %v11857_v24 }
 0x667   : > { %10187 = vmatpush1.bf16.msra.mxu0 %v10186_v40  ;;  %7574 = vmatprep.mubr.f32.mxu0 %v14905_v56  ;;  %v9713_v40 = vld [vmem:[%s15886_s26 + $0x50] sm:$0xff] }
 0x668   : > { %10189 = vmatprep.subr.bf16.mxu0 %v10188_v36  ;;  %v10204_v5 = vpack.c.bf16 %v11854_v0, %v11849_v46  ;;  %v7962_v17 = vsel %vm15899_vm0, %v11853_v58, %v11854_v0  ;;  %v8053_v36 = vsel %vm15902_vm15, %v11858_v39, %v11859_v29  ;;  %vm15908_vm0 = vmmov %vm15907_vm6 }
 0x669   : > { %v11862_v2 = vpop.permute.xlu0 %11861  ;;  %v10206_v41 = vpack.c.bf16 %v7962_v17, %v7961_v42  ;;  %v11867_v11 = vpop.permute.xlu1 %11866 }
 0x66a   : > { %v11864_v49 = vunpack.i.h.bf16 %v11862_v2  ;;  %v11863_v20 = vunpack.i.l.bf16 %v11862_v2  ;;  %v11869_v25 = vunpack.i.h.bf16 %v11867_v11  ;;  %v11868_v59 = vunpack.i.l.bf16 %v11867_v11 }
 0x66c   : > { %v10208_v8 = vpack.c.bf16 %v11864_v49, %v11859_v29  ;;  %v8054_v55 = vsel %vm15901_vm7, %v11863_v20, %v11864_v49  ;;  %v9723_v20 = vld [vmem:[%s15886_s26 + $0x78] sm:$0xff]  ;;  %vm15911_vm7 = vcmask 564224  }
 0x66d   : > { %v11872_v22 = vpop.permute.xlu0 %11871  ;;  %v10210_v37 = vpack.c.bf16 %v8054_v55, %v8053_v36  ;;  %vm15912_vm15 = vmmov %vm15911_vm7 }
 0x66e   : > { %9704 = vmatmul.mubr.msk.f32.vlgmr.msra.gmra.mrb[14].mxu0 %vm7052_vm8, %v9703_v16  ;;  %v11874_v54 = vunpack.i.h.bf16 %v11872_v22  ;;  %v11873_v27 = vunpack.i.l.bf16 %v11872_v22  ;;  %v11877_v16 = vpop.permute.xlu1 %11876 }
 0x66f   : > { %10191 = vmatpush1.bf16.msra.mxu0 %v10190_v62  ;;  %7666 = vmatprep.mubr.f32.mxu0 %v14905_v56  ;;  %v9715_v62 = vld [vmem:[%s15886_s26 + $0x58] sm:$0xff]  ;;  %v11879_v63 = vunpack.i.h.bf16 %v11877_v16 }
 0x670   : > { %10193 = vmatprep.subr.bf16.mxu0 %v10192_v7  ;;  %v10212_v34 = vpack.c.bf16 %v11874_v54, %v11869_v25  ;;  %v8146_v6 = vsel %vm15903_vm1, %v11873_v27, %v11874_v54  ;;  %v8145_v7 = vsel %vm15904_vm3, %v11868_v59, %v11869_v25  ;;  %vm15913_vm1 = vcmask 556032  }
 0x671   : > { %v11882_v61 = vpop.permute.xlu0 %11881  ;;  %v10214_v47 = vpack.c.bf16 %v8146_v6, %v8145_v7  ;;  %vm15914_vm3 = vcmask 547840  }
 0x672   : > { %v11884_v10 = vunpack.i.h.bf16 %v11882_v61  ;;  %v11887_v57 = vpop.permute.xlu1 %11886  ;;  %v11883_v33 = vunpack.i.l.bf16 %v11882_v61  ;;  %v9725_v61 = vld [vmem:[%s15886_s26 + $0x80] sm:$0xff] }
 0x673   : > { %v11889_v26 = vunpack.i.h.bf16 %v11887_v57 }
 0x674   : > { %v10216_v60 = vpack.c.bf16 %v11884_v10, %v11879_v63  ;;  %v8238_v50 = vsel %vm15905_vm5, %v11883_v33, %v11884_v10  ;;  %vm15915_vm5 = vmmov %vm15913_vm1 }
 0x675   : > { %v11892_v45 = vpop.permute.xlu0 %11891 }
 0x676   : > { %9706 = vmatmul.mubr.msk.f32.vlgmr.msra.gmra.mrb[14].mxu0 %vm7052_vm8, %v9705_v13  ;;  %v11878_v13 = vunpack.i.l.bf16 %v11877_v16  ;;  %v11894_v51 = vunpack.i.h.bf16 %v11892_v45  ;;  %v11897_v23 = vpop.permute.xlu1 %11896  ;;  %v11893_v18 = vunpack.i.l.bf16 %v11892_v45 }
 0x677   : > { %10195 = vmatpush1.bf16.msra.mxu0 %v10194_v43  ;;  %7758 = vmatprep.mubr.f32.mxu0 %v14905_v56  ;;  %v9717_v43 = vld [vmem:[%s15886_s26 + $0x60] sm:$0xff]  ;;  %v11899_v19 = vunpack.i.h.bf16 %v11897_v23 }
 0x678   : > { %10197 = vmatprep.subr.bf16.mxu0 %v10196_v44  ;;  %v8237_v44 = vsel %vm15906_vm4, %v11878_v13, %v11879_v63  ;;  %v10220_v38 = vpack.c.bf16 %v11894_v51, %v11889_v26  ;;  %v8330_v21 = vsel %vm15907_vm6, %v11893_v18, %v11894_v51  ;;  %vm15916_vm4 = vmmov %vm15914_vm3 }
 0x679   : > { %v10218_v53 = vpack.c.bf16 %v8238_v50, %v8237_v44  ;;  %v11902_v35 = vpop.permute.xlu0 %11901  ;;  %v9727_v50 = vld [vmem:[%s15886_s26 + $0x88] sm:$0xff]  ;;  %vm15917_vm6 = vmmov %vm15914_vm3 }
 0x67a   : > { %v11907_v12 = vpop.permute.xlu1 %11906  ;;  %v11903_v48 = vunpack.i.l.bf16 %v11902_v35 }
 0x67b   : > { %v11909_v2 = vunpack.i.h.bf16 %v11907_v12  ;;  %v11908_v42 = vunpack.i.l.bf16 %v11907_v12 }
 0x67d   : > { %v11912_v0 = vpop.permute.xlu0 %11911 }
 0x67e   : > { %9708 = vmatmul.mubr.msk.f32.vlgmr.msra.gmra.mrb[14].mxu0 %vm7052_vm8, %v9707_v9  ;;  %v11888_v9 = vunpack.i.l.bf16 %v11887_v57  ;;  %v11917_v4 = vpop.permute.xlu1 %11916  ;;  %v11913_v49 = vunpack.i.l.bf16 %v11912_v0 }
 0x67f   : > { %10199 = vmatpush1.bf16.msra.mxu0 %v10198_v31  ;;  %7850 = vmatprep.mubr.f32.mxu0 %v14905_v56  ;;  %v11904_v31 = vunpack.i.h.bf16 %v11902_v35  ;;  %v11919_v39 = vunpack.i.h.bf16 %v11917_v4  ;;  %v11918_v36 = vunpack.i.l.bf16 %v11917_v4 }
 0x680   : > { %10201 = vmatprep.subr.bf16.mxu0 %v10200_v30  ;;  %v9719_v30 = vld [vmem:[%s15886_s26 + $0x68] sm:$0xff]  ;;  %v8329_v14 = vsel %vm15908_vm0, %v11888_v9, %v11889_v26  ;;  %vm15918_vm0 = vmmov %vm15914_vm3 }
 0x681   : > { %v10222_v15 = vpack.c.bf16 %v8330_v21, %v8329_v14  ;;  %v10224_v1 = vpack.c.bf16 %v11904_v31, %v11899_v19  ;;  %v8422_v46 = vsel %vm4390_vm9, %v11903_v48, %v11904_v31  ;;  %v11922_v52 = vpop.permute.xlu0 %11921  ;;  %v8605_v59 = vsel %vm15912_vm15, %v11918_v36, %v11919_v39  ;;  %v15179_v31 = vld [vmem:[#allocation2 + $0x10] sm:$0xff] }
 0x686   : > { %9710 = vmatmul.mubr.msk.f32.vlgmr.msra.gmra.mrb[14].mxu0 %vm7052_vm8, %v9709_v3  ;;  %v11898_v3 = vunpack.i.l.bf16 %v11897_v23 }
 0x687   : > { %10203 = vmatpush1.bf16.msra.mxu0 %v10202_v28  ;;  %7942 = vmatprep.mubr.f32.mxu0 %v14905_v56  ;;  %v11914_v28 = vunpack.i.h.bf16 %v11912_v0 }
 0x688   : > { %10205 = vmatprep.subr.bf16.mxu0 %v10204_v5  ;;  %v9721_v5 = vld [vmem:[%s15886_s26 + $0x70] sm:$0xff]  ;;  %v8421_v58 = vsel %vm4390_vm9, %v11898_v3, %v11899_v19  ;;  %vm15910_vm9 = vmmov %vm15909_vm10 }
 0x689   : > { %v10226_v24 = vpack.c.bf16 %v8422_v46, %v8421_v58  ;;  %v10228_v17 = vpack.c.bf16 %v11914_v28, %v11909_v2  ;;  %v8514_v29 = vsel %vm15909_vm10, %v11913_v49, %v11914_v28  ;;  %v8513_v22 = vsel %vm15910_vm9, %v11908_v42, %v11909_v2  ;;  %v9731_v42 = vld [vmem:[%s15886_s26 + $0x98] sm:$0xff] }
 0x68a   : > { %v10230_v55 = vpack.c.bf16 %v8514_v29, %v8513_v22 }
 0x68e   : > { %9712 = vmatmul.mubr.msk.f32.vlgmr.msra.gmra.mrb[14].mxu0 %vm7052_vm8, %v9711_v32  ;;  %v11927_v32 = vpop.permute.xlu1 %11926 }
 0x68f   : > { %10207 = vmatpush1.bf16.msra.mxu0 %v10206_v41  ;;  %8034 = vmatprep.mubr.f32.mxu0 %v14905_v56  ;;  %v11924_v41 = vunpack.i.h.bf16 %v11922_v52  ;;  %v11929_v16 = vunpack.i.h.bf16 %v11927_v32  ;;  %v11928_v57 = vunpack.i.l.bf16 %v11927_v32 }
 0x690   : > { %10209 = vmatprep.subr.bf16.mxu0 %v10208_v8  ;;  %v11932_v8 = vpop.permute.xlu0 %11931 }
 0x691   : > { %v10232_v54 = vpack.c.bf16 %v11924_v41, %v11919_v39 }
 0x692   : > { %v11937_v11 = vpop.permute.xlu1 %11936 }
 0x693   : > { %v11939_v33 = vunpack.i.h.bf16 %v11937_v11  ;;  %v11938_v45 = vunpack.i.l.bf16 %v11937_v11 }
 0x694   : > { %v11942_v25 = vpop.permute.xlu0 %11941 }
 0x695   : > { %v11944_v63 = vunpack.i.h.bf16 %v11942_v25  ;;  %v8806_v23 = vsel %vm15916_vm4, %v11938_v45, %v11939_v33 }
 0x696   : > { %9714 = vmatmul.mubr.msk.f32.vlgmr.msra.gmra.mrb[14].mxu0 %vm7052_vm8, %v9713_v40  ;;  %v11923_v40 = vunpack.i.l.bf16 %v11922_v52  ;;  %v11947_v27 = vpop.permute.xlu1 %11946 }
 0x697   : > { %10211 = vmatpush1.bf16.msra.mxu0 %v10210_v37  ;;  %8126 = vmatprep.mubr.f32.mxu0 %v14905_v56 }
 0x698   : > { %10213 = vmatprep.subr.bf16.mxu0 %v10212_v34  ;;  %v8606_v37 = vsel %vm15911_vm7, %v11923_v40, %v11924_v41  ;;  %v11934_v34 = vunpack.i.h.bf16 %v11932_v8  ;;  %v11952_v7 = vpop.permute.xlu0 %11951 }
 0x699   : > { %v10234_v6 = vpack.c.bf16 %v8606_v37, %v8605_v59  ;;  %v11954_v21 = vunpack.i.h.bf16 %v11952_v7  ;;  %v11953_v12 = vunpack.i.l.bf16 %v11952_v7 }
 0x69a   : > { %v10236_v10 = vpack.c.bf16 %v11934_v34, %v11929_v16 }
 0x69c   : > { %v11962_v44 = vpop.permute.xlu0 %11961 }
 0x69d   : > { %v11964_v4 = vunpack.i.h.bf16 %v11962_v44  ;;  %v11963_v46 = vunpack.i.l.bf16 %v11962_v44 }
 0x69e   : > { %9716 = vmatmul.mubr.msk.f32.vlgmr.msra.gmra.mrb[14].mxu0 %vm7052_vm8, %v9715_v62  ;;  %v11933_v62 = vunpack.i.l.bf16 %v11932_v8 }
 0x69f   : > { %10215 = vmatpush1.bf16.msra.mxu0 %v10214_v47  ;;  %8218 = vmatprep.mubr.f32.mxu0 %v14905_v56  ;;  %v11943_v47 = vunpack.i.l.bf16 %v11942_v25  ;;  %v8903_v49 = vsel %vm5291_vm11, %v11963_v46, %v11953_v12 }
 0x6a0   : > { %10217 = vmatprep.subr.bf16.mxu0 %v10216_v60  ;;  %v11957_v60 = vpop.permute.xlu1 %11956  ;;  %v8698_v13 = vsel %vm15913_vm1, %v11933_v62, %v11934_v34  ;;  %v11972_v19 = vpop.permute.xlu0 %11971 }
 0x6a1   : > { %v8808_v51 = vsel %vm15914_vm3, %v11943_v47, %v11944_v63  ;;  %v11959_v35 = vunpack.i.h.bf16 %v11957_v60  ;;  %v11958_v9 = vunpack.i.l.bf16 %v11957_v60  ;;  %v11973_v58 = vunpack.i.l.bf16 %v11972_v19 }
 0x6a2   : > { %v10240_v18 = vpack.c.bf16 %v8808_v51, %v8806_v23 }
 0x6a3   : > { %v8906_v48 = vsel %vm5291_vm11, %v11958_v9, %v11959_v35 }
 0x6a4   : > { %v11982_v2 = vpop.permute.xlu0 %11981 }
 0x6a5   : > { %v11984_v40 = vunpack.i.h.bf16 %v11982_v2  ;;  %v11983_v36 = vunpack.i.l.bf16 %v11982_v2  ;;  %v9741_v2 = vld [vmem:[%s15886_s26 + $0xc0] sm:$0xff] }
 0x6a6   : > { %9718 = vmatmul.mubr.msk.f32.vlgmr.msra.gmra.mrb[14].mxu0 %vm7052_vm8, %v9717_v43  ;;  %v8697_v43 = vsel %vm15915_vm5, %v11928_v57, %v11929_v16 }
 0x6a7   : > { %10219 = vmatpush1.bf16.msra.mxu0 %v10218_v53  ;;  %8310 = vmatprep.mubr.f32.mxu0 %v14905_v56  ;;  %v10238_v26 = vpack.c.bf16 %v8698_v13, %v8697_v43  ;;  %v11948_v53 = vunpack.i.l.bf16 %v11947_v27 }
 0x6a8   : > { %10221 = vmatprep.subr.bf16.mxu0 %v10220_v38  ;;  %v11967_v38 = vpop.permute.xlu1 %11966  ;;  %v11992_v39 = vpop.permute.xlu0 %11991 }
 0x6a9   : > { %v11969_v52 = vunpack.i.h.bf16 %v11967_v38  ;;  %v11993_v62 = vunpack.i.l.bf16 %v11992_v39 }
 0x6ab   : > { %v9099_v13 = vsel %vm5553_vm14, %v11993_v62, %v11983_v36 }
 0x6ac   : > { %v11977_v0 = vpop.permute.xlu1 %11976  ;;  %v12002_v16 = vpop.permute.xlu0 %12001 }
 0x6ad   : > { %v11978_v22 = vunpack.i.l.bf16 %v11977_v0  ;;  %v12003_v57 = vunpack.i.l.bf16 %v12002_v16 }
 0x6ae   : > { %9720 = vmatmul.mubr.msk.f32.vlgmr.msra.gmra.mrb[14].mxu0 %vm7052_vm8, %v9719_v30  ;;  %v8805_v30 = vsel %vm15917_vm6, %v11948_v53, %v11938_v45 }
 0x6af   : > { %10223 = vmatpush1.bf16.msra.mxu0 %v10222_v15  ;;  %8402 = vmatprep.mubr.f32.mxu0 %v14905_v56  ;;  %v9729_v15 = vld [vmem:[%s15886_s26 + $0x90] sm:$0xff] }
 0x6b0   : > { %10225 = vmatprep.subr.bf16.mxu0 %v10224_v1  ;;  %v8904_v1 = vsel %vm5291_vm11, %v11953_v12, %v11954_v21  ;;  %v11987_v32 = vpop.permute.xlu1 %11986  ;;  %v12012_v44 = vpop.permute.xlu0 %12011 }
 0x6b1   : > { %v10244_v28 = vpack.c.bf16 %v8906_v48, %v8904_v1  ;;  %v12013_v21 = vunpack.i.l.bf16 %v12012_v44 }
 0x6b4   : > { %v11997_v25 = vpop.permute.xlu1 %11996 }
 0x6b5   : > { %v11999_v60 = vunpack.i.h.bf16 %v11997_v25  ;;  %v11998_v33 = vunpack.i.l.bf16 %v11997_v25 }
 0x6b6   : > { %9722 = vmatmul.mubr.msk.f32.vlgmr.msra.gmra.mrb[14].mxu0 %vm7052_vm8, %v9721_v5  ;;  %v11974_v5 = vunpack.i.h.bf16 %v11972_v19  ;;  %v9737_v19 = vld [vmem:[%s15886_s26 + $0xb0] sm:$0xff] }
 0x6b7   : > { %10227 = vmatpush1.bf16.msra.mxu0 %v10226_v24  ;;  %8494 = vmatprep.mubr.f32.mxu0 %v14905_v56  ;;  %v11968_v24 = vunpack.i.l.bf16 %v11967_v38  ;;  %v9198_v23 = vsel %vm5684_vm12, %v11998_v33, %v11999_v60 }
 0x6b8   : > { %10229 = vmatprep.subr.bf16.mxu0 %v10228_v17  ;;  %v8905_v17 = vsel %vm5291_vm11, %v11964_v4, %v11958_v9  ;;  %v9004_v29 = vsel %vm5422_vm2, %v11973_v58, %v11974_v5  ;;  %v12007_v7 = vpop.permute.xlu1 %12006  ;;  %v12014_v9 = vunpack.i.h.bf16 %v12012_v44  ;;  %v9739_v5 = vld [vmem:[%s15886_s26 + $0xb8] sm:$0xff] }
 0x6b9   : > { %v10246_v41 = vpack.c.bf16 %v8905_v17, %v8903_v49  ;;  %v9002_v8 = vsel %vm5422_vm2, %v11968_v24, %v11969_v52  ;;  %v9001_v37 = vsel %vm5422_vm2, %v11978_v22, %v11968_v24  ;;  %v12008_v53 = vunpack.i.l.bf16 %v12007_v7 }
 0x6ba   : > { %v10248_v11 = vpack.c.bf16 %v9004_v29, %v9002_v8 }
 0x6bb   : > { %v9197_v12 = vsel %vm5684_vm12, %v12008_v53, %v11998_v33 }
 0x6bc   : > { %v12017_v43 = vpop.permute.xlu1 %12016 }
 0x6bd   : > { %v12018_v35 = vunpack.i.l.bf16 %v12017_v43 }
 0x6be   : > { %9724 = vmatmul.mubr.msk.f32.vlgmr.msra.gmra.mrb[14].mxu0 %vm7052_vm8, %v9723_v20  ;;  %v11979_v20 = vunpack.i.h.bf16 %v11977_v0 }
 0x6bf   : > { %10231 = vmatpush1.bf16.msra.mxu0 %v10230_v55  ;;  %8586 = vmatprep.mubr.f32.mxu0 %v14905_v56  ;;  %v11989_v55 = vunpack.i.h.bf16 %v11987_v32 }
 0x6c0   : > { %10233 = vmatprep.subr.bf16.mxu0 %v10232_v54  ;;  %v11988_v54 = vunpack.i.l.bf16 %v11987_v32  ;;  %v9003_v34 = vsel %vm5422_vm2, %v11979_v20, %v11973_v58  ;;  %v9383_v52 = vpop.permute.xlu1 %9382 }
 0x6c2   : > { %v9102_v59 = vsel %vm5553_vm14, %v11988_v54, %v11989_v55 }
 0x6c6   : > { %9726 = vmatmul.mubr.msk.f32.vlgmr.msra.gmra.mrb[14].mxu0 %vm7052_vm8, %v9725_v61  ;;  %v9100_v61 = vsel %vm5553_vm14, %v11983_v36, %v11984_v40 }
 0x6c7   : > { %10235 = vmatpush1.bf16.msra.mxu0 %v10234_v6  ;;  %8678 = vmatprep.mubr.f32.mxu0 %v14905_v56  ;;  %v11949_v56 = vunpack.i.h.bf16 %v11947_v27  ;;  %v9733_v27 = vld [vmem:[%s15886_s26 + $0xa0] sm:$0xff]  ;;  %v10250_v6 = vpack.c.bf16 %v9003_v34, %v9001_v37  ;;  %v10252_v63 = vpack.c.bf16 %v9102_v59, %v9100_v61 }
 0x6c8   : > { %10237 = vmatprep.subr.bf16.mxu0 %v10236_v10  ;;  %v11994_v10 = vunpack.i.h.bf16 %v11992_v39 }
 0x6c9   : > { %v8807_v14 = vsel %vm15918_vm0, %v11949_v56, %v11943_v47  ;;  %v12004_v47 = vunpack.i.h.bf16 %v12002_v16  ;;  %v12009_v56 = vunpack.i.h.bf16 %v12007_v7 }
 0x6ca   : > { %v10242_v3 = vpack.c.bf16 %v8807_v14, %v8805_v30  ;;  %v9101_v45 = vsel %vm5553_vm14, %v11994_v10, %v11988_v54  ;;  %v12022_v14 = vpop.permute.xlu0 %12021  ;;  %vm15921_vm14 = vmmov %vm15913_vm1 }
 0x6cb   : > { %v9200_v51 = vsel %vm5684_vm12, %v12003_v57, %v12004_v47  ;;  %v9199_v30 = vsel %vm5684_vm12, %v12009_v56, %v12003_v57  ;;  %v12024_v0 = vunpack.i.h.bf16 %v12022_v14 }
 0x6cc   : > { %v10256_v38 = vpack.c.bf16 %v9200_v51, %v9198_v23  ;;  %v10258_v48 = vpack.c.bf16 %v9199_v30, %v9197_v12 }
 0x6cd   : > { %v9297_v46 = vsel %vm5815_vm13, %v12024_v0, %v12018_v35 }
 0x6ce   : > { %9728 = vmatmul.mubr.msk.f32.vlgmr.msra.gmra.mrb[14].mxu0 %vm7052_vm8, %v9727_v50  ;;  %v9735_v50 = vld [vmem:[%s15886_s26 + $0xa8] sm:$0xff] }
 0x6cf   : > { %10239 = vmatpush1.bf16.msra.mxu0 %v10238_v26  ;;  %8770 = vmatprep.mubr.f32.mxu0 %v15179_v31  ;;  %v10254_v26 = vpack.c.bf16 %v9101_v45, %v9099_v13 }
 0x6d0   : > { %10241 = vmatprep.subr.bf16.mxu0 %v10240_v18  ;;  %v12019_v18 = vunpack.i.h.bf16 %v12017_v43 }
 0x6d2   : > { %v9298_v1 = vsel %vm5815_vm13, %v12018_v35, %v12019_v18 }
 0x6d6   : > { %9730 = vmatmul.mubr.msk.f32.vlgmr.msra.gmra.mrb[14].mxu0 %vm7052_vm8, %v9729_v15  ;;  %v9296_v15 = vsel %vm5815_vm13, %v12013_v21, %v12014_v9 }
 0x6d7   : > { %10243 = vmatpush1.bf16.msra.mxu0 %v10242_v3  ;;  %8880 = vmatprep.mubr.f32.mxu0 %v15179_v31  ;;  %v12023_v3 = vunpack.i.l.bf16 %v12022_v14  ;;  %v10260_v4 = vpack.c.bf16 %v9298_v1, %v9296_v15 }
 0x6d8   : > { %10245 = vmatprep.subr.bf16.mxu0 %v10244_v28 }
 0x6d9   : > { %v9295_v28 = vsel %vm5815_vm13, %v12023_v3, %v12013_v21 }
 0x6da   : > { %v10262_v58 = vpack.c.bf16 %v9297_v46, %v9295_v28 }
 0x6de   : > { %9732 = vmatmul.mubr.msk.f32.vlgmr.msra.gmra.mrb[14].mxu0 %vm7052_vm8, %v9731_v42 }
 0x6df   : > { %10247 = vmatpush1.bf16.msra.mxu0 %v10246_v41  ;;  %8978 = vmatprep.mubr.f32.mxu0 %v15179_v31 }
 0x6e0   : > { %10249 = vmatprep.subr.bf16.mxu0 %v10248_v11 }
 0x6e6   : > { %9734 = vmatmul.mubr.msk.f32.vlgmr.msra.gmra.mrb[14].mxu0 %vm7052_vm8, %v9733_v27 }
 0x6e7   : > { %10251 = vmatpush1.bf16.msra.mxu0 %v10250_v6  ;;  %9076 = vmatprep.mubr.f32.mxu0 %v15179_v31 }
 0x6e8   : > { %10253 = vmatprep.subr.bf16.mxu0 %v10252_v63 }
 0x6ee   : > { %9736 = vmatmul.mubr.msk.f32.vlgmr.msra.gmra.mrb[14].mxu0 %vm7052_vm8, %v9735_v50 }
 0x6ef   : > { %10255 = vmatpush1.bf16.msra.mxu0 %v10254_v26  ;;  %9174 = vmatprep.mubr.f32.mxu0 %v15179_v31 }
 0x6f0   : > { %10257 = vmatprep.subr.bf16.mxu0 %v10256_v38 }
 0x6f6   : > { %9738 = vmatmul.mubr.msk.f32.vlgmr.msra.gmra.mrb[14].mxu0 %vm7052_vm8, %v9737_v19 }
 0x6f7   : > { %10259 = vmatpush1.bf16.msra.mxu0 %v10258_v48  ;;  %9272 = vmatprep.mubr.f32.mxu0 %v15179_v31 }
 0x6f8   : > { %10261 = vmatprep.subr.bf16.mxu0 %v10260_v4 }
 0x6fe   : > { %9740 = vmatmul.mubr.msk.f32.vlgmr.msra.gmra.mrb[14].mxu0 %vm7052_vm8, %v9739_v5 }
 0x6ff   : > { %10263 = vmatpush1.bf16.msra.mxu0 %v10262_v58  ;;  %9370 = vmatprep.mubr.f32.mxu0 %v15179_v31 }
 0x706   : > { %9742 = vmatmul.mubr.msk.f32.vlgmr.msra.gmra.mrb[14].mxu0 %vm7052_vm8, %v9741_v2 }
 0x7d9   : > { %v9372_v24 = vpop.f32.mrb[14].mxu0 }
 0x7da   : > { %v9385_v17 = vadd.f32 %v9383_v52, %v9372_v24  ;;  %v9374_v49 = vpop.f32.mrb[15].mxu0 }
 0x7db   : > { %v9386_v32 = vadd.f32 %v9383_v52, %v9374_v49 }
 0x7dc   : > { %v9743_v42 = vmul.f32 -1.442695, %v9385_v17 }
 0x7dd   : > { %v9744_v29 = vmul.f32 -1.442695, %v9386_v32 }
 0x7de   : > { %12025 = vpow2.f32 %v9743_v42 }
 0x7df   : > { %12027 = vpow2.f32 %v9744_v29 }
 0x7e8   : > { %v12026_v41 = vpop.eup %12025 }
 0x7e9   : > { %v12028_v8 = vpop.eup %12027  ;;  %v9393_v20 = vadd.f32 1.0, %v12026_v41 }
 0x7ea   : > { %v9394_v31 = vadd.f32 1.0, %v12028_v8 }
 0x7eb   : > { %12029 = vrcp.f32 %v9393_v20 }
 0x7ec   : > { %12031 = vrcp.f32 %v9394_v31 }
 0x7f5   : > { %v12030_v22 = vpop.eup %12029 }
 0x7f6   : > { %v12032_v39 = vpop.eup %12031  ;;  %9399 = vst [vmem:[%s305_s13] sm:$0xff] %v12030_v22 }
 0x7f7   : > { %9400 = vst.msk [vmem:[%s305_s13 + $0x8] sm:$0xff] %vm15921_vm14, %v12032_v39 }
 0x7f8 PF: > { %s15922_s22 = sld [smem:[#allocation4_spill]] }
 0x7fe   : > { %s18_s27 = sadd.s32 1, %s15922_s22  }
 0x7ff   : > { %p15_p4 = scmp.ge.s32.totalorder %s18_s27, 4  }
 0x801   :  { %17 = sbr.rel (!%p15_p4) target bundleno = 8 (0x8), region = 157 }

</bundles_post_ra>
